<compile_context>
chip_gen: v7x
topology: tpu7x:2x2x1
jax: 0.10.0
libtpu: 0.0.40
codegen_flags: <defaults>
</compile_context>

<pallas_src>
import math
from functools import partial

import jax
import jax.numpy as jnp
from jax.experimental import pallas as pl
from jax.experimental.pallas import tpu as pltpu


# ------------------------------ fused kernel ------------------------------- #

def _decoder_kernel(mem_ref, trg_ref, tmask_ref, smask_ref,
                    w_qkv_s_ref, b_qkv_s_ref, w_o_s_ref, b_o_s_ref,
                    w_q_c_ref, b_q_c_ref, w_kv_c_ref, b_kv_c_ref,
                    w_o_c_ref, b_o_c_ref,
                    w1_ref, b1_ref, w2_ref, b2_ref, ln_ref,
                    out_ref, attn_ref, *, n_layers, n_heads, scale):
    D = trg_ref.shape[-1]
    dh = D // n_heads

    # ---- load everything once; stays resident for all layer applications ----
    mem = mem_ref[0]                    # (S_src, D)
    x = trg_ref[0]                      # (S_trg, D)
    tmask = tmask_ref[0]                # (S_trg, S_trg) additive mask (0 / -1e9)
    smask = smask_ref[0]                # (S_trg, S_src) additive mask (0 / -1e9)

    w_qkv_s = w_qkv_s_ref[...]; b_qkv_s = b_qkv_s_ref[...]
    w_o_s = w_o_s_ref[...];     b_o_s = b_o_s_ref[...]
    w_q_c = w_q_c_ref[...];     b_q_c = b_q_c_ref[...]
    w_kv_c = w_kv_c_ref[...];   b_kv_c = b_kv_c_ref[...]
    w_o_c = w_o_c_ref[...];     b_o_c = b_o_c_ref[...]
    w1 = w1_ref[...]; b1 = b1_ref[...]
    w2 = w2_ref[...]; b2 = b2_ref[...]
    ln = ln_ref[...]                    # (6, D): [g1,b1,g2,b2,g3,b3]

    def layer_norm(v, idx):
        g = ln[2 * idx:2 * idx + 1]
        b = ln[2 * idx + 1:2 * idx + 2]
        mu = jnp.mean(v, axis=-1, keepdims=True)
        var = jnp.mean((v - mu) ** 2, axis=-1, keepdims=True)
        return (v - mu) * jax.lax.rsqrt(var + 1e-5) * g + b

    def attention(q_all, k_all, v_all, add_mask, wo, bo, probs_ref=None):
        # All heads handled inside this single kernel invocation.  The output
        # projection is accumulated per head (ctx_h @ Wo[h*dh:(h+1)*dh, :]) which is
        # mathematically identical to concat(ctx_h) @ Wo but avoids a lane concat.
        out = None
        for h in range(n_heads):
            sl = slice(h * dh, (h + 1) * dh)
            s = jnp.dot(q_all[:, sl], k_all[:, sl].T,
                        preferred_element_type=jnp.float32) * scale + add_mask
            s = s - jnp.max(s, axis=-1, keepdims=True)
            e = jnp.exp(s)
            p = e / jnp.sum(e, axis=-1, keepdims=True)
            if probs_ref is not None:             # only final-layer cross-attn
                probs_ref[0, h] = p
            ctx_h = jnp.dot(p, v_all[:, sl], preferred_element_type=jnp.float32)
            contrib = jnp.dot(ctx_h, wo[sl, :], preferred_element_type=jnp.float32)
            out = contrib if out is None else out + contrib
        return out + bo

    # Cross-attention K/V depend only on `memory` and the shared weights, so they are
    # identical for every layer application -> compute once.
    kv_mem = jnp.dot(mem, w_kv_c, preferred_element_type=jnp.float32) + b_kv_c
    k_mem = kv_mem[:, :D]
    v_mem = kv_mem[:, D:]

    # n_layers applications of the SAME layer (shared weights), unrolled at trace time.
    for li in range(n_layers):
        last = (li == n_layers - 1)

        # masked self-attention (fused QKV matmul) + residual + LN1
        qkv = jnp.dot(x, w_qkv_s, preferred_element_type=jnp.float32) + b_qkv_s
        sa = attention(qkv[:, :D], qkv[:, D:2 * D], qkv[:, 2 * D:],
                       tmask, w_o_s, b_o_s)
        x = layer_norm(x + sa, 0)

        # cross-attention over memory + residual + LN2
        q_c = jnp.dot(x, w_q_c, preferred_element_type=jnp.float32) + b_q_c
        ca = attention(q_c, k_mem, v_mem, smask, w_o_c, b_o_c,
                       probs_ref=attn_ref if last else None)
        x = layer_norm(x + ca, 1)

        # position-wise FFN + residual + LN3
        h1 = jnp.maximum(jnp.dot(x, w1, preferred_element_type=jnp.float32) + b1, 0.0)
        ff = jnp.dot(h1, w2, preferred_element_type=jnp.float32) + b2
        x = layer_norm(x + ff, 2)

    out_ref[0] = x


# ------------------------------ module glue -------------------------------- #

def decoder_forward(memory, trg, src_mask, trg_mask, params, n_layers, n_heads):
    B, S_trg, D = trg.shape
    S_src = memory.shape[1]
    F = params["ffn_w1"].shape[1]

    # additive masks (0 keep / -1e9 masked), built ONCE outside the layer loop
    neg = jnp.float32(-1e9)
    trg_add = jnp.where(
        jnp.broadcast_to(trg_mask, (B, 1, S_trg, S_trg))[:, 0] == 0, neg, 0.0
    ).astype(jnp.float32)
    src_add = jnp.where(
        jnp.broadcast_to(src_mask, (B, 1, S_trg, S_src))[:, 0] == 0, neg, 0.0
    ).astype(jnp.float32)

    sa, ca = params["self_attn"], params["cross_attn"]
    w_qkv_s = jnp.concatenate([sa["wq"], sa["wk"], sa["wv"]], axis=1)        # (D, 3D)
    b_qkv_s = jnp.concatenate([sa["bq"], sa["bk"], sa["bv"]]).reshape(1, 3 * D)
    w_kv_c = jnp.concatenate([ca["wk"], ca["wv"]], axis=1)                   # (D, 2D)
    b_kv_c = jnp.concatenate([ca["bk"], ca["bv"]]).reshape(1, 2 * D)
    ln = jnp.stack([params["ln1_g"], params["ln1_b"],
                    params["ln2_g"], params["ln2_b"],
                    params["ln3_g"], params["ln3_b"]], axis=0)               # (6, D)

    def const_spec(shape):
        n = len(shape)
        return pl.BlockSpec(tuple(shape), lambda b: (0,) * n)

    def batch_spec(shape):
        n = len(shape)
        return pl.BlockSpec((1,) + tuple(shape[1:]),
                            lambda b: (b,) + (0,) * (n - 1))

    kernel = partial(_decoder_kernel, n_layers=n_layers, n_heads=n_heads,
                     scale=1.0 / math.sqrt(D // n_heads))

    out, attn = pl.pallas_call(
        kernel,
        out_shape=(
            jax.ShapeDtypeStruct((B, S_trg, D), jnp.float32),
            jax.ShapeDtypeStruct((B, n_heads, S_trg, S_src), jnp.float32),
        ),
        grid=(B,),
        in_specs=[
            batch_spec((B, S_src, D)),                       # memory
            batch_spec((B, S_trg, D)),                       # trg
            batch_spec((B, S_trg, S_trg)),                   # additive trg mask
            batch_spec((B, S_trg, S_src)),                   # additive src mask
            const_spec((D, 3 * D)), const_spec((1, 3 * D)),  # self-attn fused QKV
            const_spec((D, D)), const_spec((1, D)),          # self-attn out proj
            const_spec((D, D)), const_spec((1, D)),          # cross-attn Q proj
            const_spec((D, 2 * D)), const_spec((1, 2 * D)),  # cross-attn fused KV
            const_spec((D, D)), const_spec((1, D)),          # cross-attn out proj
            const_spec((D, F)), const_spec((1, F)),          # FFN w1 / b1
            const_spec((F, D)), const_spec((1, D)),          # FFN w2 / b2
            const_spec((6, D)),                              # LayerNorm params
        ],
        out_specs=(
            batch_spec((B, S_trg, D)),
            batch_spec((B, n_heads, S_trg, S_src)),
        ),
        compiler_params=pltpu.CompilerParams(
            dimension_semantics=("parallel",),
        ),
    )(
        memory, trg, trg_add, src_add,
        w_qkv_s, b_qkv_s, sa["wo"], sa["bo"].reshape(1, D),
        ca["wq"], ca["bq"].reshape(1, D), w_kv_c, b_kv_c,
        ca["wo"], ca["bo"].reshape(1, D),
        params["ffn_w1"], params["ffn_b1"].reshape(1, F),
        params["ffn_w2"], params["ffn_b2"].reshape(1, D),
        ln,
    )
    return out, attn


def init_params(key, d_model, ffn_hidden):
    ks = jax.random.split(key, 4)
    w = lambda k, s: (jax.random.normal(k, s, jnp.float32) * 0.02)
    zeros = lambda s: jnp.zeros(s, jnp.float32)
    ones = lambda s: jnp.ones(s, jnp.float32)

    def attn_params(k4):
        k0, k1, k2, k3 = jax.random.split(k4, 4)
        return {
            "wq": w(k0, (d_model, d_model)), "bq": zeros((d_model,)),
            "wk": w(k1, (d_model, d_model)), "bk": zeros((d_model,)),
            "wv": w(k2, (d_model, d_model)), "bv": zeros((d_model,)),
            "wo": w(k3, (d_model, d_model)), "bo": zeros((d_model,)),
        }

    return {
        "self_attn": attn_params(ks[0]),
        "cross_attn": attn_params(ks[1]),
        "ffn_w1": w(ks[2], (d_model, ffn_hidden)), "ffn_b1": zeros((ffn_hidden,)),
        "ffn_w2": w(ks[3], (ffn_hidden, d_model)), "ffn_b2": zeros((d_model,)),
        "ln1_g": ones((d_model,)), "ln1_b": zeros((d_model,)),
        "ln2_g": ones((d_model,)), "ln2_b": zeros((d_model,)),
        "ln3_g": ones((d_model,)), "ln3_b": zeros((d_model,)),
    }


if __name__ == "__main__":
    B, S_SRC, S_TRG = 2, 8, 8
    D_MODEL, N_HEADS, FFN_HIDDEN, N_LAYERS = 32, 4, 64, 2

    key = jax.random.PRNGKey(0)
    k_mem, k_trg, k_par = jax.random.split(key, 3)

    memory = jax.random.normal(k_mem, (B, S_SRC, D_MODEL), jnp.float32)
    trg = jax.random.normal(k_trg, (B, S_TRG, D_MODEL), jnp.float32)

    # src_mask: all valid (B,1,1,S_src); trg_mask: causal (B,1,S_trg,S_trg)
    src_mask = jnp.ones((B, 1, 1, S_SRC), jnp.float32)
    causal = jnp.tril(jnp.ones((S_TRG, S_TRG), jnp.float32))
    trg_mask = jnp.broadcast_to(causal, (B, 1, S_TRG, S_TRG))

    params = init_params(k_par, D_MODEL, FFN_HIDDEN)

    fwd = jax.jit(partial(decoder_forward, n_layers=N_LAYERS, n_heads=N_HEADS))
    out, attn = fwd(memory, trg, src_mask, trg_mask, params)
    jax.block_until_ready((out, attn))

    assert out.shape == (B, S_TRG, D_MODEL)
    assert attn.shape == (B, N_HEADS, S_TRG, S_SRC)
    assert bool(jnp.all(jnp.isfinite(out))) and bool(jnp.all(jnp.isfinite(attn)))
    print("KERNEL_OK")
</pallas_src>

<mosaic_0001>
module attributes {stable_mosaic.version = 11 : i64} {
  func.func @_decoder_kernel(%arg0: i32, %arg1: memref<1x8x32xf32, #tpu.memory_space<vmem>>, %arg2: memref<1x8x32xf32, #tpu.memory_space<vmem>>, %arg3: memref<1x8x8xf32, #tpu.memory_space<vmem>>, %arg4: memref<1x8x8xf32, #tpu.memory_space<vmem>>, %arg5: memref<32x96xf32, #tpu.memory_space<vmem>>, %arg6: memref<1x96xf32, #tpu.memory_space<vmem>>, %arg7: memref<32x32xf32, #tpu.memory_space<vmem>>, %arg8: memref<1x32xf32, #tpu.memory_space<vmem>>, %arg9: memref<32x32xf32, #tpu.memory_space<vmem>>, %arg10: memref<1x32xf32, #tpu.memory_space<vmem>>, %arg11: memref<32x64xf32, #tpu.memory_space<vmem>>, %arg12: memref<1x64xf32, #tpu.memory_space<vmem>>, %arg13: memref<32x32xf32, #tpu.memory_space<vmem>>, %arg14: memref<1x32xf32, #tpu.memory_space<vmem>>, %arg15: memref<32x64xf32, #tpu.memory_space<vmem>>, %arg16: memref<1x64xf32, #tpu.memory_space<vmem>>, %arg17: memref<64x32xf32, #tpu.memory_space<vmem>>, %arg18: memref<1x32xf32, #tpu.memory_space<vmem>>, %arg19: memref<6x32xf32, #tpu.memory_space<vmem>>, %arg20: memref<1x8x32xf32, #tpu.memory_space<vmem>>, %arg21: memref<1x4x8x8xf32, #tpu.memory_space<vmem>>) attributes {dimension_semantics = [#tpu.dimension_semantics<parallel>], iteration_bounds = array<i64: 2>, scalar_prefetch = 0 : i64, scratch_operands = 0 : i64, tpu.core_type = #tpu.core_type<tc>, window_params = [{transform_indices = @transform_0, window_bounds = array<i64: 1, 8, 32>}, {transform_indices = @transform_1, window_bounds = array<i64: 1, 8, 32>}, {transform_indices = @transform_2, window_bounds = array<i64: 1, 8, 8>}, {transform_indices = @transform_3, window_bounds = array<i64: 1, 8, 8>}, {pipeline_mode = #tpu.pipeline_mode<synchronous>, transform_indices = @transform_4, window_bounds = array<i64: 32, 96>}, {pipeline_mode = #tpu.pipeline_mode<synchronous>, transform_indices = @transform_5, window_bounds = array<i64: 1, 96>}, {pipeline_mode = #tpu.pipeline_mode<synchronous>, transform_indices = @transform_6, window_bounds = array<i64: 32, 32>}, {pipeline_mode = #tpu.pipeline_mode<synchronous>, transform_indices = @transform_7, window_bounds = array<i64: 1, 32>}, {pipeline_mode = #tpu.pipeline_mode<synchronous>, transform_indices = @transform_8, window_bounds = array<i64: 32, 32>}, {pipeline_mode = #tpu.pipeline_mode<synchronous>, transform_indices = @transform_9, window_bounds = array<i64: 1, 32>}, {pipeline_mode = #tpu.pipeline_mode<synchronous>, transform_indices = @transform_10, window_bounds = array<i64: 32, 64>}, {pipeline_mode = #tpu.pipeline_mode<synchronous>, transform_indices = @transform_11, window_bounds = array<i64: 1, 64>}, {pipeline_mode = #tpu.pipeline_mode<synchronous>, transform_indices = @transform_12, window_bounds = array<i64: 32, 32>}, {pipeline_mode = #tpu.pipeline_mode<synchronous>, transform_indices = @transform_13, window_bounds = array<i64: 1, 32>}, {pipeline_mode = #tpu.pipeline_mode<synchronous>, transform_indices = @transform_14, window_bounds = array<i64: 32, 64>}, {pipeline_mode = #tpu.pipeline_mode<synchronous>, transform_indices = @transform_15, window_bounds = array<i64: 1, 64>}, {pipeline_mode = #tpu.pipeline_mode<synchronous>, transform_indices = @transform_16, window_bounds = array<i64: 64, 32>}, {pipeline_mode = #tpu.pipeline_mode<synchronous>, transform_indices = @transform_17, window_bounds = array<i64: 1, 32>}, {pipeline_mode = #tpu.pipeline_mode<synchronous>, transform_indices = @transform_18, window_bounds = array<i64: 6, 32>}, {transform_indices = @transform_19, window_bounds = array<i64: 1, 8, 32>}, {transform_indices = @transform_20, window_bounds = array<i64: 1, 4, 8, 8>}]} {
    %c0 = arith.constant 0 : index
    %c0_0 = arith.constant 0 : index
    %c0_1 = arith.constant 0 : index
    %0 = vector.load %arg1[%c0, %c0_0, %c0_1] : memref<1x8x32xf32, #tpu.memory_space<vmem>>, vector<1x8x32xf32>
    %1 = vector.shape_cast %0 : vector<1x8x32xf32> to vector<8x32xf32>
    %c0_2 = arith.constant 0 : index
    %c0_3 = arith.constant 0 : index
    %c0_4 = arith.constant 0 : index
    %2 = vector.load %arg2[%c0_2, %c0_3, %c0_4] : memref<1x8x32xf32, #tpu.memory_space<vmem>>, vector<1x8x32xf32>
    %3 = vector.shape_cast %2 : vector<1x8x32xf32> to vector<8x32xf32>
    %c0_5 = arith.constant 0 : index
    %c0_6 = arith.constant 0 : index
    %c0_7 = arith.constant 0 : index
    %4 = vector.load %arg3[%c0_5, %c0_6, %c0_7] : memref<1x8x8xf32, #tpu.memory_space<vmem>>, vector<1x8x8xf32>
    %5 = vector.shape_cast %4 : vector<1x8x8xf32> to vector<8x8xf32>
    %c0_8 = arith.constant 0 : index
    %c0_9 = arith.constant 0 : index
    %c0_10 = arith.constant 0 : index
    %6 = vector.load %arg4[%c0_8, %c0_9, %c0_10] : memref<1x8x8xf32, #tpu.memory_space<vmem>>, vector<1x8x8xf32>
    %7 = vector.shape_cast %6 : vector<1x8x8xf32> to vector<8x8xf32>
    %c0_11 = arith.constant 0 : index
    %c0_12 = arith.constant 0 : index
    %8 = vector.load %arg5[%c0_11, %c0_12] : memref<32x96xf32, #tpu.memory_space<vmem>>, vector<32x96xf32>
    %c0_13 = arith.constant 0 : index
    %c0_14 = arith.constant 0 : index
    %9 = vector.load %arg6[%c0_13, %c0_14] : memref<1x96xf32, #tpu.memory_space<vmem>>, vector<1x96xf32>
    %c0_15 = arith.constant 0 : index
    %c0_16 = arith.constant 0 : index
    %10 = vector.load %arg7[%c0_15, %c0_16] : memref<32x32xf32, #tpu.memory_space<vmem>>, vector<32x32xf32>
    %c0_17 = arith.constant 0 : index
    %c0_18 = arith.constant 0 : index
    %11 = vector.load %arg8[%c0_17, %c0_18] : memref<1x32xf32, #tpu.memory_space<vmem>>, vector<1x32xf32>
    %c0_19 = arith.constant 0 : index
    %c0_20 = arith.constant 0 : index
    %12 = vector.load %arg9[%c0_19, %c0_20] : memref<32x32xf32, #tpu.memory_space<vmem>>, vector<32x32xf32>
    %c0_21 = arith.constant 0 : index
    %c0_22 = arith.constant 0 : index
    %13 = vector.load %arg10[%c0_21, %c0_22] : memref<1x32xf32, #tpu.memory_space<vmem>>, vector<1x32xf32>
    %c0_23 = arith.constant 0 : index
    %c0_24 = arith.constant 0 : index
    %14 = vector.load %arg11[%c0_23, %c0_24] : memref<32x64xf32, #tpu.memory_space<vmem>>, vector<32x64xf32>
    %c0_25 = arith.constant 0 : index
    %c0_26 = arith.constant 0 : index
    %15 = vector.load %arg12[%c0_25, %c0_26] : memref<1x64xf32, #tpu.memory_space<vmem>>, vector<1x64xf32>
    %c0_27 = arith.constant 0 : index
    %c0_28 = arith.constant 0 : index
    %16 = vector.load %arg13[%c0_27, %c0_28] : memref<32x32xf32, #tpu.memory_space<vmem>>, vector<32x32xf32>
    %c0_29 = arith.constant 0 : index
    %c0_30 = arith.constant 0 : index
    %17 = vector.load %arg14[%c0_29, %c0_30] : memref<1x32xf32, #tpu.memory_space<vmem>>, vector<1x32xf32>
    %c0_31 = arith.constant 0 : index
    %c0_32 = arith.constant 0 : index
    %18 = vector.load %arg15[%c0_31, %c0_32] : memref<32x64xf32, #tpu.memory_space<vmem>>, vector<32x64xf32>
    %c0_33 = arith.constant 0 : index
    %c0_34 = arith.constant 0 : index
    %19 = vector.load %arg16[%c0_33, %c0_34] : memref<1x64xf32, #tpu.memory_space<vmem>>, vector<1x64xf32>
    %c0_35 = arith.constant 0 : index
    %c0_36 = arith.constant 0 : index
    %20 = vector.load %arg17[%c0_35, %c0_36] : memref<64x32xf32, #tpu.memory_space<vmem>>, vector<64x32xf32>
    %c0_37 = arith.constant 0 : index
    %c0_38 = arith.constant 0 : index
    %21 = vector.load %arg18[%c0_37, %c0_38] : memref<1x32xf32, #tpu.memory_space<vmem>>, vector<1x32xf32>
    %c0_39 = arith.constant 0 : index
    %c0_40 = arith.constant 0 : index
    %22 = vector.load %arg19[%c0_39, %c0_40] : memref<6x32xf32, #tpu.memory_space<vmem>>, vector<6x32xf32>
    %cst = arith.constant dense<0.000000e+00> : vector<8x64xf32>
    %23 = tpu.matmul %1, %14, %cst {dimension_numbers = #tpu.dot_dimension_numbers<[1], [0], [0], [1], [0, 0, 1, 1], [], []>} : vector<8x32xf32>, vector<32x64xf32>, vector<8x64xf32> -> vector<8x64xf32>
    %24 = vector.broadcast %15 : vector<1x64xf32> to vector<8x64xf32>
    %25 = arith.addf %23, %24 : vector<8x64xf32>
    %26 = vector.extract_strided_slice %25 {offsets = [0, 0], sizes = [8, 32], strides = [1, 1]} : vector<8x64xf32> to vector<8x32xf32>
    %27 = vector.extract_strided_slice %25 {offsets = [0, 32], sizes = [8, 32], strides = [1, 1]} : vector<8x64xf32> to vector<8x32xf32>
    %cst_41 = arith.constant dense<0.000000e+00> : vector<8x96xf32>
    %28 = tpu.matmul %3, %8, %cst_41 {dimension_numbers = #tpu.dot_dimension_numbers<[1], [0], [0], [1], [0, 0, 1, 1], [], []>} : vector<8x32xf32>, vector<32x96xf32>, vector<8x96xf32> -> vector<8x96xf32>
    %29 = vector.broadcast %9 : vector<1x96xf32> to vector<8x96xf32>
    %30 = arith.addf %28, %29 : vector<8x96xf32>
    %31 = vector.extract_strided_slice %30 {offsets = [0, 0], sizes = [8, 32], strides = [1, 1]} : vector<8x96xf32> to vector<8x32xf32>
    %32 = vector.extract_strided_slice %30 {offsets = [0, 32], sizes = [8, 32], strides = [1, 1]} : vector<8x96xf32> to vector<8x32xf32>
    %33 = vector.extract_strided_slice %30 {offsets = [0, 64], sizes = [8, 32], strides = [1, 1]} : vector<8x96xf32> to vector<8x32xf32>
    %34 = vector.extract_strided_slice %31 {offsets = [0, 0], sizes = [8, 8], strides = [1, 1]} : vector<8x32xf32> to vector<8x8xf32>
    %35 = vector.extract_strided_slice %32 {offsets = [0, 0], sizes = [8, 8], strides = [1, 1]} : vector<8x32xf32> to vector<8x8xf32>
    %36 = tpu.transpose %35, [1, 0] : vector<8x8xf32> -> vector<8x8xf32>
    %cst_42 = arith.constant dense<0.000000e+00> : vector<8x8xf32>
    %37 = tpu.matmul %34, %36, %cst_42 {dimension_numbers = #tpu.dot_dimension_numbers<[1], [0], [0], [1], [0, 0, 1, 1], [], []>} : vector<8x8xf32>, vector<8x8xf32>, vector<8x8xf32> -> vector<8x8xf32>
    %cst_43 = arith.constant 0.353553385 : f32
    %38 = vector.broadcast %cst_43 : f32 to vector<8x8xf32>
    %39 = arith.mulf %37, %38 : vector<8x8xf32>
    %40 = arith.addf %39, %5 : vector<8x8xf32>
    %cst_44 = arith.constant dense<0xFF800000> : vector<8xf32>
    %41 = vector.multi_reduction <maximumf>, %40, %cst_44 [1] : vector<8x8xf32> to vector<8xf32>
    %42 = vector.shape_cast %41 : vector<8xf32> to vector<8x1xf32>
    %43 = vector.broadcast %42 : vector<8x1xf32> to vector<8x8xf32>
    %44 = arith.subf %40, %43 : vector<8x8xf32>
    %45 = math.exp %44 : vector<8x8xf32>
    %cst_45 = arith.constant dense<0.000000e+00> : vector<8xf32>
    %46 = vector.multi_reduction <add>, %45, %cst_45 [1] : vector<8x8xf32> to vector<8xf32>
    %47 = vector.shape_cast %46 : vector<8xf32> to vector<8x1xf32>
    %48 = vector.broadcast %47 : vector<8x1xf32> to vector<8x8xf32>
    %49 = arith.divf %45, %48 : vector<8x8xf32>
    %50 = vector.extract_strided_slice %33 {offsets = [0, 0], sizes = [8, 8], strides = [1, 1]} : vector<8x32xf32> to vector<8x8xf32>
    %cst_46 = arith.constant dense<0.000000e+00> : vector<8x8xf32>
    %51 = tpu.matmul %49, %50, %cst_46 {dimension_numbers = #tpu.dot_dimension_numbers<[1], [0], [0], [1], [0, 0, 1, 1], [], []>} : vector<8x8xf32>, vector<8x8xf32>, vector<8x8xf32> -> vector<8x8xf32>
    %52 = vector.extract_strided_slice %10 {offsets = [0, 0], sizes = [8, 32], strides = [1, 1]} : vector<32x32xf32> to vector<8x32xf32>
    %cst_47 = arith.constant dense<0.000000e+00> : vector<8x32xf32>
    %53 = tpu.matmul %51, %52, %cst_47 {dimension_numbers = #tpu.dot_dimension_numbers<[1], [0], [0], [1], [0, 0, 1, 1], [], []>} : vector<8x8xf32>, vector<8x32xf32>, vector<8x32xf32> -> vector<8x32xf32>
    %54 = vector.extract_strided_slice %31 {offsets = [0, 8], sizes = [8, 8], strides = [1, 1]} : vector<8x32xf32> to vector<8x8xf32>
    %55 = vector.extract_strided_slice %32 {offsets = [0, 8], sizes = [8, 8], strides = [1, 1]} : vector<8x32xf32> to vector<8x8xf32>
    %56 = tpu.transpose %55, [1, 0] : vector<8x8xf32> -> vector<8x8xf32>
    %cst_48 = arith.constant dense<0.000000e+00> : vector<8x8xf32>
    %57 = tpu.matmul %54, %56, %cst_48 {dimension_numbers = #tpu.dot_dimension_numbers<[1], [0], [0], [1], [0, 0, 1, 1], [], []>} : vector<8x8xf32>, vector<8x8xf32>, vector<8x8xf32> -> vector<8x8xf32>
    %cst_49 = arith.constant 0.353553385 : f32
    %58 = vector.broadcast %cst_49 : f32 to vector<8x8xf32>
    %59 = arith.mulf %57, %58 : vector<8x8xf32>
    %60 = arith.addf %59, %5 : vector<8x8xf32>
    %cst_50 = arith.constant dense<0xFF800000> : vector<8xf32>
    %61 = vector.multi_reduction <maximumf>, %60, %cst_50 [1] : vector<8x8xf32> to vector<8xf32>
    %62 = vector.shape_cast %61 : vector<8xf32> to vector<8x1xf32>
    %63 = vector.broadcast %62 : vector<8x1xf32> to vector<8x8xf32>
    %64 = arith.subf %60, %63 : vector<8x8xf32>
    %65 = math.exp %64 : vector<8x8xf32>
    %cst_51 = arith.constant dense<0.000000e+00> : vector<8xf32>
    %66 = vector.multi_reduction <add>, %65, %cst_51 [1] : vector<8x8xf32> to vector<8xf32>
    %67 = vector.shape_cast %66 : vector<8xf32> to vector<8x1xf32>
    %68 = vector.broadcast %67 : vector<8x1xf32> to vector<8x8xf32>
    %69 = arith.divf %65, %68 : vector<8x8xf32>
    %70 = vector.extract_strided_slice %33 {offsets = [0, 8], sizes = [8, 8], strides = [1, 1]} : vector<8x32xf32> to vector<8x8xf32>
    %cst_52 = arith.constant dense<0.000000e+00> : vector<8x8xf32>
    %71 = tpu.matmul %69, %70, %cst_52 {dimension_numbers = #tpu.dot_dimension_numbers<[1], [0], [0], [1], [0, 0, 1, 1], [], []>} : vector<8x8xf32>, vector<8x8xf32>, vector<8x8xf32> -> vector<8x8xf32>
    %72 = vector.extract_strided_slice %10 {offsets = [8, 0], sizes = [8, 32], strides = [1, 1]} : vector<32x32xf32> to vector<8x32xf32>
    %cst_53 = arith.constant dense<0.000000e+00> : vector<8x32xf32>
    %73 = tpu.matmul %71, %72, %cst_53 {dimension_numbers = #tpu.dot_dimension_numbers<[1], [0], [0], [1], [0, 0, 1, 1], [], []>} : vector<8x8xf32>, vector<8x32xf32>, vector<8x32xf32> -> vector<8x32xf32>
    %74 = arith.addf %53, %73 : vector<8x32xf32>
    %75 = vector.extract_strided_slice %31 {offsets = [0, 16], sizes = [8, 8], strides = [1, 1]} : vector<8x32xf32> to vector<8x8xf32>
    %76 = vector.extract_strided_slice %32 {offsets = [0, 16], sizes = [8, 8], strides = [1, 1]} : vector<8x32xf32> to vector<8x8xf32>
    %77 = tpu.transpose %76, [1, 0] : vector<8x8xf32> -> vector<8x8xf32>
    %cst_54 = arith.constant dense<0.000000e+00> : vector<8x8xf32>
    %78 = tpu.matmul %75, %77, %cst_54 {dimension_numbers = #tpu.dot_dimension_numbers<[1], [0], [0], [1], [0, 0, 1, 1], [], []>} : vector<8x8xf32>, vector<8x8xf32>, vector<8x8xf32> -> vector<8x8xf32>
    %cst_55 = arith.constant 0.353553385 : f32
    %79 = vector.broadcast %cst_55 : f32 to vector<8x8xf32>
    %80 = arith.mulf %78, %79 : vector<8x8xf32>
    %81 = arith.addf %80, %5 : vector<8x8xf32>
    %cst_56 = arith.constant dense<0xFF800000> : vector<8xf32>
    %82 = vector.multi_reduction <maximumf>, %81, %cst_56 [1] : vector<8x8xf32> to vector<8xf32>
    %83 = vector.shape_cast %82 : vector<8xf32> to vector<8x1xf32>
    %84 = vector.broadcast %83 : vector<8x1xf32> to vector<8x8xf32>
    %85 = arith.subf %81, %84 : vector<8x8xf32>
    %86 = math.exp %85 : vector<8x8xf32>
    %cst_57 = arith.constant dense<0.000000e+00> : vector<8xf32>
    %87 = vector.multi_reduction <add>, %86, %cst_57 [1] : vector<8x8xf32> to vector<8xf32>
    %88 = vector.shape_cast %87 : vector<8xf32> to vector<8x1xf32>
    %89 = vector.broadcast %88 : vector<8x1xf32> to vector<8x8xf32>
    %90 = arith.divf %86, %89 : vector<8x8xf32>
    %91 = vector.extract_strided_slice %33 {offsets = [0, 16], sizes = [8, 8], strides = [1, 1]} : vector<8x32xf32> to vector<8x8xf32>
    %cst_58 = arith.constant dense<0.000000e+00> : vector<8x8xf32>
    %92 = tpu.matmul %90, %91, %cst_58 {dimension_numbers = #tpu.dot_dimension_numbers<[1], [0], [0], [1], [0, 0, 1, 1], [], []>} : vector<8x8xf32>, vector<8x8xf32>, vector<8x8xf32> -> vector<8x8xf32>
    %93 = vector.extract_strided_slice %10 {offsets = [16, 0], sizes = [8, 32], strides = [1, 1]} : vector<32x32xf32> to vector<8x32xf32>
    %cst_59 = arith.constant dense<0.000000e+00> : vector<8x32xf32>
    %94 = tpu.matmul %92, %93, %cst_59 {dimension_numbers = #tpu.dot_dimension_numbers<[1], [0], [0], [1], [0, 0, 1, 1], [], []>} : vector<8x8xf32>, vector<8x32xf32>, vector<8x32xf32> -> vector<8x32xf32>
    %95 = arith.addf %74, %94 : vector<8x32xf32>
    %96 = vector.extract_strided_slice %31 {offsets = [0, 24], sizes = [8, 8], strides = [1, 1]} : vector<8x32xf32> to vector<8x8xf32>
    %97 = vector.extract_strided_slice %32 {offsets = [0, 24], sizes = [8, 8], strides = [1, 1]} : vector<8x32xf32> to vector<8x8xf32>
    %98 = tpu.transpose %97, [1, 0] : vector<8x8xf32> -> vector<8x8xf32>
    %cst_60 = arith.constant dense<0.000000e+00> : vector<8x8xf32>
    %99 = tpu.matmul %96, %98, %cst_60 {dimension_numbers = #tpu.dot_dimension_numbers<[1], [0], [0], [1], [0, 0, 1, 1], [], []>} : vector<8x8xf32>, vector<8x8xf32>, vector<8x8xf32> -> vector<8x8xf32>
    %cst_61 = arith.constant 0.353553385 : f32
    %100 = vector.broadcast %cst_61 : f32 to vector<8x8xf32>
    %101 = arith.mulf %99, %100 : vector<8x8xf32>
    %102 = arith.addf %101, %5 : vector<8x8xf32>
    %cst_62 = arith.constant dense<0xFF800000> : vector<8xf32>
    %103 = vector.multi_reduction <maximumf>, %102, %cst_62 [1] : vector<8x8xf32> to vector<8xf32>
    %104 = vector.shape_cast %103 : vector<8xf32> to vector<8x1xf32>
    %105 = vector.broadcast %104 : vector<8x1xf32> to vector<8x8xf32>
    %106 = arith.subf %102, %105 : vector<8x8xf32>
    %107 = math.exp %106 : vector<8x8xf32>
    %cst_63 = arith.constant dense<0.000000e+00> : vector<8xf32>
    %108 = vector.multi_reduction <add>, %107, %cst_63 [1] : vector<8x8xf32> to vector<8xf32>
    %109 = vector.shape_cast %108 : vector<8xf32> to vector<8x1xf32>
    %110 = vector.broadcast %109 : vector<8x1xf32> to vector<8x8xf32>
    %111 = arith.divf %107, %110 : vector<8x8xf32>
    %112 = vector.extract_strided_slice %33 {offsets = [0, 24], sizes = [8, 8], strides = [1, 1]} : vector<8x32xf32> to vector<8x8xf32>
    %cst_64 = arith.constant dense<0.000000e+00> : vector<8x8xf32>
    %113 = tpu.matmul %111, %112, %cst_64 {dimension_numbers = #tpu.dot_dimension_numbers<[1], [0], [0], [1], [0, 0, 1, 1], [], []>} : vector<8x8xf32>, vector<8x8xf32>, vector<8x8xf32> -> vector<8x8xf32>
    %114 = vector.extract_strided_slice %10 {offsets = [24, 0], sizes = [8, 32], strides = [1, 1]} : vector<32x32xf32> to vector<8x32xf32>
    %cst_65 = arith.constant dense<0.000000e+00> : vector<8x32xf32>
    %115 = tpu.matmul %113, %114, %cst_65 {dimension_numbers = #tpu.dot_dimension_numbers<[1], [0], [0], [1], [0, 0, 1, 1], [], []>} : vector<8x8xf32>, vector<8x32xf32>, vector<8x32xf32> -> vector<8x32xf32>
    %116 = arith.addf %95, %115 : vector<8x32xf32>
    %117 = vector.broadcast %11 : vector<1x32xf32> to vector<8x32xf32>
    %118 = arith.addf %116, %117 : vector<8x32xf32>
    %119 = arith.addf %3, %118 : vector<8x32xf32>
    %120 = vector.extract_strided_slice %22 {offsets = [0, 0], sizes = [1, 32], strides = [1, 1]} : vector<6x32xf32> to vector<1x32xf32>
    %121 = vector.extract_strided_slice %22 {offsets = [1, 0], sizes = [1, 32], strides = [1, 1]} : vector<6x32xf32> to vector<1x32xf32>
    %cst_66 = arith.constant dense<0.000000e+00> : vector<8xf32>
    %122 = vector.multi_reduction <add>, %119, %cst_66 [1] : vector<8x32xf32> to vector<8xf32>
    %123 = vector.shape_cast %122 : vector<8xf32> to vector<8x1xf32>
    %cst_67 = arith.constant 3.200000e+01 : f32
    %124 = vector.broadcast %cst_67 : f32 to vector<8x1xf32>
    %125 = arith.divf %123, %124 : vector<8x1xf32>
    %126 = vector.broadcast %125 : vector<8x1xf32> to vector<8x32xf32>
    %127 = arith.subf %119, %126 : vector<8x32xf32>
    %128 = arith.mulf %127, %127 : vector<8x32xf32>
    %cst_68 = arith.constant dense<0.000000e+00> : vector<8xf32>
    %129 = vector.multi_reduction <add>, %128, %cst_68 [1] : vector<8x32xf32> to vector<8xf32>
    %130 = vector.shape_cast %129 : vector<8xf32> to vector<8x1xf32>
    %cst_69 = arith.constant 3.200000e+01 : f32
    %131 = vector.broadcast %cst_69 : f32 to vector<8x1xf32>
    %132 = arith.divf %130, %131 : vector<8x1xf32>
    %133 = vector.broadcast %125 : vector<8x1xf32> to vector<8x32xf32>
    %134 = arith.subf %119, %133 : vector<8x32xf32>
    %cst_70 = arith.constant 9.99999974E-6 : f32
    %135 = vector.broadcast %cst_70 : f32 to vector<8x1xf32>
    %136 = arith.addf %132, %135 : vector<8x1xf32>
    %137 = math.rsqrt %136 : vector<8x1xf32>
    %138 = vector.broadcast %137 : vector<8x1xf32> to vector<8x32xf32>
    %139 = arith.mulf %134, %138 : vector<8x32xf32>
    %140 = vector.broadcast %120 : vector<1x32xf32> to vector<8x32xf32>
    %141 = arith.mulf %139, %140 : vector<8x32xf32>
    %142 = vector.broadcast %121 : vector<1x32xf32> to vector<8x32xf32>
    %143 = arith.addf %141, %142 : vector<8x32xf32>
    %cst_71 = arith.constant dense<0.000000e+00> : vector<8x32xf32>
    %144 = tpu.matmul %143, %12, %cst_71 {dimension_numbers = #tpu.dot_dimension_numbers<[1], [0], [0], [1], [0, 0, 1, 1], [], []>} : vector<8x32xf32>, vector<32x32xf32>, vector<8x32xf32> -> vector<8x32xf32>
    %145 = vector.broadcast %13 : vector<1x32xf32> to vector<8x32xf32>
    %146 = arith.addf %144, %145 : vector<8x32xf32>
    %147 = vector.extract_strided_slice %146 {offsets = [0, 0], sizes = [8, 8], strides = [1, 1]} : vector<8x32xf32> to vector<8x8xf32>
    %148 = vector.extract_strided_slice %26 {offsets = [0, 0], sizes = [8, 8], strides = [1, 1]} : vector<8x32xf32> to vector<8x8xf32>
    %149 = tpu.transpose %148, [1, 0] : vector<8x8xf32> -> vector<8x8xf32>
    %cst_72 = arith.constant dense<0.000000e+00> : vector<8x8xf32>
    %150 = tpu.matmul %147, %149, %cst_72 {dimension_numbers = #tpu.dot_dimension_numbers<[1], [0], [0], [1], [0, 0, 1, 1], [], []>} : vector<8x8xf32>, vector<8x8xf32>, vector<8x8xf32> -> vector<8x8xf32>
    %cst_73 = arith.constant 0.353553385 : f32
    %151 = vector.broadcast %cst_73 : f32 to vector<8x8xf32>
    %152 = arith.mulf %150, %151 : vector<8x8xf32>
    %153 = arith.addf %152, %7 : vector<8x8xf32>
    %cst_74 = arith.constant dense<0xFF800000> : vector<8xf32>
    %154 = vector.multi_reduction <maximumf>, %153, %cst_74 [1] : vector<8x8xf32> to vector<8xf32>
    %155 = vector.shape_cast %154 : vector<8xf32> to vector<8x1xf32>
    %156 = vector.broadcast %155 : vector<8x1xf32> to vector<8x8xf32>
    %157 = arith.subf %153, %156 : vector<8x8xf32>
    %158 = math.exp %157 : vector<8x8xf32>
    %cst_75 = arith.constant dense<0.000000e+00> : vector<8xf32>
    %159 = vector.multi_reduction <add>, %158, %cst_75 [1] : vector<8x8xf32> to vector<8xf32>
    %160 = vector.shape_cast %159 : vector<8xf32> to vector<8x1xf32>
    %161 = vector.broadcast %160 : vector<8x1xf32> to vector<8x8xf32>
    %162 = arith.divf %158, %161 : vector<8x8xf32>
    %163 = vector.extract_strided_slice %27 {offsets = [0, 0], sizes = [8, 8], strides = [1, 1]} : vector<8x32xf32> to vector<8x8xf32>
    %cst_76 = arith.constant dense<0.000000e+00> : vector<8x8xf32>
    %164 = tpu.matmul %162, %163, %cst_76 {dimension_numbers = #tpu.dot_dimension_numbers<[1], [0], [0], [1], [0, 0, 1, 1], [], []>} : vector<8x8xf32>, vector<8x8xf32>, vector<8x8xf32> -> vector<8x8xf32>
    %165 = vector.extract_strided_slice %16 {offsets = [0, 0], sizes = [8, 32], strides = [1, 1]} : vector<32x32xf32> to vector<8x32xf32>
    %cst_77 = arith.constant dense<0.000000e+00> : vector<8x32xf32>
    %166 = tpu.matmul %164, %165, %cst_77 {dimension_numbers = #tpu.dot_dimension_numbers<[1], [0], [0], [1], [0, 0, 1, 1], [], []>} : vector<8x8xf32>, vector<8x32xf32>, vector<8x32xf32> -> vector<8x32xf32>
    %167 = vector.extract_strided_slice %146 {offsets = [0, 8], sizes = [8, 8], strides = [1, 1]} : vector<8x32xf32> to vector<8x8xf32>
    %168 = vector.extract_strided_slice %26 {offsets = [0, 8], sizes = [8, 8], strides = [1, 1]} : vector<8x32xf32> to vector<8x8xf32>
    %169 = tpu.transpose %168, [1, 0] : vector<8x8xf32> -> vector<8x8xf32>
    %cst_78 = arith.constant dense<0.000000e+00> : vector<8x8xf32>
    %170 = tpu.matmul %167, %169, %cst_78 {dimension_numbers = #tpu.dot_dimension_numbers<[1], [0], [0], [1], [0, 0, 1, 1], [], []>} : vector<8x8xf32>, vector<8x8xf32>, vector<8x8xf32> -> vector<8x8xf32>
    %cst_79 = arith.constant 0.353553385 : f32
    %171 = vector.broadcast %cst_79 : f32 to vector<8x8xf32>
    %172 = arith.mulf %170, %171 : vector<8x8xf32>
    %173 = arith.addf %172, %7 : vector<8x8xf32>
    %cst_80 = arith.constant dense<0xFF800000> : vector<8xf32>
    %174 = vector.multi_reduction <maximumf>, %173, %cst_80 [1] : vector<8x8xf32> to vector<8xf32>
    %175 = vector.shape_cast %174 : vector<8xf32> to vector<8x1xf32>
    %176 = vector.broadcast %175 : vector<8x1xf32> to vector<8x8xf32>
    %177 = arith.subf %173, %176 : vector<8x8xf32>
    %178 = math.exp %177 : vector<8x8xf32>
    %cst_81 = arith.constant dense<0.000000e+00> : vector<8xf32>
    %179 = vector.multi_reduction <add>, %178, %cst_81 [1] : vector<8x8xf32> to vector<8xf32>
    %180 = vector.shape_cast %179 : vector<8xf32> to vector<8x1xf32>
    %181 = vector.broadcast %180 : vector<8x1xf32> to vector<8x8xf32>
    %182 = arith.divf %178, %181 : vector<8x8xf32>
    %183 = vector.extract_strided_slice %27 {offsets = [0, 8], sizes = [8, 8], strides = [1, 1]} : vector<8x32xf32> to vector<8x8xf32>
    %cst_82 = arith.constant dense<0.000000e+00> : vector<8x8xf32>
    %184 = tpu.matmul %182, %183, %cst_82 {dimension_numbers = #tpu.dot_dimension_numbers<[1], [0], [0], [1], [0, 0, 1, 1], [], []>} : vector<8x8xf32>, vector<8x8xf32>, vector<8x8xf32> -> vector<8x8xf32>
    %185 = vector.extract_strided_slice %16 {offsets = [8, 0], sizes = [8, 32], strides = [1, 1]} : vector<32x32xf32> to vector<8x32xf32>
    %cst_83 = arith.constant dense<0.000000e+00> : vector<8x32xf32>
    %186 = tpu.matmul %184, %185, %cst_83 {dimension_numbers = #tpu.dot_dimension_numbers<[1], [0], [0], [1], [0, 0, 1, 1], [], []>} : vector<8x8xf32>, vector<8x32xf32>, vector<8x32xf32> -> vector<8x32xf32>
    %187 = arith.addf %166, %186 : vector<8x32xf32>
    %188 = vector.extract_strided_slice %146 {offsets = [0, 16], sizes = [8, 8], strides = [1, 1]} : vector<8x32xf32> to vector<8x8xf32>
    %189 = vector.extract_strided_slice %26 {offsets = [0, 16], sizes = [8, 8], strides = [1, 1]} : vector<8x32xf32> to vector<8x8xf32>
    %190 = tpu.transpose %189, [1, 0] : vector<8x8xf32> -> vector<8x8xf32>
    %cst_84 = arith.constant dense<0.000000e+00> : vector<8x8xf32>
    %191 = tpu.matmul %188, %190, %cst_84 {dimension_numbers = #tpu.dot_dimension_numbers<[1], [0], [0], [1], [0, 0, 1, 1], [], []>} : vector<8x8xf32>, vector<8x8xf32>, vector<8x8xf32> -> vector<8x8xf32>
    %cst_85 = arith.constant 0.353553385 : f32
    %192 = vector.broadcast %cst_85 : f32 to vector<8x8xf32>
    %193 = arith.mulf %191, %192 : vector<8x8xf32>
    %194 = arith.addf %193, %7 : vector<8x8xf32>
    %cst_86 = arith.constant dense<0xFF800000> : vector<8xf32>
    %195 = vector.multi_reduction <maximumf>, %194, %cst_86 [1] : vector<8x8xf32> to vector<8xf32>
    %196 = vector.shape_cast %195 : vector<8xf32> to vector<8x1xf32>
    %197 = vector.broadcast %196 : vector<8x1xf32> to vector<8x8xf32>
    %198 = arith.subf %194, %197 : vector<8x8xf32>
    %199 = math.exp %198 : vector<8x8xf32>
    %cst_87 = arith.constant dense<0.000000e+00> : vector<8xf32>
    %200 = vector.multi_reduction <add>, %199, %cst_87 [1] : vector<8x8xf32> to vector<8xf32>
    %201 = vector.shape_cast %200 : vector<8xf32> to vector<8x1xf32>
    %202 = vector.broadcast %201 : vector<8x1xf32> to vector<8x8xf32>
    %203 = arith.divf %199, %202 : vector<8x8xf32>
    %204 = vector.extract_strided_slice %27 {offsets = [0, 16], sizes = [8, 8], strides = [1, 1]} : vector<8x32xf32> to vector<8x8xf32>
    %cst_88 = arith.constant dense<0.000000e+00> : vector<8x8xf32>
    %205 = tpu.matmul %203, %204, %cst_88 {dimension_numbers = #tpu.dot_dimension_numbers<[1], [0], [0], [1], [0, 0, 1, 1], [], []>} : vector<8x8xf32>, vector<8x8xf32>, vector<8x8xf32> -> vector<8x8xf32>
    %206 = vector.extract_strided_slice %16 {offsets = [16, 0], sizes = [8, 32], strides = [1, 1]} : vector<32x32xf32> to vector<8x32xf32>
    %cst_89 = arith.constant dense<0.000000e+00> : vector<8x32xf32>
    %207 = tpu.matmul %205, %206, %cst_89 {dimension_numbers = #tpu.dot_dimension_numbers<[1], [0], [0], [1], [0, 0, 1, 1], [], []>} : vector<8x8xf32>, vector<8x32xf32>, vector<8x32xf32> -> vector<8x32xf32>
    %208 = arith.addf %187, %207 : vector<8x32xf32>
    %209 = vector.extract_strided_slice %146 {offsets = [0, 24], sizes = [8, 8], strides = [1, 1]} : vector<8x32xf32> to vector<8x8xf32>
    %210 = vector.extract_strided_slice %26 {offsets = [0, 24], sizes = [8, 8], strides = [1, 1]} : vector<8x32xf32> to vector<8x8xf32>
    %211 = tpu.transpose %210, [1, 0] : vector<8x8xf32> -> vector<8x8xf32>
    %cst_90 = arith.constant dense<0.000000e+00> : vector<8x8xf32>
    %212 = tpu.matmul %209, %211, %cst_90 {dimension_numbers = #tpu.dot_dimension_numbers<[1], [0], [0], [1], [0, 0, 1, 1], [], []>} : vector<8x8xf32>, vector<8x8xf32>, vector<8x8xf32> -> vector<8x8xf32>
    %cst_91 = arith.constant 0.353553385 : f32
    %213 = vector.broadcast %cst_91 : f32 to vector<8x8xf32>
    %214 = arith.mulf %212, %213 : vector<8x8xf32>
    %215 = arith.addf %214, %7 : vector<8x8xf32>
    %cst_92 = arith.constant dense<0xFF800000> : vector<8xf32>
    %216 = vector.multi_reduction <maximumf>, %215, %cst_92 [1] : vector<8x8xf32> to vector<8xf32>
    %217 = vector.shape_cast %216 : vector<8xf32> to vector<8x1xf32>
    %218 = vector.broadcast %217 : vector<8x1xf32> to vector<8x8xf32>
    %219 = arith.subf %215, %218 : vector<8x8xf32>
    %220 = math.exp %219 : vector<8x8xf32>
    %cst_93 = arith.constant dense<0.000000e+00> : vector<8xf32>
    %221 = vector.multi_reduction <add>, %220, %cst_93 [1] : vector<8x8xf32> to vector<8xf32>
    %222 = vector.shape_cast %221 : vector<8xf32> to vector<8x1xf32>
    %223 = vector.broadcast %222 : vector<8x1xf32> to vector<8x8xf32>
    %224 = arith.divf %220, %223 : vector<8x8xf32>
    %225 = vector.extract_strided_slice %27 {offsets = [0, 24], sizes = [8, 8], strides = [1, 1]} : vector<8x32xf32> to vector<8x8xf32>
    %cst_94 = arith.constant dense<0.000000e+00> : vector<8x8xf32>
    %226 = tpu.matmul %224, %225, %cst_94 {dimension_numbers = #tpu.dot_dimension_numbers<[1], [0], [0], [1], [0, 0, 1, 1], [], []>} : vector<8x8xf32>, vector<8x8xf32>, vector<8x8xf32> -> vector<8x8xf32>
    %227 = vector.extract_strided_slice %16 {offsets = [24, 0], sizes = [8, 32], strides = [1, 1]} : vector<32x32xf32> to vector<8x32xf32>
    %cst_95 = arith.constant dense<0.000000e+00> : vector<8x32xf32>
    %228 = tpu.matmul %226, %227, %cst_95 {dimension_numbers = #tpu.dot_dimension_numbers<[1], [0], [0], [1], [0, 0, 1, 1], [], []>} : vector<8x8xf32>, vector<8x32xf32>, vector<8x32xf32> -> vector<8x32xf32>
    %229 = arith.addf %208, %228 : vector<8x32xf32>
    %230 = vector.broadcast %17 : vector<1x32xf32> to vector<8x32xf32>
    %231 = arith.addf %229, %230 : vector<8x32xf32>
    %232 = arith.addf %143, %231 : vector<8x32xf32>
    %233 = vector.extract_strided_slice %22 {offsets = [2, 0], sizes = [1, 32], strides = [1, 1]} : vector<6x32xf32> to vector<1x32xf32>
    %234 = vector.extract_strided_slice %22 {offsets = [3, 0], sizes = [1, 32], strides = [1, 1]} : vector<6x32xf32> to vector<1x32xf32>
    %cst_96 = arith.constant dense<0.000000e+00> : vector<8xf32>
    %235 = vector.multi_reduction <add>, %232, %cst_96 [1] : vector<8x32xf32> to vector<8xf32>
    %236 = vector.shape_cast %235 : vector<8xf32> to vector<8x1xf32>
    %cst_97 = arith.constant 3.200000e+01 : f32
    %237 = vector.broadcast %cst_97 : f32 to vector<8x1xf32>
    %238 = arith.divf %236, %237 : vector<8x1xf32>
    %239 = vector.broadcast %238 : vector<8x1xf32> to vector<8x32xf32>
    %240 = arith.subf %232, %239 : vector<8x32xf32>
    %241 = arith.mulf %240, %240 : vector<8x32xf32>
    %cst_98 = arith.constant dense<0.000000e+00> : vector<8xf32>
    %242 = vector.multi_reduction <add>, %241, %cst_98 [1] : vector<8x32xf32> to vector<8xf32>
    %243 = vector.shape_cast %242 : vector<8xf32> to vector<8x1xf32>
    %cst_99 = arith.constant 3.200000e+01 : f32
    %244 = vector.broadcast %cst_99 : f32 to vector<8x1xf32>
    %245 = arith.divf %243, %244 : vector<8x1xf32>
    %246 = vector.broadcast %238 : vector<8x1xf32> to vector<8x32xf32>
    %247 = arith.subf %232, %246 : vector<8x32xf32>
    %cst_100 = arith.constant 9.99999974E-6 : f32
    %248 = vector.broadcast %cst_100 : f32 to vector<8x1xf32>
    %249 = arith.addf %245, %248 : vector<8x1xf32>
    %250 = math.rsqrt %249 : vector<8x1xf32>
    %251 = vector.broadcast %250 : vector<8x1xf32> to vector<8x32xf32>
    %252 = arith.mulf %247, %251 : vector<8x32xf32>
    %253 = vector.broadcast %233 : vector<1x32xf32> to vector<8x32xf32>
    %254 = arith.mulf %252, %253 : vector<8x32xf32>
    %255 = vector.broadcast %234 : vector<1x32xf32> to vector<8x32xf32>
    %256 = arith.addf %254, %255 : vector<8x32xf32>
    %cst_101 = arith.constant dense<0.000000e+00> : vector<8x64xf32>
    %257 = tpu.matmul %256, %18, %cst_101 {dimension_numbers = #tpu.dot_dimension_numbers<[1], [0], [0], [1], [0, 0, 1, 1], [], []>} : vector<8x32xf32>, vector<32x64xf32>, vector<8x64xf32> -> vector<8x64xf32>
    %258 = vector.broadcast %19 : vector<1x64xf32> to vector<8x64xf32>
    %259 = arith.addf %257, %258 : vector<8x64xf32>
    %cst_102 = arith.constant 0.000000e+00 : f32
    %260 = vector.broadcast %cst_102 : f32 to vector<8x64xf32>
    %261 = arith.maximumf %259, %260 : vector<8x64xf32>
    %cst_103 = arith.constant dense<0.000000e+00> : vector<8x32xf32>
    %262 = tpu.matmul %261, %20, %cst_103 {dimension_numbers = #tpu.dot_dimension_numbers<[1], [0], [0], [1], [0, 0, 1, 1], [], []>} : vector<8x64xf32>, vector<64x32xf32>, vector<8x32xf32> -> vector<8x32xf32>
    %263 = vector.broadcast %21 : vector<1x32xf32> to vector<8x32xf32>
    %264 = arith.addf %262, %263 : vector<8x32xf32>
    %265 = arith.addf %256, %264 : vector<8x32xf32>
    %266 = vector.extract_strided_slice %22 {offsets = [4, 0], sizes = [1, 32], strides = [1, 1]} : vector<6x32xf32> to vector<1x32xf32>
    %267 = vector.extract_strided_slice %22 {offsets = [5, 0], sizes = [1, 32], strides = [1, 1]} : vector<6x32xf32> to vector<1x32xf32>
    %cst_104 = arith.constant dense<0.000000e+00> : vector<8xf32>
    %268 = vector.multi_reduction <add>, %265, %cst_104 [1] : vector<8x32xf32> to vector<8xf32>
    %269 = vector.shape_cast %268 : vector<8xf32> to vector<8x1xf32>
    %cst_105 = arith.constant 3.200000e+01 : f32
    %270 = vector.broadcast %cst_105 : f32 to vector<8x1xf32>
    %271 = arith.divf %269, %270 : vector<8x1xf32>
    %272 = vector.broadcast %271 : vector<8x1xf32> to vector<8x32xf32>
    %273 = arith.subf %265, %272 : vector<8x32xf32>
    %274 = arith.mulf %273, %273 : vector<8x32xf32>
    %cst_106 = arith.constant dense<0.000000e+00> : vector<8xf32>
    %275 = vector.multi_reduction <add>, %274, %cst_106 [1] : vector<8x32xf32> to vector<8xf32>
    %276 = vector.shape_cast %275 : vector<8xf32> to vector<8x1xf32>
    %cst_107 = arith.constant 3.200000e+01 : f32
    %277 = vector.broadcast %cst_107 : f32 to vector<8x1xf32>
    %278 = arith.divf %276, %277 : vector<8x1xf32>
    %279 = vector.broadcast %271 : vector<8x1xf32> to vector<8x32xf32>
    %280 = arith.subf %265, %279 : vector<8x32xf32>
    %cst_108 = arith.constant 9.99999974E-6 : f32
    %281 = vector.broadcast %cst_108 : f32 to vector<8x1xf32>
    %282 = arith.addf %278, %281 : vector<8x1xf32>
    %283 = math.rsqrt %282 : vector<8x1xf32>
    %284 = vector.broadcast %283 : vector<8x1xf32> to vector<8x32xf32>
    %285 = arith.mulf %280, %284 : vector<8x32xf32>
    %286 = vector.broadcast %266 : vector<1x32xf32> to vector<8x32xf32>
    %287 = arith.mulf %285, %286 : vector<8x32xf32>
    %288 = vector.broadcast %267 : vector<1x32xf32> to vector<8x32xf32>
    %289 = arith.addf %287, %288 : vector<8x32xf32>
    %cst_109 = arith.constant dense<0.000000e+00> : vector<8x96xf32>
    %290 = tpu.matmul %289, %8, %cst_109 {dimension_numbers = #tpu.dot_dimension_numbers<[1], [0], [0], [1], [0, 0, 1, 1], [], []>} : vector<8x32xf32>, vector<32x96xf32>, vector<8x96xf32> -> vector<8x96xf32>
    %291 = vector.broadcast %9 : vector<1x96xf32> to vector<8x96xf32>
    %292 = arith.addf %290, %291 : vector<8x96xf32>
    %293 = vector.extract_strided_slice %292 {offsets = [0, 0], sizes = [8, 32], strides = [1, 1]} : vector<8x96xf32> to vector<8x32xf32>
    %294 = vector.extract_strided_slice %292 {offsets = [0, 32], sizes = [8, 32], strides = [1, 1]} : vector<8x96xf32> to vector<8x32xf32>
    %295 = vector.extract_strided_slice %292 {offsets = [0, 64], sizes = [8, 32], strides = [1, 1]} : vector<8x96xf32> to vector<8x32xf32>
    %296 = vector.extract_strided_slice %293 {offsets = [0, 0], sizes = [8, 8], strides = [1, 1]} : vector<8x32xf32> to vector<8x8xf32>
    %297 = vector.extract_strided_slice %294 {offsets = [0, 0], sizes = [8, 8], strides = [1, 1]} : vector<8x32xf32> to vector<8x8xf32>
    %298 = tpu.transpose %297, [1, 0] : vector<8x8xf32> -> vector<8x8xf32>
    %cst_110 = arith.constant dense<0.000000e+00> : vector<8x8xf32>
    %299 = tpu.matmul %296, %298, %cst_110 {dimension_numbers = #tpu.dot_dimension_numbers<[1], [0], [0], [1], [0, 0, 1, 1], [], []>} : vector<8x8xf32>, vector<8x8xf32>, vector<8x8xf32> -> vector<8x8xf32>
    %cst_111 = arith.constant 0.353553385 : f32
    %300 = vector.broadcast %cst_111 : f32 to vector<8x8xf32>
    %301 = arith.mulf %299, %300 : vector<8x8xf32>
    %302 = arith.addf %301, %5 : vector<8x8xf32>
    %cst_112 = arith.constant dense<0xFF800000> : vector<8xf32>
    %303 = vector.multi_reduction <maximumf>, %302, %cst_112 [1] : vector<8x8xf32> to vector<8xf32>
    %304 = vector.shape_cast %303 : vector<8xf32> to vector<8x1xf32>
    %305 = vector.broadcast %304 : vector<8x1xf32> to vector<8x8xf32>
    %306 = arith.subf %302, %305 : vector<8x8xf32>
    %307 = math.exp %306 : vector<8x8xf32>
    %cst_113 = arith.constant dense<0.000000e+00> : vector<8xf32>
    %308 = vector.multi_reduction <add>, %307, %cst_113 [1] : vector<8x8xf32> to vector<8xf32>
    %309 = vector.shape_cast %308 : vector<8xf32> to vector<8x1xf32>
    %310 = vector.broadcast %309 : vector<8x1xf32> to vector<8x8xf32>
    %311 = arith.divf %307, %310 : vector<8x8xf32>
    %312 = vector.extract_strided_slice %295 {offsets = [0, 0], sizes = [8, 8], strides = [1, 1]} : vector<8x32xf32> to vector<8x8xf32>
    %cst_114 = arith.constant dense<0.000000e+00> : vector<8x8xf32>
    %313 = tpu.matmul %311, %312, %cst_114 {dimension_numbers = #tpu.dot_dimension_numbers<[1], [0], [0], [1], [0, 0, 1, 1], [], []>} : vector<8x8xf32>, vector<8x8xf32>, vector<8x8xf32> -> vector<8x8xf32>
    %314 = vector.extract_strided_slice %10 {offsets = [0, 0], sizes = [8, 32], strides = [1, 1]} : vector<32x32xf32> to vector<8x32xf32>
    %cst_115 = arith.constant dense<0.000000e+00> : vector<8x32xf32>
    %315 = tpu.matmul %313, %314, %cst_115 {dimension_numbers = #tpu.dot_dimension_numbers<[1], [0], [0], [1], [0, 0, 1, 1], [], []>} : vector<8x8xf32>, vector<8x32xf32>, vector<8x32xf32> -> vector<8x32xf32>
    %316 = vector.extract_strided_slice %293 {offsets = [0, 8], sizes = [8, 8], strides = [1, 1]} : vector<8x32xf32> to vector<8x8xf32>
    %317 = vector.extract_strided_slice %294 {offsets = [0, 8], sizes = [8, 8], strides = [1, 1]} : vector<8x32xf32> to vector<8x8xf32>
    %318 = tpu.transpose %317, [1, 0] : vector<8x8xf32> -> vector<8x8xf32>
    %cst_116 = arith.constant dense<0.000000e+00> : vector<8x8xf32>
    %319 = tpu.matmul %316, %318, %cst_116 {dimension_numbers = #tpu.dot_dimension_numbers<[1], [0], [0], [1], [0, 0, 1, 1], [], []>} : vector<8x8xf32>, vector<8x8xf32>, vector<8x8xf32> -> vector<8x8xf32>
    %cst_117 = arith.constant 0.353553385 : f32
    %320 = vector.broadcast %cst_117 : f32 to vector<8x8xf32>
    %321 = arith.mulf %319, %320 : vector<8x8xf32>
    %322 = arith.addf %321, %5 : vector<8x8xf32>
    %cst_118 = arith.constant dense<0xFF800000> : vector<8xf32>
    %323 = vector.multi_reduction <maximumf>, %322, %cst_118 [1] : vector<8x8xf32> to vector<8xf32>
    %324 = vector.shape_cast %323 : vector<8xf32> to vector<8x1xf32>
    %325 = vector.broadcast %324 : vector<8x1xf32> to vector<8x8xf32>
    %326 = arith.subf %322, %325 : vector<8x8xf32>
    %327 = math.exp %326 : vector<8x8xf32>
    %cst_119 = arith.constant dense<0.000000e+00> : vector<8xf32>
    %328 = vector.multi_reduction <add>, %327, %cst_119 [1] : vector<8x8xf32> to vector<8xf32>
    %329 = vector.shape_cast %328 : vector<8xf32> to vector<8x1xf32>
    %330 = vector.broadcast %329 : vector<8x1xf32> to vector<8x8xf32>
    %331 = arith.divf %327, %330 : vector<8x8xf32>
    %332 = vector.extract_strided_slice %295 {offsets = [0, 8], sizes = [8, 8], strides = [1, 1]} : vector<8x32xf32> to vector<8x8xf32>
    %cst_120 = arith.constant dense<0.000000e+00> : vector<8x8xf32>
    %333 = tpu.matmul %331, %332, %cst_120 {dimension_numbers = #tpu.dot_dimension_numbers<[1], [0], [0], [1], [0, 0, 1, 1], [], []>} : vector<8x8xf32>, vector<8x8xf32>, vector<8x8xf32> -> vector<8x8xf32>
    %334 = vector.extract_strided_slice %10 {offsets = [8, 0], sizes = [8, 32], strides = [1, 1]} : vector<32x32xf32> to vector<8x32xf32>
    %cst_121 = arith.constant dense<0.000000e+00> : vector<8x32xf32>
    %335 = tpu.matmul %333, %334, %cst_121 {dimension_numbers = #tpu.dot_dimension_numbers<[1], [0], [0], [1], [0, 0, 1, 1], [], []>} : vector<8x8xf32>, vector<8x32xf32>, vector<8x32xf32> -> vector<8x32xf32>
    %336 = arith.addf %315, %335 : vector<8x32xf32>
    %337 = vector.extract_strided_slice %293 {offsets = [0, 16], sizes = [8, 8], strides = [1, 1]} : vector<8x32xf32> to vector<8x8xf32>
    %338 = vector.extract_strided_slice %294 {offsets = [0, 16], sizes = [8, 8], strides = [1, 1]} : vector<8x32xf32> to vector<8x8xf32>
    %339 = tpu.transpose %338, [1, 0] : vector<8x8xf32> -> vector<8x8xf32>
    %cst_122 = arith.constant dense<0.000000e+00> : vector<8x8xf32>
    %340 = tpu.matmul %337, %339, %cst_122 {dimension_numbers = #tpu.dot_dimension_numbers<[1], [0], [0], [1], [0, 0, 1, 1], [], []>} : vector<8x8xf32>, vector<8x8xf32>, vector<8x8xf32> -> vector<8x8xf32>
    %cst_123 = arith.constant 0.353553385 : f32
    %341 = vector.broadcast %cst_123 : f32 to vector<8x8xf32>
    %342 = arith.mulf %340, %341 : vector<8x8xf32>
    %343 = arith.addf %342, %5 : vector<8x8xf32>
    %cst_124 = arith.constant dense<0xFF800000> : vector<8xf32>
    %344 = vector.multi_reduction <maximumf>, %343, %cst_124 [1] : vector<8x8xf32> to vector<8xf32>
    %345 = vector.shape_cast %344 : vector<8xf32> to vector<8x1xf32>
    %346 = vector.broadcast %345 : vector<8x1xf32> to vector<8x8xf32>
    %347 = arith.subf %343, %346 : vector<8x8xf32>
    %348 = math.exp %347 : vector<8x8xf32>
    %cst_125 = arith.constant dense<0.000000e+00> : vector<8xf32>
    %349 = vector.multi_reduction <add>, %348, %cst_125 [1] : vector<8x8xf32> to vector<8xf32>
    %350 = vector.shape_cast %349 : vector<8xf32> to vector<8x1xf32>
    %351 = vector.broadcast %350 : vector<8x1xf32> to vector<8x8xf32>
    %352 = arith.divf %348, %351 : vector<8x8xf32>
    %353 = vector.extract_strided_slice %295 {offsets = [0, 16], sizes = [8, 8], strides = [1, 1]} : vector<8x32xf32> to vector<8x8xf32>
    %cst_126 = arith.constant dense<0.000000e+00> : vector<8x8xf32>
    %354 = tpu.matmul %352, %353, %cst_126 {dimension_numbers = #tpu.dot_dimension_numbers<[1], [0], [0], [1], [0, 0, 1, 1], [], []>} : vector<8x8xf32>, vector<8x8xf32>, vector<8x8xf32> -> vector<8x8xf32>
    %355 = vector.extract_strided_slice %10 {offsets = [16, 0], sizes = [8, 32], strides = [1, 1]} : vector<32x32xf32> to vector<8x32xf32>
    %cst_127 = arith.constant dense<0.000000e+00> : vector<8x32xf32>
    %356 = tpu.matmul %354, %355, %cst_127 {dimension_numbers = #tpu.dot_dimension_numbers<[1], [0], [0], [1], [0, 0, 1, 1], [], []>} : vector<8x8xf32>, vector<8x32xf32>, vector<8x32xf32> -> vector<8x32xf32>
    %357 = arith.addf %336, %356 : vector<8x32xf32>
    %358 = vector.extract_strided_slice %293 {offsets = [0, 24], sizes = [8, 8], strides = [1, 1]} : vector<8x32xf32> to vector<8x8xf32>
    %359 = vector.extract_strided_slice %294 {offsets = [0, 24], sizes = [8, 8], strides = [1, 1]} : vector<8x32xf32> to vector<8x8xf32>
    %360 = tpu.transpose %359, [1, 0] : vector<8x8xf32> -> vector<8x8xf32>
    %cst_128 = arith.constant dense<0.000000e+00> : vector<8x8xf32>
    %361 = tpu.matmul %358, %360, %cst_128 {dimension_numbers = #tpu.dot_dimension_numbers<[1], [0], [0], [1], [0, 0, 1, 1], [], []>} : vector<8x8xf32>, vector<8x8xf32>, vector<8x8xf32> -> vector<8x8xf32>
    %cst_129 = arith.constant 0.353553385 : f32
    %362 = vector.broadcast %cst_129 : f32 to vector<8x8xf32>
    %363 = arith.mulf %361, %362 : vector<8x8xf32>
    %364 = arith.addf %363, %5 : vector<8x8xf32>
    %cst_130 = arith.constant dense<0xFF800000> : vector<8xf32>
    %365 = vector.multi_reduction <maximumf>, %364, %cst_130 [1] : vector<8x8xf32> to vector<8xf32>
    %366 = vector.shape_cast %365 : vector<8xf32> to vector<8x1xf32>
    %367 = vector.broadcast %366 : vector<8x1xf32> to vector<8x8xf32>
    %368 = arith.subf %364, %367 : vector<8x8xf32>
    %369 = math.exp %368 : vector<8x8xf32>
    %cst_131 = arith.constant dense<0.000000e+00> : vector<8xf32>
    %370 = vector.multi_reduction <add>, %369, %cst_131 [1] : vector<8x8xf32> to vector<8xf32>
    %371 = vector.shape_cast %370 : vector<8xf32> to vector<8x1xf32>
    %372 = vector.broadcast %371 : vector<8x1xf32> to vector<8x8xf32>
    %373 = arith.divf %369, %372 : vector<8x8xf32>
    %374 = vector.extract_strided_slice %295 {offsets = [0, 24], sizes = [8, 8], strides = [1, 1]} : vector<8x32xf32> to vector<8x8xf32>
    %cst_132 = arith.constant dense<0.000000e+00> : vector<8x8xf32>
    %375 = tpu.matmul %373, %374, %cst_132 {dimension_numbers = #tpu.dot_dimension_numbers<[1], [0], [0], [1], [0, 0, 1, 1], [], []>} : vector<8x8xf32>, vector<8x8xf32>, vector<8x8xf32> -> vector<8x8xf32>
    %376 = vector.extract_strided_slice %10 {offsets = [24, 0], sizes = [8, 32], strides = [1, 1]} : vector<32x32xf32> to vector<8x32xf32>
    %cst_133 = arith.constant dense<0.000000e+00> : vector<8x32xf32>
    %377 = tpu.matmul %375, %376, %cst_133 {dimension_numbers = #tpu.dot_dimension_numbers<[1], [0], [0], [1], [0, 0, 1, 1], [], []>} : vector<8x8xf32>, vector<8x32xf32>, vector<8x32xf32> -> vector<8x32xf32>
    %378 = arith.addf %357, %377 : vector<8x32xf32>
    %379 = vector.broadcast %11 : vector<1x32xf32> to vector<8x32xf32>
    %380 = arith.addf %378, %379 : vector<8x32xf32>
    %381 = arith.addf %289, %380 : vector<8x32xf32>
    %382 = vector.extract_strided_slice %22 {offsets = [0, 0], sizes = [1, 32], strides = [1, 1]} : vector<6x32xf32> to vector<1x32xf32>
    %383 = vector.extract_strided_slice %22 {offsets = [1, 0], sizes = [1, 32], strides = [1, 1]} : vector<6x32xf32> to vector<1x32xf32>
    %cst_134 = arith.constant dense<0.000000e+00> : vector<8xf32>
    %384 = vector.multi_reduction <add>, %381, %cst_134 [1] : vector<8x32xf32> to vector<8xf32>
    %385 = vector.shape_cast %384 : vector<8xf32> to vector<8x1xf32>
    %cst_135 = arith.constant 3.200000e+01 : f32
    %386 = vector.broadcast %cst_135 : f32 to vector<8x1xf32>
    %387 = arith.divf %385, %386 : vector<8x1xf32>
    %388 = vector.broadcast %387 : vector<8x1xf32> to vector<8x32xf32>
    %389 = arith.subf %381, %388 : vector<8x32xf32>
    %390 = arith.mulf %389, %389 : vector<8x32xf32>
    %cst_136 = arith.constant dense<0.000000e+00> : vector<8xf32>
    %391 = vector.multi_reduction <add>, %390, %cst_136 [1] : vector<8x32xf32> to vector<8xf32>
    %392 = vector.shape_cast %391 : vector<8xf32> to vector<8x1xf32>
    %cst_137 = arith.constant 3.200000e+01 : f32
    %393 = vector.broadcast %cst_137 : f32 to vector<8x1xf32>
    %394 = arith.divf %392, %393 : vector<8x1xf32>
    %395 = vector.broadcast %387 : vector<8x1xf32> to vector<8x32xf32>
    %396 = arith.subf %381, %395 : vector<8x32xf32>
    %cst_138 = arith.constant 9.99999974E-6 : f32
    %397 = vector.broadcast %cst_138 : f32 to vector<8x1xf32>
    %398 = arith.addf %394, %397 : vector<8x1xf32>
    %399 = math.rsqrt %398 : vector<8x1xf32>
    %400 = vector.broadcast %399 : vector<8x1xf32> to vector<8x32xf32>
    %401 = arith.mulf %396, %400 : vector<8x32xf32>
    %402 = vector.broadcast %382 : vector<1x32xf32> to vector<8x32xf32>
    %403 = arith.mulf %401, %402 : vector<8x32xf32>
    %404 = vector.broadcast %383 : vector<1x32xf32> to vector<8x32xf32>
    %405 = arith.addf %403, %404 : vector<8x32xf32>
    %cst_139 = arith.constant dense<0.000000e+00> : vector<8x32xf32>
    %406 = tpu.matmul %405, %12, %cst_139 {dimension_numbers = #tpu.dot_dimension_numbers<[1], [0], [0], [1], [0, 0, 1, 1], [], []>} : vector<8x32xf32>, vector<32x32xf32>, vector<8x32xf32> -> vector<8x32xf32>
    %407 = vector.broadcast %13 : vector<1x32xf32> to vector<8x32xf32>
    %408 = arith.addf %406, %407 : vector<8x32xf32>
    %409 = vector.extract_strided_slice %408 {offsets = [0, 0], sizes = [8, 8], strides = [1, 1]} : vector<8x32xf32> to vector<8x8xf32>
    %410 = vector.extract_strided_slice %26 {offsets = [0, 0], sizes = [8, 8], strides = [1, 1]} : vector<8x32xf32> to vector<8x8xf32>
    %411 = tpu.transpose %410, [1, 0] : vector<8x8xf32> -> vector<8x8xf32>
    %cst_140 = arith.constant dense<0.000000e+00> : vector<8x8xf32>
    %412 = tpu.matmul %409, %411, %cst_140 {dimension_numbers = #tpu.dot_dimension_numbers<[1], [0], [0], [1], [0, 0, 1, 1], [], []>} : vector<8x8xf32>, vector<8x8xf32>, vector<8x8xf32> -> vector<8x8xf32>
    %cst_141 = arith.constant 0.353553385 : f32
    %413 = vector.broadcast %cst_141 : f32 to vector<8x8xf32>
    %414 = arith.mulf %412, %413 : vector<8x8xf32>
    %415 = arith.addf %414, %7 : vector<8x8xf32>
    %cst_142 = arith.constant dense<0xFF800000> : vector<8xf32>
    %416 = vector.multi_reduction <maximumf>, %415, %cst_142 [1] : vector<8x8xf32> to vector<8xf32>
    %417 = vector.shape_cast %416 : vector<8xf32> to vector<8x1xf32>
    %418 = vector.broadcast %417 : vector<8x1xf32> to vector<8x8xf32>
    %419 = arith.subf %415, %418 : vector<8x8xf32>
    %420 = math.exp %419 : vector<8x8xf32>
    %cst_143 = arith.constant dense<0.000000e+00> : vector<8xf32>
    %421 = vector.multi_reduction <add>, %420, %cst_143 [1] : vector<8x8xf32> to vector<8xf32>
    %422 = vector.shape_cast %421 : vector<8xf32> to vector<8x1xf32>
    %423 = vector.broadcast %422 : vector<8x1xf32> to vector<8x8xf32>
    %424 = arith.divf %420, %423 : vector<8x8xf32>
    %c0_144 = arith.constant 0 : index
    %c0_145 = arith.constant 0 : index
    %c0_146 = arith.constant 0 : index
    %c0_147 = arith.constant 0 : index
    %425 = vector.load %arg21[%c0_144, %c0_145, %c0_146, %c0_147] : memref<1x4x8x8xf32, #tpu.memory_space<vmem>>, vector<1x1x8x8xf32>
    %426 = vector.shape_cast %425 : vector<1x1x8x8xf32> to vector<8x8xf32>
    %427 = vector.shape_cast %424 : vector<8x8xf32> to vector<1x1x8x8xf32>
    tpu.vector_store %arg21[%c0_144, %c0_145, %c0_146, %c0_147], %427 {strides = array<i32>} : memref<1x4x8x8xf32, #tpu.memory_space<vmem>>, vector<1x1x8x8xf32>,
    %428 = vector.extract_strided_slice %27 {offsets = [0, 0], sizes = [8, 8], strides = [1, 1]} : vector<8x32xf32> to vector<8x8xf32>
    %cst_148 = arith.constant dense<0.000000e+00> : vector<8x8xf32>
    %429 = tpu.matmul %424, %428, %cst_148 {dimension_numbers = #tpu.dot_dimension_numbers<[1], [0], [0], [1], [0, 0, 1, 1], [], []>} : vector<8x8xf32>, vector<8x8xf32>, vector<8x8xf32> -> vector<8x8xf32>
    %430 = vector.extract_strided_slice %16 {offsets = [0, 0], sizes = [8, 32], strides = [1, 1]} : vector<32x32xf32> to vector<8x32xf32>
    %cst_149 = arith.constant dense<0.000000e+00> : vector<8x32xf32>
    %431 = tpu.matmul %429, %430, %cst_149 {dimension_numbers = #tpu.dot_dimension_numbers<[1], [0], [0], [1], [0, 0, 1, 1], [], []>} : vector<8x8xf32>, vector<8x32xf32>, vector<8x32xf32> -> vector<8x32xf32>
    %432 = vector.extract_strided_slice %408 {offsets = [0, 8], sizes = [8, 8], strides = [1, 1]} : vector<8x32xf32> to vector<8x8xf32>
    %433 = vector.extract_strided_slice %26 {offsets = [0, 8], sizes = [8, 8], strides = [1, 1]} : vector<8x32xf32> to vector<8x8xf32>
    %434 = tpu.transpose %433, [1, 0] : vector<8x8xf32> -> vector<8x8xf32>
    %cst_150 = arith.constant dense<0.000000e+00> : vector<8x8xf32>
    %435 = tpu.matmul %432, %434, %cst_150 {dimension_numbers = #tpu.dot_dimension_numbers<[1], [0], [0], [1], [0, 0, 1, 1], [], []>} : vector<8x8xf32>, vector<8x8xf32>, vector<8x8xf32> -> vector<8x8xf32>
    %cst_151 = arith.constant 0.353553385 : f32
    %436 = vector.broadcast %cst_151 : f32 to vector<8x8xf32>
    %437 = arith.mulf %435, %436 : vector<8x8xf32>
    %438 = arith.addf %437, %7 : vector<8x8xf32>
    %cst_152 = arith.constant dense<0xFF800000> : vector<8xf32>
    %439 = vector.multi_reduction <maximumf>, %438, %cst_152 [1] : vector<8x8xf32> to vector<8xf32>
    %440 = vector.shape_cast %439 : vector<8xf32> to vector<8x1xf32>
    %441 = vector.broadcast %440 : vector<8x1xf32> to vector<8x8xf32>
    %442 = arith.subf %438, %441 : vector<8x8xf32>
    %443 = math.exp %442 : vector<8x8xf32>
    %cst_153 = arith.constant dense<0.000000e+00> : vector<8xf32>
    %444 = vector.multi_reduction <add>, %443, %cst_153 [1] : vector<8x8xf32> to vector<8xf32>
    %445 = vector.shape_cast %444 : vector<8xf32> to vector<8x1xf32>
    %446 = vector.broadcast %445 : vector<8x1xf32> to vector<8x8xf32>
    %447 = arith.divf %443, %446 : vector<8x8xf32>
    %c0_154 = arith.constant 0 : index
    %c1 = arith.constant 1 : index
    %c0_155 = arith.constant 0 : index
    %c0_156 = arith.constant 0 : index
    %448 = vector.load %arg21[%c0_154, %c1, %c0_155, %c0_156] : memref<1x4x8x8xf32, #tpu.memory_space<vmem>>, vector<1x1x8x8xf32>
    %449 = vector.shape_cast %448 : vector<1x1x8x8xf32> to vector<8x8xf32>
    %450 = vector.shape_cast %447 : vector<8x8xf32> to vector<1x1x8x8xf32>
    tpu.vector_store %arg21[%c0_154, %c1, %c0_155, %c0_156], %450 {strides = array<i32>} : memref<1x4x8x8xf32, #tpu.memory_space<vmem>>, vector<1x1x8x8xf32>,
    %451 = vector.extract_strided_slice %27 {offsets = [0, 8], sizes = [8, 8], strides = [1, 1]} : vector<8x32xf32> to vector<8x8xf32>
    %cst_157 = arith.constant dense<0.000000e+00> : vector<8x8xf32>
    %452 = tpu.matmul %447, %451, %cst_157 {dimension_numbers = #tpu.dot_dimension_numbers<[1], [0], [0], [1], [0, 0, 1, 1], [], []>} : vector<8x8xf32>, vector<8x8xf32>, vector<8x8xf32> -> vector<8x8xf32>
    %453 = vector.extract_strided_slice %16 {offsets = [8, 0], sizes = [8, 32], strides = [1, 1]} : vector<32x32xf32> to vector<8x32xf32>
    %cst_158 = arith.constant dense<0.000000e+00> : vector<8x32xf32>
    %454 = tpu.matmul %452, %453, %cst_158 {dimension_numbers = #tpu.dot_dimension_numbers<[1], [0], [0], [1], [0, 0, 1, 1], [], []>} : vector<8x8xf32>, vector<8x32xf32>, vector<8x32xf32> -> vector<8x32xf32>
    %455 = arith.addf %431, %454 : vector<8x32xf32>
    %456 = vector.extract_strided_slice %408 {offsets = [0, 16], sizes = [8, 8], strides = [1, 1]} : vector<8x32xf32> to vector<8x8xf32>
    %457 = vector.extract_strided_slice %26 {offsets = [0, 16], sizes = [8, 8], strides = [1, 1]} : vector<8x32xf32> to vector<8x8xf32>
    %458 = tpu.transpose %457, [1, 0] : vector<8x8xf32> -> vector<8x8xf32>
    %cst_159 = arith.constant dense<0.000000e+00> : vector<8x8xf32>
    %459 = tpu.matmul %456, %458, %cst_159 {dimension_numbers = #tpu.dot_dimension_numbers<[1], [0], [0], [1], [0, 0, 1, 1], [], []>} : vector<8x8xf32>, vector<8x8xf32>, vector<8x8xf32> -> vector<8x8xf32>
    %cst_160 = arith.constant 0.353553385 : f32
    %460 = vector.broadcast %cst_160 : f32 to vector<8x8xf32>
    %461 = arith.mulf %459, %460 : vector<8x8xf32>
    %462 = arith.addf %461, %7 : vector<8x8xf32>
    %cst_161 = arith.constant dense<0xFF800000> : vector<8xf32>
    %463 = vector.multi_reduction <maximumf>, %462, %cst_161 [1] : vector<8x8xf32> to vector<8xf32>
    %464 = vector.shape_cast %463 : vector<8xf32> to vector<8x1xf32>
    %465 = vector.broadcast %464 : vector<8x1xf32> to vector<8x8xf32>
    %466 = arith.subf %462, %465 : vector<8x8xf32>
    %467 = math.exp %466 : vector<8x8xf32>
    %cst_162 = arith.constant dense<0.000000e+00> : vector<8xf32>
    %468 = vector.multi_reduction <add>, %467, %cst_162 [1] : vector<8x8xf32> to vector<8xf32>
    %469 = vector.shape_cast %468 : vector<8xf32> to vector<8x1xf32>
    %470 = vector.broadcast %469 : vector<8x1xf32> to vector<8x8xf32>
    %471 = arith.divf %467, %470 : vector<8x8xf32>
    %c0_163 = arith.constant 0 : index
    %c2 = arith.constant 2 : index
    %c0_164 = arith.constant 0 : index
    %c0_165 = arith.constant 0 : index
    %472 = vector.load %arg21[%c0_163, %c2, %c0_164, %c0_165] : memref<1x4x8x8xf32, #tpu.memory_space<vmem>>, vector<1x1x8x8xf32>
    %473 = vector.shape_cast %472 : vector<1x1x8x8xf32> to vector<8x8xf32>
    %474 = vector.shape_cast %471 : vector<8x8xf32> to vector<1x1x8x8xf32>
    tpu.vector_store %arg21[%c0_163, %c2, %c0_164, %c0_165], %474 {strides = array<i32>} : memref<1x4x8x8xf32, #tpu.memory_space<vmem>>, vector<1x1x8x8xf32>,
    %475 = vector.extract_strided_slice %27 {offsets = [0, 16], sizes = [8, 8], strides = [1, 1]} : vector<8x32xf32> to vector<8x8xf32>
    %cst_166 = arith.constant dense<0.000000e+00> : vector<8x8xf32>
    %476 = tpu.matmul %471, %475, %cst_166 {dimension_numbers = #tpu.dot_dimension_numbers<[1], [0], [0], [1], [0, 0, 1, 1], [], []>} : vector<8x8xf32>, vector<8x8xf32>, vector<8x8xf32> -> vector<8x8xf32>
    %477 = vector.extract_strided_slice %16 {offsets = [16, 0], sizes = [8, 32], strides = [1, 1]} : vector<32x32xf32> to vector<8x32xf32>
    %cst_167 = arith.constant dense<0.000000e+00> : vector<8x32xf32>
    %478 = tpu.matmul %476, %477, %cst_167 {dimension_numbers = #tpu.dot_dimension_numbers<[1], [0], [0], [1], [0, 0, 1, 1], [], []>} : vector<8x8xf32>, vector<8x32xf32>, vector<8x32xf32> -> vector<8x32xf32>
    %479 = arith.addf %455, %478 : vector<8x32xf32>
    %480 = vector.extract_strided_slice %408 {offsets = [0, 24], sizes = [8, 8], strides = [1, 1]} : vector<8x32xf32> to vector<8x8xf32>
    %481 = vector.extract_strided_slice %26 {offsets = [0, 24], sizes = [8, 8], strides = [1, 1]} : vector<8x32xf32> to vector<8x8xf32>
    %482 = tpu.transpose %481, [1, 0] : vector<8x8xf32> -> vector<8x8xf32>
    %cst_168 = arith.constant dense<0.000000e+00> : vector<8x8xf32>
    %483 = tpu.matmul %480, %482, %cst_168 {dimension_numbers = #tpu.dot_dimension_numbers<[1], [0], [0], [1], [0, 0, 1, 1], [], []>} : vector<8x8xf32>, vector<8x8xf32>, vector<8x8xf32> -> vector<8x8xf32>
    %cst_169 = arith.constant 0.353553385 : f32
    %484 = vector.broadcast %cst_169 : f32 to vector<8x8xf32>
    %485 = arith.mulf %483, %484 : vector<8x8xf32>
    %486 = arith.addf %485, %7 : vector<8x8xf32>
    %cst_170 = arith.constant dense<0xFF800000> : vector<8xf32>
    %487 = vector.multi_reduction <maximumf>, %486, %cst_170 [1] : vector<8x8xf32> to vector<8xf32>
    %488 = vector.shape_cast %487 : vector<8xf32> to vector<8x1xf32>
    %489 = vector.broadcast %488 : vector<8x1xf32> to vector<8x8xf32>
    %490 = arith.subf %486, %489 : vector<8x8xf32>
    %491 = math.exp %490 : vector<8x8xf32>
    %cst_171 = arith.constant dense<0.000000e+00> : vector<8xf32>
    %492 = vector.multi_reduction <add>, %491, %cst_171 [1] : vector<8x8xf32> to vector<8xf32>
    %493 = vector.shape_cast %492 : vector<8xf32> to vector<8x1xf32>
    %494 = vector.broadcast %493 : vector<8x1xf32> to vector<8x8xf32>
    %495 = arith.divf %491, %494 : vector<8x8xf32>
    %c0_172 = arith.constant 0 : index
    %c3 = arith.constant 3 : index
    %c0_173 = arith.constant 0 : index
    %c0_174 = arith.constant 0 : index
    %496 = vector.load %arg21[%c0_172, %c3, %c0_173, %c0_174] : memref<1x4x8x8xf32, #tpu.memory_space<vmem>>, vector<1x1x8x8xf32>
    %497 = vector.shape_cast %496 : vector<1x1x8x8xf32> to vector<8x8xf32>
    %498 = vector.shape_cast %495 : vector<8x8xf32> to vector<1x1x8x8xf32>
    tpu.vector_store %arg21[%c0_172, %c3, %c0_173, %c0_174], %498 {strides = array<i32>} : memref<1x4x8x8xf32, #tpu.memory_space<vmem>>, vector<1x1x8x8xf32>,
    %499 = vector.extract_strided_slice %27 {offsets = [0, 24], sizes = [8, 8], strides = [1, 1]} : vector<8x32xf32> to vector<8x8xf32>
    %cst_175 = arith.constant dense<0.000000e+00> : vector<8x8xf32>
    %500 = tpu.matmul %495, %499, %cst_175 {dimension_numbers = #tpu.dot_dimension_numbers<[1], [0], [0], [1], [0, 0, 1, 1], [], []>} : vector<8x8xf32>, vector<8x8xf32>, vector<8x8xf32> -> vector<8x8xf32>
    %501 = vector.extract_strided_slice %16 {offsets = [24, 0], sizes = [8, 32], strides = [1, 1]} : vector<32x32xf32> to vector<8x32xf32>
    %cst_176 = arith.constant dense<0.000000e+00> : vector<8x32xf32>
    %502 = tpu.matmul %500, %501, %cst_176 {dimension_numbers = #tpu.dot_dimension_numbers<[1], [0], [0], [1], [0, 0, 1, 1], [], []>} : vector<8x8xf32>, vector<8x32xf32>, vector<8x32xf32> -> vector<8x32xf32>
    %503 = arith.addf %479, %502 : vector<8x32xf32>
    %504 = vector.broadcast %17 : vector<1x32xf32> to vector<8x32xf32>
    %505 = arith.addf %503, %504 : vector<8x32xf32>
    %506 = arith.addf %405, %505 : vector<8x32xf32>
    %507 = vector.extract_strided_slice %22 {offsets = [2, 0], sizes = [1, 32], strides = [1, 1]} : vector<6x32xf32> to vector<1x32xf32>
    %508 = vector.extract_strided_slice %22 {offsets = [3, 0], sizes = [1, 32], strides = [1, 1]} : vector<6x32xf32> to vector<1x32xf32>
    %cst_177 = arith.constant dense<0.000000e+00> : vector<8xf32>
    %509 = vector.multi_reduction <add>, %506, %cst_177 [1] : vector<8x32xf32> to vector<8xf32>
    %510 = vector.shape_cast %509 : vector<8xf32> to vector<8x1xf32>
    %cst_178 = arith.constant 3.200000e+01 : f32
    %511 = vector.broadcast %cst_178 : f32 to vector<8x1xf32>
    %512 = arith.divf %510, %511 : vector<8x1xf32>
    %513 = vector.broadcast %512 : vector<8x1xf32> to vector<8x32xf32>
    %514 = arith.subf %506, %513 : vector<8x32xf32>
    %515 = arith.mulf %514, %514 : vector<8x32xf32>
    %cst_179 = arith.constant dense<0.000000e+00> : vector<8xf32>
    %516 = vector.multi_reduction <add>, %515, %cst_179 [1] : vector<8x32xf32> to vector<8xf32>
    %517 = vector.shape_cast %516 : vector<8xf32> to vector<8x1xf32>
    %cst_180 = arith.constant 3.200000e+01 : f32
    %518 = vector.broadcast %cst_180 : f32 to vector<8x1xf32>
    %519 = arith.divf %517, %518 : vector<8x1xf32>
    %520 = vector.broadcast %512 : vector<8x1xf32> to vector<8x32xf32>
    %521 = arith.subf %506, %520 : vector<8x32xf32>
    %cst_181 = arith.constant 9.99999974E-6 : f32
    %522 = vector.broadcast %cst_181 : f32 to vector<8x1xf32>
    %523 = arith.addf %519, %522 : vector<8x1xf32>
    %524 = math.rsqrt %523 : vector<8x1xf32>
    %525 = vector.broadcast %524 : vector<8x1xf32> to vector<8x32xf32>
    %526 = arith.mulf %521, %525 : vector<8x32xf32>
    %527 = vector.broadcast %507 : vector<1x32xf32> to vector<8x32xf32>
    %528 = arith.mulf %526, %527 : vector<8x32xf32>
    %529 = vector.broadcast %508 : vector<1x32xf32> to vector<8x32xf32>
    %530 = arith.addf %528, %529 : vector<8x32xf32>
    %cst_182 = arith.constant dense<0.000000e+00> : vector<8x64xf32>
    %531 = tpu.matmul %530, %18, %cst_182 {dimension_numbers = #tpu.dot_dimension_numbers<[1], [0], [0], [1], [0, 0, 1, 1], [], []>} : vector<8x32xf32>, vector<32x64xf32>, vector<8x64xf32> -> vector<8x64xf32>
    %532 = vector.broadcast %19 : vector<1x64xf32> to vector<8x64xf32>
    %533 = arith.addf %531, %532 : vector<8x64xf32>
    %cst_183 = arith.constant 0.000000e+00 : f32
    %534 = vector.broadcast %cst_183 : f32 to vector<8x64xf32>
    %535 = arith.maximumf %533, %534 : vector<8x64xf32>
    %cst_184 = arith.constant dense<0.000000e+00> : vector<8x32xf32>
    %536 = tpu.matmul %535, %20, %cst_184 {dimension_numbers = #tpu.dot_dimension_numbers<[1], [0], [0], [1], [0, 0, 1, 1], [], []>} : vector<8x64xf32>, vector<64x32xf32>, vector<8x32xf32> -> vector<8x32xf32>
    %537 = vector.broadcast %21 : vector<1x32xf32> to vector<8x32xf32>
    %538 = arith.addf %536, %537 : vector<8x32xf32>
    %539 = arith.addf %530, %538 : vector<8x32xf32>
    %540 = vector.extract_strided_slice %22 {offsets = [4, 0], sizes = [1, 32], strides = [1, 1]} : vector<6x32xf32> to vector<1x32xf32>
    %541 = vector.extract_strided_slice %22 {offsets = [5, 0], sizes = [1, 32], strides = [1, 1]} : vector<6x32xf32> to vector<1x32xf32>
    %cst_185 = arith.constant dense<0.000000e+00> : vector<8xf32>
    %542 = vector.multi_reduction <add>, %539, %cst_185 [1] : vector<8x32xf32> to vector<8xf32>
    %543 = vector.shape_cast %542 : vector<8xf32> to vector<8x1xf32>
    %cst_186 = arith.constant 3.200000e+01 : f32
    %544 = vector.broadcast %cst_186 : f32 to vector<8x1xf32>
    %545 = arith.divf %543, %544 : vector<8x1xf32>
    %546 = vector.broadcast %545 : vector<8x1xf32> to vector<8x32xf32>
    %547 = arith.subf %539, %546 : vector<8x32xf32>
    %548 = arith.mulf %547, %547 : vector<8x32xf32>
    %cst_187 = arith.constant dense<0.000000e+00> : vector<8xf32>
    %549 = vector.multi_reduction <add>, %548, %cst_187 [1] : vector<8x32xf32> to vector<8xf32>
    %550 = vector.shape_cast %549 : vector<8xf32> to vector<8x1xf32>
    %cst_188 = arith.constant 3.200000e+01 : f32
    %551 = vector.broadcast %cst_188 : f32 to vector<8x1xf32>
    %552 = arith.divf %550, %551 : vector<8x1xf32>
    %553 = vector.broadcast %545 : vector<8x1xf32> to vector<8x32xf32>
    %554 = arith.subf %539, %553 : vector<8x32xf32>
    %cst_189 = arith.constant 9.99999974E-6 : f32
    %555 = vector.broadcast %cst_189 : f32 to vector<8x1xf32>
    %556 = arith.addf %552, %555 : vector<8x1xf32>
    %557 = math.rsqrt %556 : vector<8x1xf32>
    %558 = vector.broadcast %557 : vector<8x1xf32> to vector<8x32xf32>
    %559 = arith.mulf %554, %558 : vector<8x32xf32>
    %560 = vector.broadcast %540 : vector<1x32xf32> to vector<8x32xf32>
    %561 = arith.mulf %559, %560 : vector<8x32xf32>
    %562 = vector.broadcast %541 : vector<1x32xf32> to vector<8x32xf32>
    %563 = arith.addf %561, %562 : vector<8x32xf32>
    %c0_190 = arith.constant 0 : index
    %c0_191 = arith.constant 0 : index
    %c0_192 = arith.constant 0 : index
    %564 = vector.load %arg20[%c0_190, %c0_191, %c0_192] : memref<1x8x32xf32, #tpu.memory_space<vmem>>, vector<1x8x32xf32>
    %565 = vector.shape_cast %564 : vector<1x8x32xf32> to vector<8x32xf32>
    %566 = vector.shape_cast %563 : vector<8x32xf32> to vector<1x8x32xf32>
    tpu.vector_store %arg20[%c0_190, %c0_191, %c0_192], %566 {strides = array<i32>} : memref<1x8x32xf32, #tpu.memory_space<vmem>>, vector<1x8x32xf32>,
    return
  }
  func.func @transform_0(%arg0: i32) -> (i32, i32, i32) {
    %c0_i32 = arith.constant 0 : i32
    %c0_i32_0 = arith.constant 0 : i32
    %c0_i32_1 = arith.constant 0 : i32
    return %arg0, %c0_i32, %c0_i32_0 : i32, i32, i32
  }
  func.func @transform_1(%arg0: i32) -> (i32, i32, i32) {
    %c0_i32 = arith.constant 0 : i32
    %c0_i32_0 = arith.constant 0 : i32
    %c0_i32_1 = arith.constant 0 : i32
    return %arg0, %c0_i32, %c0_i32_0 : i32, i32, i32
  }
  func.func @transform_2(%arg0: i32) -> (i32, i32, i32) {
    %c0_i32 = arith.constant 0 : i32
    %c0_i32_0 = arith.constant 0 : i32
    %c0_i32_1 = arith.constant 0 : i32
    return %arg0, %c0_i32, %c0_i32_0 : i32, i32, i32
  }
  func.func @transform_3(%arg0: i32) -> (i32, i32, i32) {
    %c0_i32 = arith.constant 0 : i32
    %c0_i32_0 = arith.constant 0 : i32
    %c0_i32_1 = arith.constant 0 : i32
    return %arg0, %c0_i32, %c0_i32_0 : i32, i32, i32
  }
  func.func @transform_4(%arg0: i32) -> (i32, i32) {
    %c0_i32 = arith.constant 0 : i32
    %c0_i32_0 = arith.constant 0 : i32
    %c0_i32_1 = arith.constant 0 : i32
    return %c0_i32, %c0_i32_0 : i32, i32
  }
  func.func @transform_5(%arg0: i32) -> (i32, i32) {
    %c0_i32 = arith.constant 0 : i32
    %c0_i32_0 = arith.constant 0 : i32
    %c0_i32_1 = arith.constant 0 : i32
    return %c0_i32, %c0_i32_0 : i32, i32
  }
  func.func @transform_6(%arg0: i32) -> (i32, i32) {
    %c0_i32 = arith.constant 0 : i32
    %c0_i32_0 = arith.constant 0 : i32
    %c0_i32_1 = arith.constant 0 : i32
    return %c0_i32, %c0_i32_0 : i32, i32
  }
  func.func @transform_7(%arg0: i32) -> (i32, i32) {
    %c0_i32 = arith.constant 0 : i32
    %c0_i32_0 = arith.constant 0 : i32
    %c0_i32_1 = arith.constant 0 : i32
    return %c0_i32, %c0_i32_0 : i32, i32
  }
  func.func @transform_8(%arg0: i32) -> (i32, i32) {
    %c0_i32 = arith.constant 0 : i32
    %c0_i32_0 = arith.constant 0 : i32
    %c0_i32_1 = arith.constant 0 : i32
    return %c0_i32, %c0_i32_0 : i32, i32
  }
  func.func @transform_9(%arg0: i32) -> (i32, i32) {
    %c0_i32 = arith.constant 0 : i32
    %c0_i32_0 = arith.constant 0 : i32
    %c0_i32_1 = arith.constant 0 : i32
    return %c0_i32, %c0_i32_0 : i32, i32
  }
  func.func @transform_10(%arg0: i32) -> (i32, i32) {
    %c0_i32 = arith.constant 0 : i32
    %c0_i32_0 = arith.constant 0 : i32
    %c0_i32_1 = arith.constant 0 : i32
    return %c0_i32, %c0_i32_0 : i32, i32
  }
  func.func @transform_11(%arg0: i32) -> (i32, i32) {
    %c0_i32 = arith.constant 0 : i32
    %c0_i32_0 = arith.constant 0 : i32
    %c0_i32_1 = arith.constant 0 : i32
    return %c0_i32, %c0_i32_0 : i32, i32
  }
  func.func @transform_12(%arg0: i32) -> (i32, i32) {
    %c0_i32 = arith.constant 0 : i32
    %c0_i32_0 = arith.constant 0 : i32
    %c0_i32_1 = arith.constant 0 : i32
    return %c0_i32, %c0_i32_0 : i32, i32
  }
  func.func @transform_13(%arg0: i32) -> (i32, i32) {
    %c0_i32 = arith.constant 0 : i32
    %c0_i32_0 = arith.constant 0 : i32
    %c0_i32_1 = arith.constant 0 : i32
    return %c0_i32, %c0_i32_0 : i32, i32
  }
  func.func @transform_14(%arg0: i32) -> (i32, i32) {
    %c0_i32 = arith.constant 0 : i32
    %c0_i32_0 = arith.constant 0 : i32
    %c0_i32_1 = arith.constant 0 : i32
    return %c0_i32, %c0_i32_0 : i32, i32
  }
  func.func @transform_15(%arg0: i32) -> (i32, i32) {
    %c0_i32 = arith.constant 0 : i32
    %c0_i32_0 = arith.constant 0 : i32
    %c0_i32_1 = arith.constant 0 : i32
    return %c0_i32, %c0_i32_0 : i32, i32
  }
  func.func @transform_16(%arg0: i32) -> (i32, i32) {
    %c0_i32 = arith.constant 0 : i32
    %c0_i32_0 = arith.constant 0 : i32
    %c0_i32_1 = arith.constant 0 : i32
    return %c0_i32, %c0_i32_0 : i32, i32
  }
  func.func @transform_17(%arg0: i32) -> (i32, i32) {
    %c0_i32 = arith.constant 0 : i32
    %c0_i32_0 = arith.constant 0 : i32
    %c0_i32_1 = arith.constant 0 : i32
    return %c0_i32, %c0_i32_0 : i32, i32
  }
  func.func @transform_18(%arg0: i32) -> (i32, i32) {
    %c0_i32 = arith.constant 0 : i32
    %c0_i32_0 = arith.constant 0 : i32
    %c0_i32_1 = arith.constant 0 : i32
    return %c0_i32, %c0_i32_0 : i32, i32
  }
  func.func @transform_19(%arg0: i32) -> (i32, i32, i32) {
    %c0_i32 = arith.constant 0 : i32
    %c0_i32_0 = arith.constant 0 : i32
    %c0_i32_1 = arith.constant 0 : i32
    return %arg0, %c0_i32, %c0_i32_0 : i32, i32, i32
  }
  func.func @transform_20(%arg0: i32) -> (i32, i32, i32, i32) {
    %c0_i32 = arith.constant 0 : i32
    %c0_i32_0 = arith.constant 0 : i32
    %c0_i32_1 = arith.constant 0 : i32
    %c0_i32_2 = arith.constant 0 : i32
    return %arg0, %c0_i32, %c0_i32_0, %c0_i32_1 : i32, i32, i32, i32
  }
}

</mosaic_0001>

<bundles_post_ra>
// kernel: decoder_forward.1
= control target key start
LH: loop header
LB: loop body
LE: loop exit
PB: predicated region body
PF: predicated region fallthrough
CT: control target
= control target key end

     0   :  { %s7451_s0 = inlined_call_operand.vmem [shape: f32[2,8,32], index: 0, kind: input, shape index: {}]   ;;  %s7452_s1 = inlined_call_operand.vmem [shape: f32[2,8,32], index: 1, kind: input, shape index: {}]   ;;  %s7453_s2 = inlined_call_operand.vmem [shape: f32[2,8,8], index: 2, kind: input, shape index: {}]   ;;  %s7454_s3 = inlined_call_operand.vmem [shape: f32[2,8,8], index: 3, kind: input, shape index: {}]   ;;  %s7455_s4 = inlined_call_operand.vmem [shape: f32[32,96], index: 4, kind: input, shape index: {}]   ;;  %s7456_s5 = inlined_call_operand.vmem [shape: f32[1,96], index: 5, kind: input, shape index: {}]   ;;  %s7457_s6 = inlined_call_operand.vmem [shape: f32[32,32], index: 6, kind: input, shape index: {}]   ;;  %s7458_s7 = inlined_call_operand.vmem [shape: f32[1,32], index: 7, kind: input, shape index: {}]   ;;  %s7459_s8 = inlined_call_operand.vmem [shape: f32[32,32], index: 8, kind: input, shape index: {}]   ;;  %s7460_s9 = inlined_call_operand.vmem [shape: f32[1,32], index: 9, kind: input, shape index: {}]   ;;  %s7461_s10 = inlined_call_operand.vmem [shape: f32[32,64], index: 10, kind: input, shape index: {}]   ;;  %s7462_s11 = inlined_call_operand.vmem [shape: f32[1,64], index: 11, kind: input, shape index: {}]   ;;  %s7463_s12 = inlined_call_operand.vmem [shape: f32[32,32], index: 12, kind: input, shape index: {}]   ;;  %s7464_s13 = inlined_call_operand.vmem [shape: f32[1,32], index: 13, kind: input, shape index: {}]   ;;  %s7465_s14 = inlined_call_operand.vmem [shape: f32[32,64], index: 14, kind: input, shape index: {}]   ;;  %s7466_s15 = inlined_call_operand.vmem [shape: f32[1,64], index: 15, kind: input, shape index: {}]   ;;  %s7467_s16 = inlined_call_operand.vmem [shape: f32[64,32], index: 16, kind: input, shape index: {}]   ;;  %s7468_s17 = inlined_call_operand.vmem [shape: f32[1,32], index: 17, kind: input, shape index: {}]   ;;  %s7469_s18 = inlined_call_operand.vmem [shape: f32[6,32], index: 18, kind: input, shape index: {}]   ;;  %s7470_s19 = inlined_call_operand.hbm [shape: f32[2,8,32], index: 19, kind: output, shape index: {0}]   ;;  %s7471_s20 = inlined_call_operand.hbm [shape: f32[2,4,8,8], index: 20, kind: output, shape index: {1}]  }
   0x1   :  { %7495 = sst [smem:[#allocation11_spill]] %s7451_s0 }
   0x2   :  { %7496 = sst [smem:[#allocation12_spill]] %s7452_s1 }
   0x3   :  { %7497 = sst [smem:[#allocation13_spill]] %s7453_s2 }
   0x4   :  { %7498 = sst [smem:[#allocation14_spill]] %s7454_s3 }
   0x5   :  { %7499 = sst [smem:[#allocation15_spill]] %s7455_s4 }
   0x6   :  { %7500 = sst [smem:[#allocation16_spill]] %s7456_s5 }
   0x7   :  { %7501 = sst [smem:[#allocation17_spill]] %s7457_s6 }
   0x8   :  { %7502 = sst [smem:[#allocation18_spill]] %s7458_s7 }
   0x9   :  { %7503 = sst [smem:[#allocation19_spill]] %s7459_s8 }
   0xa   :  { %7504 = sst [smem:[#allocation20_spill]] %s7460_s9 }
   0xb   :  { %7505 = sst [smem:[#allocation21_spill]] %s7461_s10 }
   0xc   :  { %7506 = sst [smem:[#allocation22_spill]] %s7462_s11 }
   0xd   :  { %7507 = sst [smem:[#allocation23_spill]] %s7463_s12 }
   0xe   :  { %26 = vsyncpa [#allocation3], 0 }
   0xf   :  { %28 = vsyncpa [#allocation3 + $0x1], 0 }
  0x10   :  { %29 = vsyncpa [#allocation5], 0 }
  0x11   :  { %31 = vsyncpa [#allocation5 + $0x1], 0  ;;  %s6573_s1 = smov 0   ;;  %s6575_s22 = smov 0  }
  0x12   :  { %s6577_s23 = smov 0   ;;  %s6579_s24 = smov 0  }
  0x13 LB: > { %7508 = sst [smem:[#allocation8_spill]] %s6444_s23  ;;  %s6594_s2 = sadd.s32 4294967295, %s6448_s24   ;;  %s6448_s24 = sphi %s6579_s24, %s7537_s24   ;;  %s6444_s23 = sphi %s6577_s23, %s7539_s23   ;;  %s6440_s22 = sphi %s6575_s22, %s7541_s22   ;;  %s6436_s1 = sphi %s6573_s1, %s7540_s1  }
  0x14   : > { %s5545_s25 = sadd.s32 4294967294, %s6448_s24   ;;  %s6598_s3 = sadd.s32 1, %s6448_s24  }
  0x15   : > { %7509 = sst [smem:[#allocation9_spill]] %s6598_s3  ;;  %s463_s26 = sadd.s32 1, %s6444_s23 }
  0x16   : > { %s460_s27 = ssub.s32 %s6448_s24, %s6598_s3  ;;  %p473_p0 = scmp.ne.s32.totalorder %s6444_s23, %s6440_s22 }
  0x17   : > { %p461_p1 = scmp.eq.s32.totalorder %s460_s27, 0  ;;  %p474_p2 = scmp.eq.s32.totalorder %s6594_s2, 1 }
  0x18   : > { %p479_p3 = scmp.ne.s32.totalorder %s6440_s22, %s6436_s1  ;;  %p480_p4 = scmp.eq.s32.totalorder %s5545_s25, 1 }
  0x19   : > { %s6609_s28 = scalar_select %p461_p1, %s6444_s23, %s463_s26  }
  0x1a   : > { %p6611_p5 = por %p474_p2, %p473_p0  ;;  %p6615_p6 = por %p480_p4, %p479_p3 }
  0x1b   : > { %7510 = sst [smem:[#allocation10_spill]] %s6609_s28  ;;  %p5548_p7 = scmp.ge.s32.totalorder %s6448_s24, 1 }
  0x1c   : > { %p597_p8 = scmp.lt.s32.totalorder %s6448_s24, 3 }
  0x1e   : > { %p598_p9 = pnand %p5548_p7, %p597_p8 }
  0x1f   : > { %s7513_s21 = sld [smem:[#allocation15_spill]] (!%p598_p9)  ;;  %v6450_v3 = vmov (!%p598_p9), 0.0|0.0   ;;  %vm6451_vm0 = vmmov (!%p598_p9), 0   ;;  %v6452_v6 = vmov (!%p598_p9), 0.0   ;;  %p671_p10 = scmp.lt.s32.totalorder (!%p598_p9), %s6594_s2, 1  ;;  %vm737_vm1 = vcmask (!%p598_p9), 261120  }
  0x20   : > { %601 = sbr.rel (%p598_p9) target bundleno = 13624 (0x3538), region = 96  ;;  %6156 = vmatprep.subr.bf16.mxu1 (!%p598_p9), %v6450_v3  ;;  %5814 = vmatprep.mubr.msk.f32.mxu1 (!%p598_p9), %vm6451_vm0, %v6452_v6  ;;  %s7514_s0 = sld [smem:[#allocation12_spill]] (!%p598_p9)  ;;  %vm893_vm2 = vcmask (!%p598_p9), 64512   ;;  %vm3040_vm3 = vcmask (!%p598_p9), 523264  }
  0x21   : > { %6150 = vmatprep.subr.bf16.mxu0 (!%p598_p9), %v6450_v3  ;;  %5803 = vmatprep.mubr.msk.f32.mxu0 (!%p598_p9), %vm6451_vm0, %v6452_v6  ;;  %s7515_s10 = sld [smem:[#allocation21_spill]] (!%p598_p9)  ;;  %s7517_s5 = sld [smem:[#allocation16_spill]] (!%p598_p9) }
  0x22   : > { %s7478_s26 = smov (!%p598_p9), 88   ;;  %s7480_s27 = smov (!%p598_p9), 56  }
  0x23   : > { %s7519_s6 = sld [smem:[#allocation17_spill]] (!%p598_p9)  ;;  %s7520_s11 = sld [smem:[#allocation22_spill]] (!%p598_p9) }
  0x24   : > { %s7521_s7 = sld [smem:[#allocation18_spill]] (!%p598_p9)  ;;  %s7522_s8 = sld [smem:[#allocation19_spill]] (!%p598_p9) }
  0x25   : > { %v691_v0 = vld [vmem:[%s7513_s21] sm:$0xff] (!%p598_p9)  ;;  %v692_v1 = vld [vmem:[%s7513_s21 + $0x8] sm:$0xff] (!%p598_p9)  ;;  %v693_v2 = vld [vmem:[%s7513_s21 + $0x10] sm:$0xff] (!%p598_p9)  ;;  %s7523_s9 = sld [smem:[#allocation20_spill]] (!%p598_p9)  ;;  %s7529_s12 = sld [smem:[#allocation23_spill]] (!%p598_p9) }
  0x26   : > { %v6631_v4 = vpack.c.bf16 (!%p598_p9), %v692_v1, %v691_v0  ;;  %v694_v5 = vld [vmem:[%s7513_s21 + $0x18] sm:$0xff] (!%p598_p9)  ;;  %s7493_s21 = smov (!%p598_p9), 120  }
  0x27   : > { %v6643_v7 = vpack.c.bf16 %v694_v5, %v693_v2  ;;  %s672_s28 = scalar_select %p671_p10, %s6594_s2, 1  ;;  %v706_v9 = vld [vmem:[%s7515_s10] sm:$0xff]  ;;  %v707_v10 = vld [vmem:[%s7515_s10 + $0x8] sm:$0xff]  ;;  %v708_v11 = vld [vmem:[%s7515_s10 + $0x10] sm:$0xff] }
  0x28   : > { %6158 = vmatpush3.bf16.msra.mxu1 %v6631_v4  ;;  %v6151_v12 = vpack.c.bf16 %v707_v10, %v706_v9  ;;  %v709_v13 = vld [vmem:[%s7515_s10 + $0x18] sm:$0xff]  ;;  %v6685_v16 = vld [vmem:[%s7517_s5] ss:$0 sm:$0xff]  ;;  %s7528_s5 = smov 88  }
  0x29   : > { %6159 = vmatprep.subr.bf16.mxu1 %v6450_v3  ;;  %s6647_s23 = sshll.u32 %s672_s28, 3  ;;  %v6154_v14 = vpack.c.bf16 %v709_v13, %v708_v11  ;;  %s7516_s28 = sld [smem:[#allocation11_spill]]  ;;  %v6739_v52 = vld [vmem:[%s7519_s6 + $0x8] sm:$0xff]  ;;  %v6747_v57 = vld [vmem:[%s7519_s6] sm:$0xff] }
  0x2a   : > { %s678_s25 = scalar_lea.vmem %s7514_s0, %s6647_s23  ;;  %6152 = vmatpush3.bf16.msra.mxu0 %v6151_v12  ;;  %s7477_s0 = smov 64  }
  0x2b   : > { %v6654_v8 = vld [vmem:[%s678_s25] sm:$0xff]  ;;  %6153 = vmatprep.subr.bf16.mxu0 %v6450_v3  ;;  %s7489_s25 = smov 96  }
  0x2c   : > { %6161 = vmatpush3.bf16.msra.mxu1 %v6643_v7 }
  0x2d   : > { %5832 = vmatprep.subr.mxu1 %v6452_v6 }
  0x2e   : > { %6155 = vmatpush3.bf16.msra.mxu0 %v6154_v14 }
  0x2f   : > { %5815 = vmatmul.mubr.msk.f32.vlgmr.msra.gmra.mrb[0].mxu1 %vm737_vm1, %v6654_v8  ;;  %5817 = vmatprep.subr.mxu0 %v6452_v6  ;;  %s674_s3 = scalar_lea.vmem %s7516_s28, %s6647_s23  ;;  %s7481_s28 = smov 80  }
  0x30   : > { %5834 = vmatprep.mubr.msk.f32.mxu1 %vm6451_vm0, %v6452_v6  ;;  %v687_v15 = vld [vmem:[%s674_s3] sm:$0xff]  ;;  %s7518_s3 = sld [smem:[#allocation13_spill]] }
  0x31   : > { %5804 = vmatmul.mubr.msk.f32.vlgmr.msra.gmra.mrb[0].mxu0 %vm737_vm1, %v687_v15 }
  0x32   : > { %5819 = vmatprep.mubr.msk.f32.mxu0 %vm6451_vm0, %v6452_v6 }
  0x36   : > { %s6709_s30 = scalar_lea.vmem %s7518_s3, %s6647_s23  ;;  %s7491_s3 = smov 112  }
  0x37   : > { %v6712_v24 = vld [vmem:[%s6709_s30] sm:$0xff] }
 0x102   : > { %v886_v17 = vpop.f32.mrb[0].mxu1 }
 0x103   : > { %v6688_v18 = vadd.f32 %v6685_v16, %v886_v17  ;;  %v5816_v19 = vpop.f32.mrb[1].mxu1 }
 0x104   : > { %v6703_v22 = vpop.f32.mrb[0].mxu0 }
 0x105   : > { %981 = vrot.lane.b32.xlu1 %v6688_v18, %s7477_s0  ;;  %891 = vrot.lane.b32.xlu0 %v6688_v18, %s7489_s25  ;;  %v5805_v23 = vpop.f32.mrb[1].mxu0  ;;  %s7483_s0 = smov 48  }
 0x109   : > { %1059 = vrot.lane.b32.xlu1 %v6688_v18, %s7478_s26  ;;  %s7484_s26 = smov 72  }
 0x177   : > { %v892_v20 = vpop.permute.xlu0 %891  ;;  %v982_v21 = vpop.permute.xlu1 %981 }
 0x178   : > { %5818 = vmatpush3.xpose.msk.msra.mxu0 %vm893_vm2, %v892_v20 }
 0x179   : > { %5822 = vmatprep.subr.mxu0 %v6452_v6 }
 0x17b   : > { %5820 = vmatmul.mubr.msk.f32.vlgmr.msra.gmra.mrb[2].mxu0 %vm893_vm2, %v6688_v18  ;;  %v1060_v35 = vpop.permute.xlu1 %1059 }
 0x17c   : > { %5823 = vmatpush3.msra.mxu0 %v982_v21  ;;  %5824 = vmatprep.mubr.msk.f32.mxu0 %vm6451_vm0, %v6452_v6 }
 0x17d   : > { %5827 = vmatprep.subr.mxu0 %v6452_v6 }
 0x24e   : > { %v964_v25 = vpop.f32.mrb[2].mxu0 }
 0x24f   : > { %v968_v26 = vmul.f32 0.35355338, %v964_v25  ;;  %v5821_v27 = vpop.f32.mrb[3].mxu0 }
 0x251   : > { %v969_v28 = vadd.f32 %v968_v26, %v6712_v24 }
 0x253   : > { %v970_v29 = vsel %vm893_vm2, %v969_v28, -inf }
 0x254   : > { %971 = vmax.xlane.f32.xlu0 %v970_v29 }
 0x2e1   : > { %v972_v30 = vpop.xlane.xlu0 %971 }
 0x2e2   : > { %v973_v31 = vsub.f32 %v969_v28, %v972_v30  ;;  %v6786_v28 = vld [vmem:[%s7519_s6 + $0x10] sm:$0xff] }
 0x2e4   : > { %v974_v32 = vmul.f32 1.442695, %v973_v31 }
 0x2e6   : > { %6276 = vpow2.f32 %v974_v32 }
 0x2f0   : > { %v6277_v33 = vpop.eup %6276 }
 0x2f1   : > { %v976_v34 = vsel %vm893_vm2, %v6277_v33, 0.0 }
 0x2f2   : > { %977 = vadd.xlane.f32.xlu1 %v976_v34 }
 0x303   : > { %1057 = vrot.lane.b32.xlu1 %v6688_v18, %s7493_s21 }
 0x37f   : > { %v978_v36 = vpop.xlane.xlu1 %977 }
 0x380   : > { %6278 = vrcp.f32 %v978_v36 }
 0x383   : > { %v1058_v39 = vpop.permute.xlu1 %1057 }
 0x38a   : > { %v6279_v37 = vpop.eup %6278 }
 0x38b   : > { %v980_v38 = vmul.f32 %v6279_v37, %v6277_v33 }
 0x38d   : > { %5825 = vmatmul.mubr.msk.f32.vlgmr.msra.gmra.mrb[4].mxu0 %vm893_vm2, %v980_v38 }
 0x38e   : > { %5828 = vmatpush3.xpose.msk.msra.mxu0 %vm893_vm2, %v1060_v35  ;;  %5829 = vmatprep.mubr.msk.f32.mxu0 %vm6451_vm0, %v6452_v6 }
 0x38f   : > { %5837 = vmatprep.subr.mxu0 %v6452_v6 }
 0x391   : > { %5830 = vmatmul.mubr.msk.f32.vlgmr.msra.gmra.mrb[6].mxu0 %vm893_vm2, %v1058_v39 }
 0x392   : > { %5839 = vmatprep.mubr.msk.f32.mxu0 %vm6451_vm0, %v6452_v6  ;;  %5838 = vmatpush3.msra.mxu0 %v6739_v52 }
 0x393   : > { %5847 = vmatprep.subr.mxu0 %v6452_v6 }
 0x460   : > { %v1053_v40 = vpop.f32.mrb[4].mxu0 }
 0x461   : > { %v5826_v41 = vpop.f32.mrb[5].mxu0 }
 0x462   : > { %v6801_v41 = vld [vmem:[%s7519_s6 + $0x18] sm:$0xff] }
 0x464   : > { %v1131_v42 = vpop.f32.mrb[6].mxu0 }
 0x465   : > { %v1135_v43 = vmul.f32 0.35355338, %v1131_v42  ;;  %v5831_v44 = vpop.f32.mrb[7].mxu0 }
 0x467   : > { %v1136_v45 = vadd.f32 %v1135_v43, %v6712_v24 }
 0x469   : > { %v1137_v46 = vsel %vm893_vm2, %v1136_v45, -inf }
 0x46a   : > { %1138 = vmax.xlane.f32.xlu1 %v1137_v46 }
 0x4f7   : > { %v1139_v47 = vpop.xlane.xlu1 %1138 }
 0x4f8   : > { %v1140_v48 = vsub.f32 %v1136_v45, %v1139_v47 }
 0x4fa   : > { %v1141_v49 = vmul.f32 1.442695, %v1140_v48  ;;  %v5555_v48 = vld [vmem:[%s7520_s11] ss:$0 sm:$0xff] }
 0x4fc   : > { %6280 = vpow2.f32 %v1141_v49  ;;  %v6813_v49 = vadd.f32 %v5555_v48, %v6703_v22 }
 0x506   : > { %v6281_v50 = vpop.eup %6280 }
 0x507   : > { %v1143_v51 = vsel %vm893_vm2, %v6281_v50, 0.0 }
 0x508   : > { %1144 = vadd.xlane.f32.xlu0 %v1143_v51 }
 0x51e   : > { %1148 = vrot.lane.b32.xlu0 %v6688_v18, %s7480_s27  ;;  %s7487_s27 = smov 104  }
 0x522   : > { %1372 = vrot.lane.b32.xlu0 %v6688_v18, %s7481_s28  ;;  %s7525_s28 = sld [smem:[#allocation14_spill]] }
 0x526   : > { %1370 = vrot.lane.b32.xlu0 %v6688_v18, %s7491_s3  ;;  %s7526_s3 = smov 112  }
 0x528   : > { %s6901_s25 = scalar_lea.vmem %s7525_s28, %s6647_s23  ;;  %s7527_s23 = smov 96  }
 0x595   : > { %v1145_v53 = vpop.xlane.xlu0 %1144 }
 0x596   : > { %6282 = vrcp.f32 %v1145_v53  ;;  %v6824_v53 = vld [vmem:[%s7521_s7] ss:$0 sm:$0xff] }
 0x599   : > { %v1149_v54 = vpop.permute.xlu0 %1148 }
 0x59a   : > { %5833 = vmatpush3.msra.mxu1 %v1149_v54 }
 0x59b   : > { %5842 = vmatprep.subr.mxu1 %v6452_v6 }
 0x59d   : > { %v1373_v58 = vpop.permute.xlu0 %1372 }
 0x5a0   : > { %v6283_v55 = vpop.eup %6282 }
 0x5a1   : > { %v1147_v56 = vmul.f32 %v6283_v55, %v6281_v50  ;;  %v1371_v61 = vpop.permute.xlu0 %1370 }
 0x5a3   : > { %5835 = vmatmul.mubr.msk.f32.vlgmr.msra.gmra.mrb[2].mxu1 %vm893_vm2, %v1147_v56 }
 0x5a4   : > { %5843 = vmatpush3.msra.mxu1 %v6747_v57  ;;  %5844 = vmatprep.mubr.msk.f32.mxu1 %vm6451_vm0, %v6452_v6 }
 0x5a5   : > { %5852 = vmatprep.subr.mxu1 %v6452_v6 }
 0x5a7   : > { %5845 = vmatmul.mubr.msk.f32.vlgmr.msra.gmra.mrb[4].mxu1 %vm893_vm2, %v1053_v40 }
 0x5a8   : > { %5854 = vmatprep.mubr.msk.f32.mxu1 %vm6451_vm0, %v6452_v6 }
 0x676   : > { %v1220_v59 = vpop.f32.mrb[2].mxu1 }
 0x677   : > { %v5836_v60 = vpop.f32.mrb[3].mxu1  ;;  %5840 = vmatmul.mubr.msk.f32.vlgmr.msra.gmra.mrb[8].mxu0 %vm893_vm2, %v1220_v59 }
 0x678   : > { %5848 = vmatpush3.xpose.msk.msra.mxu0 %vm893_vm2, %v1373_v58  ;;  %5849 = vmatprep.mubr.msk.f32.mxu0 %vm6451_vm0, %v6452_v6 }
 0x679   : > { %5857 = vmatprep.subr.mxu0 %v6452_v6 }
 0x67a   : > { %v1366_v62 = vpop.f32.mrb[4].mxu1 }
 0x67b   : > { %v5846_v63 = vpop.f32.mrb[5].mxu1  ;;  %5850 = vmatmul.mubr.msk.f32.vlgmr.msra.gmra.mrb[10].mxu0 %vm893_vm2, %v1371_v61 }
 0x67c   : > { %5859 = vmatprep.mubr.msk.f32.mxu0 %vm6451_vm0, %v6452_v6  ;;  %5858 = vmatpush3.msra.mxu0 %v6786_v28 }
 0x67d   : > { %5867 = vmatprep.subr.mxu0 %v6452_v6 }
 0x74a   : > { %v1293_v0 = vpop.f32.mrb[8].mxu0 }
 0x74b   : > { %v1367_v1 = vadd.f32 %v1366_v62, %v1293_v0  ;;  %v5841_v2 = vpop.f32.mrb[9].mxu0 }
 0x74e   : > { %v1444_v5 = vpop.f32.mrb[10].mxu0 }
 0x74f   : > { %v1448_v9 = vmul.f32 0.35355338, %v1444_v5  ;;  %v5851_v10 = vpop.f32.mrb[11].mxu0  ;;  %v703_v5 = vld [vmem:[%s7522_s8 + $0x10] sm:$0xff] }
 0x751   : > { %v1449_v11 = vadd.f32 %v1448_v9, %v6712_v24  ;;  %v704_v9 = vld [vmem:[%s7522_s8 + $0x18] sm:$0xff] }
 0x752   : > { %v6848_v10 = vpack.c.bf16 %v704_v9, %v703_v5 }
 0x753   : > { %v1450_v12 = vsel %vm893_vm2, %v1449_v11, -inf }
 0x754   : > { %1451 = vmax.xlane.f32.xlu1 %v1450_v12 }
 0x765   : > { %1461 = vrot.lane.b32.xlu1 %v6688_v18, %s7483_s0  ;;  %s7486_s0 = smov 40  }
 0x769   : > { %1613 = vrot.lane.b32.xlu1 %v6688_v18, %s7484_s26  ;;  %s7532_s26 = smov 72  }
 0x76d   : > { %1611 = vrot.lane.b32.xlu1 %v6688_v18, %s7487_s27  ;;  %s7524_s27 = smov 120  }
 0x7e1   : > { %v1452_v13 = vpop.xlane.xlu1 %1451 }
 0x7e2   : > { %v1453_v14 = vsub.f32 %v1449_v11, %v1452_v13  ;;  %v1874_v13 = vlaneseq }
 0x7e4   : > { %v1454_v15 = vmul.f32 1.442695, %v1453_v14 }
 0x7e5   : > { %v1462_v17 = vpop.permute.xlu1 %1461 }
 0x7e6   : > { %6284 = vpow2.f32 %v1454_v15  ;;  %5853 = vmatpush3.msra.mxu1 %v1462_v17  ;;  %v6852_v15 = vshrl.u32 %v1874_v13, 7 }
 0x7e7   : > { %5862 = vmatprep.subr.mxu1 %v6452_v6 }
 0x7e8   : > { %v1876_v17 = vsub.s32 0, %v6852_v15 }
 0x7e9   : > { %v1614_v25 = vpop.permute.xlu1 %1613 }
 0x7ed   : > { %v1612_v27 = vpop.permute.xlu1 %1611 }
 0x7f0   : > { %v6285_v19 = vpop.eup %6284 }
 0x7f1   : > { %v1456_v20 = vsel %vm893_vm2, %v6285_v19, 0.0 }
 0x7f2   : > { %1457 = vadd.xlane.f32.xlu0 %v1456_v20  ;;  %v1881_v20 = vsub.s32 1, %v6852_v15 }
 0x87f   : > { %v1458_v21 = vpop.xlane.xlu0 %1457 }
 0x880   : > { %6286 = vrcp.f32 %v1458_v21 }
 0x88a   : > { %v6287_v23 = vpop.eup %6286 }
 0x88b   : > { %v1460_v26 = vmul.f32 %v6287_v23, %v6285_v19  ;;  %v6858_v19 = vld [vmem:[%s7469_s18] sm:$0x3f] }
 0x88c   : > { %v6862_v21 = vrot.slane %v6858_v19, %v1876_v17 }
 0x88d   : > { %5855 = vmatmul.mubr.msk.f32.vlgmr.msra.gmra.mrb[6].mxu1 %vm893_vm2, %v1460_v26  ;;  %v6865_v26 = vrot.slane %v6858_v19, %v1881_v20 }
 0x88e   : > { %5863 = vmatpush3.xpose.msk.msra.mxu1 %vm893_vm2, %v1614_v25  ;;  %5864 = vmatprep.mubr.msk.f32.mxu1 %vm6451_vm0, %v6452_v6 }
 0x88f   : > { %5872 = vmatprep.subr.mxu1 %v6452_v6 }
 0x891   : > { %5865 = vmatmul.mubr.msk.f32.vlgmr.msra.gmra.mrb[8].mxu1 %vm893_vm2, %v1612_v27 }
 0x892   : > { %5874 = vmatprep.mubr.msk.f32.mxu1 %vm6451_vm0, %v6452_v6  ;;  %5873 = vmatpush3.msra.mxu1 %v6801_v41 }
 0x893   : > { %5888 = vmatprep.subr.mxu1 %v6452_v6 }
 0x960   : > { %v1533_v29 = vpop.f32.mrb[6].mxu1 }
 0x961   : > { %v5856_v30 = vpop.f32.mrb[7].mxu1  ;;  %5860 = vmatmul.mubr.msk.f32.vlgmr.msra.gmra.mrb[12].mxu0 %vm893_vm2, %v1533_v29 }
 0x962   : > { %5869 = vmatprep.mubr.msk.f32.mxu0 %vm6451_vm0, %v6452_v6 }
 0x964   : > { %v1685_v31 = vpop.f32.mrb[8].mxu1 }
 0x965   : > { %v1689_v32 = vmul.f32 0.35355338, %v1685_v31  ;;  %v5866_v33 = vpop.f32.mrb[9].mxu1  ;;  %v6883_v31 = vld [vmem:[%s7523_s9] ss:$0 sm:$0xff] }
 0x967   : > { %v1690_v34 = vadd.f32 %v1689_v32, %v6712_v24 }
 0x969   : > { %v1691_v35 = vsel %vm893_vm2, %v1690_v34, -inf }
 0x96a   : > { %1692 = vmax.xlane.f32.xlu1 %v1691_v35 }
 0x9f7   : > { %v1693_v36 = vpop.xlane.xlu1 %1692 }
 0x9f8   : > { %v1694_v37 = vsub.f32 %v1690_v34, %v1693_v36  ;;  %v6904_v36 = vld [vmem:[%s6901_s25] sm:$0xff] }
 0x9fa   : > { %v1695_v38 = vmul.f32 1.442695, %v1694_v37 }
 0x9fc   : > { %6288 = vpow2.f32 %v1695_v38 }
 0xa06   : > { %v6289_v39 = vpop.eup %6288 }
 0xa07   : > { %v1697_v40 = vsel %vm893_vm2, %v6289_v39, 0.0 }
 0xa08   : > { %1698 = vadd.xlane.f32.xlu0 %v1697_v40 }
 0xa1e   : > { %1702 = vrot.lane.b32.xlu0 %v6688_v18, %s7486_s0  ;;  %s7531_s0 = smov 104  }
 0xa34   : > { %v1606_v42 = vpop.f32.mrb[12].mxu0 }
 0xa35   : > { %v1610_v43 = vadd.f32 %v1606_v42, %v1367_v1  ;;  %v5861_v44 = vpop.f32.mrb[13].mxu0  ;;  %v701_v1 = vld [vmem:[%s7522_s8] sm:$0xff] }
 0xa95   : > { %v1699_v45 = vpop.xlane.xlu0 %1698 }
 0xa96   : > { %6290 = vrcp.f32 %v1699_v45 }
 0xa99   : > { %v1703_v46 = vpop.permute.xlu0 %1702 }
 0xa9a   : > { %5868 = vmatpush3.msra.mxu0 %v1703_v46 }
 0xa9b   : > { %6162 = vmatprep.subr.bf16.mxu0 %v6450_v3 }
 0xaa0   : > { %v6291_v47 = vpop.eup %6290 }
 0xaa1   : > { %v1701_v18 = vmul.f32 %v6291_v47, %v6289_v39 }
 0xaa3   : > { %5870 = vmatmul.mubr.msk.f32.vlgmr.msra.gmra.mrb[14].mxu0 %vm893_vm2, %v1701_v18 }
 0xaa4   : > { %5885 = vmatprep.mubr.msk.f32.mxu0 %vm6451_vm0, %v6452_v6 }
 0xb76   : > { %v1774_v50 = vpop.f32.mrb[14].mxu0 }
 0xb77   : > { %v5871_v51 = vpop.f32.mrb[15].mxu0  ;;  %5875 = vmatmul.mubr.msk.f32.vlgmr.msra.gmra.mrb[10].mxu1 %vm893_vm2, %v1774_v50 }
 0xb78   : > { %5889 = vmatpush3.xpose.msk.msra.mxu1 %vm893_vm2, %v6813_v49  ;;  %5890 = vmatprep.mubr.msk.f32.mxu1 %vm6451_vm0, %v6452_v6 }
 0xb79   : > { %5893 = vmatprep.subr.mxu1 %v6452_v6 }
 0xc4a   : > { %v1847_v54 = vpop.f32.mrb[10].mxu1 }
 0xc4b   : > { %v1851_v22 = vadd.f32 %v1847_v54, %v1610_v43  ;;  %v5876_v55 = vpop.f32.mrb[11].mxu1 }
 0xc4d   : > { %v1858_v56 = vadd.f32 %v6824_v53, %v1851_v22 }
 0xc4f   : > { %v1859_v58 = vadd.f32 %v1858_v56, %v6654_v8  ;;  %v702_v8 = vld [vmem:[%s7522_s8 + $0x8] sm:$0xff]  ;;  %s6464_s8 = smov [#allocation4]  }
 0xc50   : > { %v6838_v2 = vpack.c.bf16 %v702_v8, %v701_v1  ;;  %s6358_s6 = sshll.u32 %s6464_s8, 4  ;;  %s6359_s6 = int_to_ptr.vmem [resolvable:$false] %s6358_s6 }
 0xc51   : > { %v1860_v59 = vsel %vm737_vm1, %v1859_v58, 0.0  ;;  %s6360_s28 = scalar_lea.vmem %s6359_s6, 1024 }
 0xc52   : > { %1861 = vadd.xlane.f32.xlu0 %v1860_v59  ;;  %6164 = vmatpush3.bf16.msra.mxu0 %v6838_v2 }
 0xc53   : > { %6165 = vmatprep.subr.bf16.mxu0 %v6450_v3 }
 0xc56   : > { %6167 = vmatpush3.bf16.msra.mxu0 %v6848_v10 }
 0xc57   : > { %5898 = vmatprep.subr.mxu0 %v6452_v6 }
 0xcdf   : > { %v1862_v60 = vpop.xlane.xlu0 %1861 }
 0xce0   : > { %v1864_v61 = vmul.f32 0.03125, %v1862_v60 }
 0xce2   : > { %v1865_v62 = vsub.f32 %v1859_v58, %v1864_v61 }
 0xce4   : > { %v1866_v63 = vmul.f32 %v1865_v62, %v1865_v62 }
 0xce6   : > { %v1867_v0 = vsel %vm737_vm1, %v1866_v63, 0.0 }
 0xce7   : > { %1868 = vadd.xlane.f32.xlu1 %v1867_v0  ;;  %v6930_v0 = vld [vmem:[%s7529_s12 + $0x8] sm:$0xff] }
 0xcf8   : > { %2130 = vrot.lane.b32.xlu1 %v6813_v49, %s7493_s21  ;;  %s7530_s21 = smov 80  }
 0xd74   : > { %v1869_v11 = vpop.xlane.xlu1 %1868 }
 0xd75   : > { %v1870_v12 = vmul.f32 0.03125, %v1869_v11  ;;  %v6941_v11 = vld [vmem:[%s7529_s12] sm:$0xff] }
 0xd77   : > { %v1871_v14 = vadd.f32 1e-05, %v1870_v12 }
 0xd78   : > { %v6871_v30 = vpop.permute.xlu1 %2130 }
 0xd79   : > { %6292 = vrsqrt.f32 %v1871_v14 }
 0xd83   : > { %v6293_v23 = vpop.eup %6292 }
 0xd84   : > { %v1873_v25 = vmul.f32 %v6293_v23, %v1865_v62 }
 0xd86   : > { %v1878_v27 = vmul.f32 %v6862_v21, %v1873_v25 }
 0xd88   : > { %v6869_v29 = vadd.f32 %v6865_v26, %v1878_v27 }
 0xd8a   : > { %5886 = vmatmul.mubr.msk.f32.vlgmr.msra.gmra.mrb[16].mxu0 %vm737_vm1, %v6869_v29 }
 0xd8b   : > { %5899 = vmatpush3.xpose.msk.msra.mxu0 %vm893_vm2, %v6871_v30  ;;  %5900 = vmatprep.mubr.msk.f32.mxu0 %vm6451_vm0, %v6452_v6 }
 0xd8c   : > { %5908 = vmatprep.subr.mxu0 %v6452_v6 }
 0xe5d   : > { %v1959_v32 = vpop.f32.mrb[16].mxu0 }
 0xe5e   : > { %v6886_v33 = vadd.f32 %v6883_v31, %v1959_v32  ;;  %v5887_v34 = vpop.f32.mrb[17].mxu0 }
 0xe60   : > { %2128 = vrot.lane.b32.xlu1 %v6886_v33, %s7524_s27  ;;  %5891 = vmatmul.mubr.msk.f32.vlgmr.msra.gmra.mrb[12].mxu1 %vm893_vm2, %v6886_v33 }
 0xe61   : > { %5895 = vmatprep.mubr.msk.f32.mxu1 %vm6451_vm0, %v6452_v6 }
 0xed2   : > { %v2129_v35 = vpop.permute.xlu1 %2128 }
 0xed3   : > { %5901 = vmatmul.mubr.msk.f32.vlgmr.msra.gmra.mrb[18].mxu0 %vm893_vm2, %v2129_v35 }
 0xed4   : > { %5910 = vmatprep.mubr.msk.f32.mxu0 %vm6451_vm0, %v6452_v6  ;;  %5909 = vmatpush3.msra.mxu0 %v6930_v0 }
 0xed5   : > { %5918 = vmatprep.subr.mxu0 %v6452_v6 }
 0xf33   : > { %v2035_v37 = vpop.f32.mrb[12].mxu1 }
 0xf34   : > { %v2039_v38 = vmul.f32 0.35355338, %v2035_v37  ;;  %v5892_v39 = vpop.f32.mrb[13].mxu1 }
 0xf36   : > { %v2040_v40 = vadd.f32 %v2039_v38, %v6904_v36 }
 0xf38   : > { %v2041_v42 = vsel %vm893_vm2, %v2040_v40, -inf }
 0xf39   : > { %2042 = vmax.xlane.f32.xlu1 %v2041_v42 }
 0xf4a   : > { %2443 = vrot.lane.b32.xlu1 %v6813_v49, %s7526_s3 }
 0xfa6   : > { %v2202_v43 = vpop.f32.mrb[18].mxu0 }
 0xfa7   : > { %v2206_v44 = vmul.f32 0.35355338, %v2202_v43  ;;  %v5902_v45 = vpop.f32.mrb[19].mxu0 }
 0xfa9   : > { %v2207_v46 = vadd.f32 %v2206_v44, %v6904_v36 }
 0xfab   : > { %v2208_v47 = vsel %vm893_vm2, %v2207_v46, -inf }
 0xfac   : > { %2209 = vmax.xlane.f32.xlu0 %v2208_v47 }
 0xfc2   : > { %2052 = vrot.lane.b32.xlu0 %v6813_v49, %s7527_s23 }
 0xfc6   : > { %v2043_v18 = vpop.xlane.xlu1 %2042 }
 0xfc7   : > { %v2044_v48 = vsub.f32 %v2040_v40, %v2043_v18 }
 0xfc9   : > { %v2045_v50 = vmul.f32 1.442695, %v2044_v48 }
 0xfca   : > { %v6951_v17 = vpop.permute.xlu1 %2443 }
 0xfcb   : > { %6294 = vpow2.f32 %v2045_v50 }
 0xfd5   : > { %v6295_v51 = vpop.eup %6294 }
 0xfd6   : > { %v2047_v54 = vsel %vm893_vm2, %v6295_v51, 0.0 }
 0xfe1   : > { %2048 = vadd.xlane.f32.xlu0 %v2047_v54 }
0x1039   : > { %v2210_v22 = vpop.xlane.xlu0 %2209 }
0x103a   : > { %v2211_v55 = vsub.f32 %v2207_v46, %v2210_v22  ;;  %v6989_v22 = vld [vmem:[%s7529_s12 + $0x10] sm:$0xff] }
0x103c   : > { %v2212_v56 = vmul.f32 1.442695, %v2211_v55 }
0x103d   : > { %v6915_v58 = vpop.permute.xlu0 %2052 }
0x103e   : > { %6296 = vpow2.f32 %v2212_v56  ;;  %5894 = vmatpush3.msra.mxu1 %v6915_v58 }
0x103f   : > { %5903 = vmatprep.subr.mxu1 %v6452_v6 }
0x1048   : > { %v6297_v59 = vpop.eup %6296 }
0x1049   : > { %v2214_v60 = vsel %vm893_vm2, %v6297_v59, 0.0 }
0x104a   : > { %2215 = vadd.xlane.f32.xlu0 %v2214_v60 }
0x1060   : > { %2219 = vrot.lane.b32.xlu0 %v6813_v49, %s7528_s5 }
0x1064   : > { %2441 = vrot.lane.b32.xlu0 %v6886_v33, %s7526_s3 }
0x106e   : > { %v2049_v61 = vpop.xlane.xlu0 %2048 }
0x106f   : > { %6298 = vrcp.f32 %v2049_v61 }
0x1079   : > { %v6299_v62 = vpop.eup %6298 }
0x107a   : > { %v2051_v63 = vmul.f32 %v6299_v62, %v6295_v51 }
0x107c   : > { %5896 = vmatmul.mubr.msk.f32.vlgmr.msra.gmra.mrb[14].mxu1 %vm893_vm2, %v2051_v63 }
0x107d   : > { %5905 = vmatprep.mubr.msk.f32.mxu1 %vm6451_vm0, %v6452_v6 }
0x10d7   : > { %v2216_v1 = vpop.xlane.xlu0 %2215 }
0x10d8   : > { %6300 = vrcp.f32 %v2216_v1 }
0x10db   : > { %v6934_v8 = vpop.permute.xlu0 %2219 }
0x10dc   : > { %5904 = vmatpush3.msra.mxu1 %v6934_v8 }
0x10dd   : > { %5913 = vmatprep.subr.mxu1 %v6452_v6 }
0x10df   : > { %v2442_v23 = vpop.permute.xlu0 %2441 }
0x10e2   : > { %v6301_v5 = vpop.eup %6300 }
0x10e3   : > { %v2218_v9 = vmul.f32 %v6301_v5, %v6297_v59 }
0x10e5   : > { %5906 = vmatmul.mubr.msk.f32.vlgmr.msra.gmra.mrb[16].mxu1 %vm893_vm2, %v2218_v9 }
0x10e6   : > { %5914 = vmatpush3.msra.mxu1 %v6941_v11  ;;  %5915 = vmatprep.mubr.msk.f32.mxu1 %vm6451_vm0, %v6452_v6 }
0x10e7   : > { %5923 = vmatprep.subr.mxu1 %v6452_v6 }
0x114f   : > { %v2124_v12 = vpop.f32.mrb[14].mxu1 }
0x1150   : > { %v5897_v13 = vpop.f32.mrb[15].mxu1  ;;  %5916 = vmatmul.mubr.msk.f32.vlgmr.msra.gmra.mrb[18].mxu1 %vm893_vm2, %v2124_v12 }
0x1151   : > { %5925 = vmatprep.mubr.msk.f32.mxu1 %vm6451_vm0, %v6452_v6 }
0x11b8   : > { %v2291_v14 = vpop.f32.mrb[16].mxu1 }
0x11b9   : > { %v5907_v20 = vpop.f32.mrb[17].mxu1  ;;  %5911 = vmatmul.mubr.msk.f32.vlgmr.msra.gmra.mrb[20].mxu0 %vm893_vm2, %v2291_v14 }
0x11ba   : > { %5919 = vmatpush3.xpose.msk.msra.mxu0 %vm893_vm2, %v6951_v17  ;;  %5920 = vmatprep.mubr.msk.f32.mxu0 %vm6451_vm0, %v6452_v6  ;;  %v7008_v20 = vld [vmem:[%s7529_s12 + $0x18] sm:$0xff] }
0x11bb   : > { %5928 = vmatprep.subr.mxu0 %v6452_v6 }
0x11bd   : > { %5921 = vmatmul.mubr.msk.f32.vlgmr.msra.gmra.mrb[22].mxu0 %vm893_vm2, %v2442_v23 }
0x11be   : > { %5930 = vmatprep.mubr.msk.f32.mxu0 %vm6451_vm0, %v6452_v6  ;;  %5929 = vmatpush3.msra.mxu0 %v6989_v22 }
0x11bf   : > { %5938 = vmatprep.subr.mxu0 %v6452_v6 }
0x1223   : > { %v2437_v25 = vpop.f32.mrb[18].mxu1 }
0x1224   : > { %v5917_v27 = vpop.f32.mrb[19].mxu1 }
0x128c   : > { %v2364_v32 = vpop.f32.mrb[20].mxu0 }
0x128d   : > { %v2438_v34 = vadd.f32 %v2437_v25, %v2364_v32  ;;  %v5912_v35 = vpop.f32.mrb[21].mxu0 }
0x1290   : > { %v2515_v37 = vpop.f32.mrb[22].mxu0 }
0x1291   : > { %v2519_v38 = vmul.f32 0.35355338, %v2515_v37  ;;  %v5922_v39 = vpop.f32.mrb[23].mxu0 }
0x1293   : > { %v2520_v40 = vadd.f32 %v2519_v38, %v6904_v36 }
0x1295   : > { %v2521_v42 = vsel %vm893_vm2, %v2520_v40, -inf }
0x1296   : > { %2522 = vmax.xlane.f32.xlu0 %v2521_v42 }
0x12ac   : > { %2532 = vrot.lane.b32.xlu0 %v6813_v49, %s7530_s21 }
0x12b0   : > { %2682 = vrot.lane.b32.xlu0 %v6886_v33, %s7531_s0 }
0x1323   : > { %v2523_v43 = vpop.xlane.xlu0 %2522 }
0x1324   : > { %v2524_v44 = vsub.f32 %v2520_v40, %v2523_v43 }
0x1326   : > { %v2525_v45 = vmul.f32 1.442695, %v2524_v44 }
0x1327   : > { %v6968_v46 = vpop.permute.xlu0 %2532 }
0x1328   : > { %6302 = vpow2.f32 %v2525_v45  ;;  %5924 = vmatpush3.msra.mxu1 %v6968_v46 }
0x1329   : > { %5933 = vmatprep.subr.mxu1 %v6452_v6 }
0x132b   : > { %v2683_v54 = vpop.permute.xlu0 %2682 }
0x1332   : > { %v6303_v47 = vpop.eup %6302 }
0x1333   : > { %v2527_v18 = vsel %vm893_vm2, %v6303_v47, 0.0 }
0x1334   : > { %2528 = vadd.xlane.f32.xlu1 %v2527_v18 }
0x1345   : > { %2684 = vrot.lane.b32.xlu1 %v6813_v49, %s7531_s0 }
0x13c1   : > { %v2529_v48 = vpop.xlane.xlu1 %2528 }
0x13c2   : > { %6304 = vrcp.f32 %v2529_v48 }
0x13c5   : > { %v6975_v51 = vpop.permute.xlu1 %2684 }
0x13cc   : > { %v6305_v33 = vpop.eup %6304 }
0x13cd   : > { %v2531_v50 = vmul.f32 %v6305_v33, %v6303_v47 }
0x13cf   : > { %5926 = vmatmul.mubr.msk.f32.vlgmr.msra.gmra.mrb[20].mxu1 %vm893_vm2, %v2531_v50 }
0x13d0   : > { %5934 = vmatpush3.xpose.msk.msra.mxu1 %vm893_vm2, %v6975_v51  ;;  %5935 = vmatprep.mubr.msk.f32.mxu1 %vm6451_vm0, %v6452_v6 }
0x13d1   : > { %5943 = vmatprep.subr.mxu1 %v6452_v6 }
0x13d3   : > { %5936 = vmatmul.mubr.msk.f32.vlgmr.msra.gmra.mrb[22].mxu1 %vm893_vm2, %v2683_v54 }
0x13d4   : > { %5945 = vmatprep.mubr.msk.f32.mxu1 %vm6451_vm0, %v6452_v6  ;;  %5944 = vmatpush3.msra.mxu1 %v7008_v20 }
0x13d5   : > { %6174 = vmatprep.subr.bf16.mxu1 %v6450_v3 }
0x14a2   : > { %v2604_v55 = vpop.f32.mrb[20].mxu1 }
0x14a3   : > { %v5927_v56 = vpop.f32.mrb[21].mxu1  ;;  %5931 = vmatmul.mubr.msk.f32.vlgmr.msra.gmra.mrb[24].mxu0 %vm893_vm2, %v2604_v55  ;;  %v716_v55 = vld [vmem:[%s7465_s14] sm:$0xff] }
0x14a4   : > { %5940 = vmatprep.mubr.msk.f32.mxu0 %vm6451_vm0, %v6452_v6  ;;  %v717_v56 = vld [vmem:[%s7465_s14 + $0x8] sm:$0xff] }
0x14a6   : > { %v2756_v59 = vpop.f32.mrb[22].mxu1 }
0x14a7   : > { %v2760_v60 = vmul.f32 0.35355338, %v2756_v59  ;;  %v5937_v61 = vpop.f32.mrb[23].mxu1  ;;  %v7033_v59 = vpack.c.bf16 %v717_v56, %v716_v55  ;;  %v7116_v55 = vld [vmem:[%s7468_s17] ss:$0 sm:$0xff] }
0x14a9   : > { %v2761_v62 = vadd.f32 %v2760_v60, %v6904_v36  ;;  %v719_v60 = vld [vmem:[%s7465_s14 + $0x18] sm:$0xff] }
0x14ab   : > { %v2762_v63 = vsel %vm893_vm2, %v2761_v62, -inf }
0x14ac   : > { %2763 = vmax.xlane.f32.xlu0 %v2762_v63  ;;  %v722_v63 = vld [vmem:[%s7467_s16 + $0x8] sm:$0xff] }
0x14c2   : > { %2773 = vrot.lane.b32.xlu0 %v6813_v49, %s7532_s26 }
0x1539   : > { %v2764_v1 = vpop.xlane.xlu0 %2763 }
0x153a   : > { %v2765_v5 = vsub.f32 %v2761_v62, %v2764_v1  ;;  %v721_v62 = vld [vmem:[%s7467_s16] sm:$0xff]  ;;  %v723_v1 = vld [vmem:[%s7467_s16 + $0x10] sm:$0xff] }
0x153c   : > { %v2766_v9 = vmul.f32 1.442695, %v2765_v5  ;;  %v7056_v5 = vpack.c.bf16 %v722_v63, %v721_v62 }
0x153d   : > { %v7000_v12 = vpop.permute.xlu0 %2773 }
0x153e   : > { %6306 = vpow2.f32 %v2766_v9  ;;  %5939 = vmatpush3.msra.mxu0 %v7000_v12  ;;  %v724_v9 = vld [vmem:[%s7467_s16 + $0x18] sm:$0xff] }
0x153f   : > { %6168 = vmatprep.subr.bf16.mxu0 %v6450_v3 }
0x1548   : > { %v6307_v13 = vpop.eup %6306 }
0x1549   : > { %v2768_v14 = vsel %vm893_vm2, %v6307_v13, 0.0 }
0x154a   : > { %2769 = vadd.xlane.f32.xlu1 %v2768_v14  ;;  %v725_v14 = vld [vmem:[%s7467_s16 + $0x20] sm:$0xff] }
0x1576   : > { %v2677_v23 = vpop.f32.mrb[24].mxu0 }
0x1577   : > { %v2681_v25 = vadd.f32 %v2677_v23, %v2438_v34  ;;  %v5932_v27 = vpop.f32.mrb[25].mxu0  ;;  %v7021_v34 = vld [vmem:[%s7464_s13] ss:$0 sm:$0xff]  ;;  %v726_v23 = vld [vmem:[%s7467_s16 + $0x28] sm:$0xff] }
0x15d7   : > { %v2770_v32 = vpop.xlane.xlu1 %2769 }
0x15d8   : > { %6308 = vrcp.f32 %v2770_v32 }
0x15e2   : > { %v6309_v35 = vpop.eup %6308 }
0x15e3   : > { %v2772_v37 = vmul.f32 %v6309_v35, %v6307_v13  ;;  %v7062_v13 = vpack.c.bf16 %v724_v9, %v723_v1 }
0x15e5   : > { %5941 = vmatmul.mubr.msk.f32.vlgmr.msra.gmra.mrb[26].mxu0 %vm893_vm2, %v2772_v37  ;;  %v2946_v37 = vsub.s32 2, %v6852_v15 }
0x15e6   : > { %5956 = vmatprep.mubr.msk.f32.mxu0 %vm6451_vm0, %v6452_v6  ;;  %6170 = vmatpush3.bf16.msra.mxu0 %v7033_v59 }
0x15e7   : > { %6171 = vmatprep.subr.bf16.mxu0 %v6450_v3 }
0x16b8   : > { %v2845_v38 = vpop.f32.mrb[26].mxu0 }
0x16b9   : > { %v5942_v39 = vpop.f32.mrb[27].mxu0  ;;  %5946 = vmatmul.mubr.msk.f32.vlgmr.msra.gmra.mrb[24].mxu1 %vm893_vm2, %v2845_v38  ;;  %v2951_v38 = vsub.s32 3, %v6852_v15 }
0x16ba   : > { %5975 = vmatprep.mubr.msk.f32.mxu1 %vm6451_vm0, %v6452_v6  ;;  %6176 = vmatpush3.bf16.msra.mxu1 %v7056_v5  ;;  %v7080_v39 = vrot.slane %v6858_v19, %v2946_v37 }
0x16bb   : > { %6177 = vmatprep.subr.bf16.mxu1 %v6450_v3 }
0x16be   : > { %6179 = vmatpush3.bf16.msra.mxu1 %v7062_v13 }
0x16bf   : > { %6180 = vmatprep.subr.bf16.mxu1 %v6450_v3 }
0x178c   : > { %v2918_v40 = vpop.f32.mrb[24].mxu1 }
0x178d   : > { %v2922_v42 = vadd.f32 %v2918_v40, %v2681_v25  ;;  %v5947_v43 = vpop.f32.mrb[25].mxu1  ;;  %v7072_v25 = vpack.c.bf16 %v726_v23, %v725_v14 }
0x178e   : > { %v7083_v43 = vrot.slane %v6858_v19, %v2951_v38  ;;  %v3130_v38 = vsub.s32 4, %v6852_v15 }
0x178f   : > { %v2929_v44 = vadd.f32 %v7021_v34, %v2922_v42  ;;  %6182 = vmatpush3.bf16.msra.mxu1 %v7072_v25 }
0x1790   : > { %6183 = vmatprep.subr.bf16.mxu1 %v6450_v3 }
0x1791   : > { %v2930_v45 = vadd.f32 %v2929_v44, %v6869_v29  ;;  %v718_v29 = vld [vmem:[%s7465_s14 + $0x10] sm:$0xff] }
0x1792   : > { %v7043_v61 = vpack.c.bf16 %v719_v60, %v718_v29 }
0x1793   : > { %v2931_v47 = vsel %vm737_vm1, %v2930_v45, 0.0 }
0x1794   : > { %2932 = vadd.xlane.f32.xlu1 %v2931_v47  ;;  %6173 = vmatpush3.bf16.msra.mxu0 %v7043_v61  ;;  %v727_v47 = vld [vmem:[%s7467_s16 + $0x30] sm:$0xff] }
0x1795   : > { %6186 = vmatprep.subr.bf16.mxu0 %v6450_v3 }
0x1821   : > { %v2933_v18 = vpop.xlane.xlu1 %2932 }
0x1822   : > { %v2934_v48 = vmul.f32 0.03125, %v2933_v18  ;;  %v728_v18 = vld [vmem:[%s7467_s16 + $0x38] sm:$0xff] }
0x1824   : > { %v2935_v33 = vsub.f32 %v2930_v45, %v2934_v48  ;;  %v7100_v48 = vpack.c.bf16 %v728_v18, %v727_v47 }
0x1826   : > { %v2936_v50 = vmul.f32 %v2935_v33, %v2935_v33  ;;  %6185 = vmatpush3.bf16.msra.mxu1 %v7100_v48 }
0x1827   : > { %5994 = vmatprep.subr.mxu1 %v6452_v6 }
0x1828   : > { %v2937_v54 = vsel %vm737_vm1, %v2936_v50, 0.0 }
0x1829   : > { %2938 = vadd.xlane.f32.xlu1 %v2937_v54 }
0x18b6   : > { %v2939_v27 = vpop.xlane.xlu1 %2938 }
0x18b7   : > { %v2940_v32 = vmul.f32 0.03125, %v2939_v27 }
0x18b9   : > { %v2941_v35 = vadd.f32 1e-05, %v2940_v32 }
0x18bb   : > { %6310 = vrsqrt.f32 %v2941_v35 }
0x18c5   : > { %v6311_v40 = vpop.eup %6310 }
0x18c6   : > { %v2943_v42 = vmul.f32 %v6311_v40, %v2935_v33  ;;  %v3135_v40 = vsub.s32 5, %v6852_v15 }
0x18c8   : > { %v2948_v44 = vmul.f32 %v7080_v39, %v2943_v42  ;;  %v7124_v42 = vrot.slane %v6858_v19, %v3130_v38  ;;  %v7127_v47 = vrot.slane %v6858_v19, %v3135_v40 }
0x18ca   : > { %v2953_v45 = vadd.f32 %v7083_v43, %v2948_v44 }
0x18cc   : > { %5957 = vmatmul.mubr.msk.f32.vlgmr.msra.gmra.mrb[28].mxu0 %vm737_vm1, %v2953_v45 }
0x18cd   : > { %6188 = vmatpush3.bf16.msra.mxu0 %v6631_v4  ;;  %5986 = vmatprep.mubr.msk.f32.mxu0 %vm6451_vm0, %v6452_v6  ;;  %v7107_v4 = vld [vmem:[%s7466_s15] ss:$0 sm:$0xff] }
0x18ce   : > { %6189 = vmatprep.subr.bf16.mxu0 %v6450_v3 }
0x18d1   : > { %6191 = vmatpush3.bf16.msra.mxu0 %v6643_v7 }
0x18d2   : > { %5989 = vmatprep.subr.mxu0 %v6452_v6 }
0x199f   : > { %v3029_v7 = vpop.f32.mrb[28].mxu0 }
0x19a0   : > { %v3030_v33 = vadd.f32 %v7107_v4, %v3029_v7  ;;  %v5958_v50 = vpop.f32.mrb[29].mxu0 }
0x19a2   : > { %v3033_v54 = vmax.f32 %v3030_v33, 0.0 }
0x19a4   : > { %5976 = vmatmul.mubr.msk.f32.vlgmr.msra.gmra.mrb[26].mxu1 %vm3040_vm3, %v3033_v54 }
0x19a5   : > { %5996 = vmatprep.mubr.msk.f32.mxu1 %vm6451_vm0, %v6452_v6 }
0x1a77   : > { %v3110_v56 = vpop.f32.mrb[26].mxu1 }
0x1a78   : > { %v3111_v29 = vadd.f32 %v7116_v55, %v3110_v56  ;;  %v5977_v60 = vpop.f32.mrb[27].mxu1 }
0x1a7a   : > { %v3114_v62 = vadd.f32 %v3111_v29, %v2953_v45 }
0x1a7c   : > { %v3115_v63 = vsel %vm737_vm1, %v3114_v62, 0.0 }
0x1a7d   : > { %3116 = vadd.xlane.f32.xlu1 %v3115_v63 }
0x1b0a   : > { %v3117_v1 = vpop.xlane.xlu1 %3116 }
0x1b0b   : > { %v3118_v9 = vmul.f32 0.03125, %v3117_v1 }
0x1b0d   : > { %v3119_v14 = vsub.f32 %v3114_v62, %v3118_v9 }
0x1b0f   : > { %v3120_v23 = vmul.f32 %v3119_v14, %v3119_v14 }
0x1b11   : > { %v3121_v27 = vsel %vm737_vm1, %v3120_v23, 0.0 }
0x1b12   : > { %3122 = vadd.xlane.f32.xlu0 %v3121_v27 }
0x1b9f   : > { %v3123_v32 = vpop.xlane.xlu0 %3122 }
0x1ba0   : > { %v3124_v35 = vmul.f32 0.03125, %v3123_v32 }
0x1ba2   : > { %v3125_v37 = vadd.f32 1e-05, %v3124_v35 }
0x1ba4   : > { %6312 = vrsqrt.f32 %v3125_v37 }
0x1bae   : > { %v6313_v44 = vpop.eup %6312 }
0x1baf   : > { %v3127_v45 = vmul.f32 %v6313_v44, %v3119_v14 }
0x1bb1   : > { %v3132_v18 = vmul.f32 %v7124_v42, %v3127_v45 }
0x1bb3   : > { %v7131_v7 = vadd.f32 %v7127_v47, %v3132_v18 }
0x1bb5   : > { %5987 = vmatmul.mubr.msk.f32.vlgmr.msra.gmra.mrb[30].mxu0 %vm737_vm1, %v7131_v7 }
0x1bb6   : > { %5991 = vmatprep.mubr.msk.f32.mxu0 %vm6451_vm0, %v6452_v6 }
0x1c88   : > { %v3207_v15 = vpop.f32.mrb[30].mxu0 }
0x1c89   : > { %v7138_v33 = vadd.f32 %v6685_v16, %v3207_v15  ;;  %v5988_v50 = vpop.f32.mrb[31].mxu0 }
0x1c8b   : > { %3212 = vrot.lane.b32.xlu1 %v7138_v33, %s7527_s23  ;;  %s7533_s23 = smov 56  }
0x1c8f   : > { %3379 = vrot.lane.b32.xlu1 %v7138_v33, %s7528_s5  ;;  %s7534_s5 = smov 64  }
0x1c93   : > { %3377 = vrot.lane.b32.xlu1 %v7138_v33, %s7524_s27 }
0x1cfd   : > { %v3213_v19 = vpop.permute.xlu1 %3212 }
0x1cfe   : > { %5990 = vmatpush3.xpose.msk.msra.mxu0 %vm893_vm2, %v3213_v19 }
0x1cff   : > { %5999 = vmatprep.subr.mxu0 %v6452_v6 }
0x1d01   : > { %5992 = vmatmul.mubr.msk.f32.vlgmr.msra.gmra.mrb[32].mxu0 %vm893_vm2, %v7138_v33  ;;  %v3380_v16 = vpop.permute.xlu1 %3379 }
0x1d02   : > { %6000 = vmatpush3.xpose.msk.msra.mxu0 %vm893_vm2, %v3380_v16  ;;  %6001 = vmatprep.mubr.msk.f32.mxu0 %vm6451_vm0, %v6452_v6 }
0x1d03   : > { %6009 = vmatprep.subr.mxu0 %v6452_v6 }
0x1d05   : > { %v3378_v54 = vpop.permute.xlu1 %3377 }
0x1d06   : > { %6002 = vmatmul.mubr.msk.f32.vlgmr.msra.gmra.mrb[34].mxu0 %vm893_vm2, %v3378_v54 }
0x1d07   : > { %6010 = vmatpush3.msra.mxu0 %v6739_v52  ;;  %6011 = vmatprep.mubr.msk.f32.mxu0 %vm6451_vm0, %v6452_v6 }
0x1d08   : > { %6019 = vmatprep.subr.mxu0 %v6452_v6 }
0x1dd4   : > { %v3284_v56 = vpop.f32.mrb[32].mxu0 }
0x1dd5   : > { %v3288_v29 = vmul.f32 0.35355338, %v3284_v56  ;;  %v5993_v60 = vpop.f32.mrb[33].mxu0 }
0x1dd7   : > { %v3289_v62 = vadd.f32 %v3288_v29, %v6712_v24 }
0x1dd9   : > { %v3451_v63 = vpop.f32.mrb[34].mxu0  ;;  %v3290_v1 = vsel %vm893_vm2, %v3289_v62, -inf }
0x1dda   : > { %v3455_v9 = vmul.f32 0.35355338, %v3451_v63  ;;  %3291 = vmax.xlane.f32.xlu1 %v3290_v1  ;;  %v6003_v14 = vpop.f32.mrb[35].mxu0 }
0x1ddc   : > { %v3456_v23 = vadd.f32 %v3455_v9, %v6712_v24 }
0x1dde   : > { %v3457_v52 = vsel %vm893_vm2, %v3456_v23, -inf }
0x1ddf   : > { %3458 = vmax.xlane.f32.xlu0 %v3457_v52 }
0x1deb   : > { %3468 = vrot.lane.b32.xlu1 %v7138_v33, %s7533_s23 }
0x1e67   : > { %v3292_v27 = vpop.xlane.xlu1 %3291 }
0x1e68   : > { %v3293_v32 = vsub.f32 %v3289_v62, %v3292_v27 }
0x1e6a   : > { %v3294_v35 = vmul.f32 1.442695, %v3293_v32 }
0x1e6b   : > { %v3469_v56 = vpop.permute.xlu1 %3468 }
0x1e6c   : > { %6314 = vpow2.f32 %v3294_v35  ;;  %v3459_v37 = vpop.xlane.xlu0 %3458 }
0x1e6d   : > { %v3460_v38 = vsub.f32 %v3456_v23, %v3459_v37 }
0x1e6f   : > { %v3461_v40 = vmul.f32 1.442695, %v3460_v38 }
0x1e71   : > { %6316 = vpow2.f32 %v3461_v40 }
0x1e76   : > { %v6315_v44 = vpop.eup %6314 }
0x1e77   : > { %v3296_v45 = vsel %vm893_vm2, %v6315_v44, 0.0 }
0x1e78   : > { %3297 = vadd.xlane.f32.xlu0 %v3296_v45 }
0x1e7b   : > { %v6317_v18 = vpop.eup %6316 }
0x1e7c   : > { %v3463_v24 = vsel %vm893_vm2, %v6317_v18, 0.0 }
0x1e7d   : > { %3464 = vadd.xlane.f32.xlu0 %v3463_v24 }
0x1e93   : > { %3301 = vrot.lane.b32.xlu0 %v7138_v33, %s7534_s5 }
0x1e97   : > { %3692 = vrot.lane.b32.xlu0 %v7138_v33, %s7530_s21  ;;  %s7535_s21 = smov 48  }
0x1e9b   : > { %3690 = vrot.lane.b32.xlu0 %v7138_v33, %s7526_s3 }
0x1f05   : > { %v3298_v15 = vpop.xlane.xlu0 %3297 }
0x1f06   : > { %6318 = vrcp.f32 %v3298_v15 }
0x1f0a   : > { %v3465_v50 = vpop.xlane.xlu0 %3464 }
0x1f0b   : > { %6320 = vrcp.f32 %v3465_v50 }
0x1f0e   : > { %v3302_v19 = vpop.permute.xlu0 %3301 }
0x1f0f   : > { %5995 = vmatpush3.msra.mxu1 %v3302_v19 }
0x1f10   : > { %v6319_v16 = vpop.eup %6318  ;;  %6004 = vmatprep.subr.mxu1 %v6452_v6 }
0x1f11   : > { %v3300_v54 = vmul.f32 %v6319_v16, %v6315_v44  ;;  %v6352_v44 = vld [vmem:[%s6709_s30] sm:$0xff]  ;;  %s7536_s30 = smov 40  }
0x1f12   : > { %v3693_v1 = vpop.permute.xlu0 %3692 }
0x1f13   : > { %5997 = vmatmul.mubr.msk.f32.vlgmr.msra.gmra.mrb[28].mxu1 %vm893_vm2, %v3300_v54 }
0x1f14   : > { %6005 = vmatpush3.msra.mxu1 %v3469_v56  ;;  %6006 = vmatprep.mubr.msk.f32.mxu1 %vm6451_vm0, %v6452_v6 }
0x1f15   : > { %v6321_v29 = vpop.eup %6320  ;;  %6014 = vmatprep.subr.mxu1 %v6452_v6 }
0x1f16   : > { %v3467_v60 = vmul.f32 %v6321_v29, %v6317_v18 }
0x1f18   : > { %6007 = vmatmul.mubr.msk.f32.vlgmr.msra.gmra.mrb[30].mxu1 %vm893_vm2, %v3467_v60 }
0x1f19   : > { %6015 = vmatpush3.msra.mxu1 %v6747_v57  ;;  %6016 = vmatprep.mubr.msk.f32.mxu1 %vm6451_vm0, %v6452_v6  ;;  %v3691_v57 = vpop.permute.xlu0 %3690 }
0x1f1a   : > { %6024 = vmatprep.subr.mxu1 %v6452_v6 }
0x1fe6   : > { %v3373_v62 = vpop.f32.mrb[28].mxu1 }
0x1fe7   : > { %v5998_v63 = vpop.f32.mrb[29].mxu1  ;;  %6017 = vmatmul.mubr.msk.f32.vlgmr.msra.gmra.mrb[32].mxu1 %vm893_vm2, %v3373_v62 }
0x1fe8   : > { %6026 = vmatprep.mubr.msk.f32.mxu1 %vm6451_vm0, %v6452_v6 }
0x1feb   : > { %v3540_v9 = vpop.f32.mrb[30].mxu1 }
0x1fec   : > { %v6008_v14 = vpop.f32.mrb[31].mxu1  ;;  %6012 = vmatmul.mubr.msk.f32.vlgmr.msra.gmra.mrb[36].mxu0 %vm893_vm2, %v3540_v9 }
0x1fed   : > { %6020 = vmatpush3.xpose.msk.msra.mxu0 %vm893_vm2, %v3693_v1  ;;  %6021 = vmatprep.mubr.msk.f32.mxu0 %vm6451_vm0, %v6452_v6 }
0x1fee   : > { %6029 = vmatprep.subr.mxu0 %v6452_v6 }
0x1ff0   : > { %6022 = vmatmul.mubr.msk.f32.vlgmr.msra.gmra.mrb[38].mxu0 %vm893_vm2, %v3691_v57 }
0x1ff1   : > { %6030 = vmatpush3.msra.mxu0 %v6786_v28  ;;  %6031 = vmatprep.mubr.msk.f32.mxu0 %vm6451_vm0, %v6452_v6 }
0x1ff2   : > { %6039 = vmatprep.subr.mxu0 %v6452_v6 }
0x20ba   : > { %v3686_v23 = vpop.f32.mrb[32].mxu1 }
0x20bb   : > { %v6018_v52 = vpop.f32.mrb[33].mxu1 }
0x20bf   : > { %v3613_v27 = vpop.f32.mrb[36].mxu0 }
0x20c0   : > { %v3687_v32 = vadd.f32 %v3686_v23, %v3613_v27  ;;  %v6013_v35 = vpop.f32.mrb[37].mxu0 }
0x20c3   : > { %v3764_v37 = vpop.f32.mrb[38].mxu0 }
0x20c4   : > { %v3768_v38 = vmul.f32 0.35355338, %v3764_v37  ;;  %v6023_v40 = vpop.f32.mrb[39].mxu0 }
0x20c6   : > { %v3769_v45 = vadd.f32 %v6352_v44, %v3768_v38 }
0x20c8   : > { %v3770_v18 = vsel %vm893_vm2, %v3769_v45, -inf }
0x20c9   : > { %3771 = vmax.xlane.f32.xlu0 %v3770_v18 }
0x20df   : > { %3781 = vrot.lane.b32.xlu0 %v7138_v33, %s7535_s21 }
0x20e3   : > { %3931 = vrot.lane.b32.xlu0 %v7138_v33, %s7531_s0 }
0x2156   : > { %v3772_v28 = vpop.xlane.xlu0 %3771 }
0x2157   : > { %v3773_v24 = vsub.f32 %v3769_v45, %v3772_v28 }
0x2159   : > { %v3774_v15 = vmul.f32 1.442695, %v3773_v24 }
0x215a   : > { %v3782_v50 = vpop.permute.xlu0 %3781 }
0x215b   : > { %6322 = vpow2.f32 %v3774_v15  ;;  %6025 = vmatpush3.msra.mxu1 %v3782_v50 }
0x215c   : > { %6034 = vmatprep.subr.mxu1 %v6452_v6 }
0x215e   : > { %v3932_v62 = vpop.permute.xlu0 %3931 }
0x2165   : > { %v6323_v19 = vpop.eup %6322 }
0x2166   : > { %v3776_v16 = vsel %vm893_vm2, %v6323_v19, 0.0 }
0x2167   : > { %3777 = vadd.xlane.f32.xlu1 %v3776_v16 }
0x2178   : > { %3933 = vrot.lane.b32.xlu1 %v7138_v33, %s7532_s26 }
0x21f4   : > { %v3778_v54 = vpop.xlane.xlu1 %3777 }
0x21f5   : > { %6324 = vrcp.f32 %v3778_v54 }
0x21f8   : > { %v3934_v60 = vpop.permute.xlu1 %3933 }
0x21ff   : > { %v6325_v56 = vpop.eup %6324 }
0x2200   : > { %v3780_v29 = vmul.f32 %v6325_v56, %v6323_v19 }
0x2202   : > { %6027 = vmatmul.mubr.msk.f32.vlgmr.msra.gmra.mrb[34].mxu1 %vm893_vm2, %v3780_v29 }
0x2203   : > { %6035 = vmatpush3.xpose.msk.msra.mxu1 %vm893_vm2, %v3934_v60  ;;  %6036 = vmatprep.mubr.msk.f32.mxu1 %vm6451_vm0, %v6452_v6 }
0x2204   : > { %6044 = vmatprep.subr.mxu1 %v6452_v6 }
0x2206   : > { %6037 = vmatmul.mubr.msk.f32.vlgmr.msra.gmra.mrb[36].mxu1 %vm893_vm2, %v3932_v62 }
0x2207   : > { %6045 = vmatpush3.msra.mxu1 %v6801_v41  ;;  %6046 = vmatprep.mubr.msk.f32.mxu1 %vm6451_vm0, %v6452_v6 }
0x2208   : > { %6060 = vmatprep.subr.mxu1 %v6452_v6 }
0x22d5   : > { %v3853_v63 = vpop.f32.mrb[34].mxu1 }
0x22d6   : > { %v6028_v1 = vpop.f32.mrb[35].mxu1  ;;  %6032 = vmatmul.mubr.msk.f32.vlgmr.msra.gmra.mrb[40].mxu0 %vm893_vm2, %v3853_v63 }
0x22d7   : > { %6041 = vmatprep.mubr.msk.f32.mxu0 %vm6451_vm0, %v6452_v6 }
0x22d9   : > { %v4005_v9 = vpop.f32.mrb[36].mxu1 }
0x22da   : > { %v4009_v14 = vmul.f32 0.35355338, %v4005_v9  ;;  %v6038_v57 = vpop.f32.mrb[37].mxu1 }
0x22dc   : > { %v4010_v23 = vadd.f32 %v6352_v44, %v4009_v14 }
0x22de   : > { %v4011_v52 = vsel %vm893_vm2, %v4010_v23, -inf }
0x22df   : > { %4012 = vmax.xlane.f32.xlu0 %v4011_v52 }
0x22f5   : > { %4022 = vrot.lane.b32.xlu0 %v7138_v33, %s7536_s30 }
0x236c   : > { %v4013_v41 = vpop.xlane.xlu0 %4012 }
0x236d   : > { %v4014_v27 = vsub.f32 %v4010_v23, %v4013_v41 }
0x236f   : > { %v4015_v35 = vmul.f32 1.442695, %v4014_v27 }
0x2370   : > { %v4023_v37 = vpop.permute.xlu0 %4022 }
0x2371   : > { %6326 = vpow2.f32 %v4015_v35  ;;  %6040 = vmatpush3.msra.mxu0 %v4023_v37 }
0x2372   : > { %6192 = vmatprep.subr.bf16.mxu0 %v6450_v3 }
0x237b   : > { %v6327_v38 = vpop.eup %6326 }
0x237c   : > { %v4017_v40 = vsel %vm893_vm2, %v6327_v38, 0.0 }
0x237d   : > { %4018 = vadd.xlane.f32.xlu1 %v4017_v40 }
0x23a9   : > { %v3926_v45 = vpop.f32.mrb[40].mxu0 }
0x23aa   : > { %v3930_v44 = vadd.f32 %v3926_v45, %v3687_v32  ;;  %v6033_v18 = vpop.f32.mrb[41].mxu0 }
0x240a   : > { %v4019_v28 = vpop.xlane.xlu1 %4018 }
0x240b   : > { %6328 = vrcp.f32 %v4019_v28 }
0x2415   : > { %v6329_v24 = vpop.eup %6328 }
0x2416   : > { %v4021_v15 = vmul.f32 %v6329_v24, %v6327_v38 }
0x2418   : > { %6042 = vmatmul.mubr.msk.f32.vlgmr.msra.gmra.mrb[42].mxu0 %vm893_vm2, %v4021_v15 }
0x2419   : > { %6194 = vmatpush3.bf16.msra.mxu0 %v6838_v2  ;;  %6057 = vmatprep.mubr.msk.f32.mxu0 %vm6451_vm0, %v6452_v6 }
0x241a   : > { %6195 = vmatprep.subr.bf16.mxu0 %v6450_v3 }
0x241d   : > { %6197 = vmatpush3.bf16.msra.mxu0 %v6848_v10 }
0x241e   : > { %6070 = vmatprep.subr.mxu0 %v6452_v6 }
0x24eb   : > { %v4094_v33 = vpop.f32.mrb[42].mxu0 }
0x24ec   : > { %v6043_v32 = vpop.f32.mrb[43].mxu0  ;;  %6047 = vmatmul.mubr.msk.f32.vlgmr.msra.gmra.mrb[38].mxu1 %vm893_vm2, %v4094_v33 }
0x24ed   : > { %6061 = vmatpush3.xpose.msk.msra.mxu1 %vm893_vm2, %v6813_v49  ;;  %6062 = vmatprep.mubr.msk.f32.mxu1 %vm6451_vm0, %v6452_v6 }
0x24ee   : > { %6065 = vmatprep.subr.mxu1 %v6452_v6 }
0x25bf   : > { %v4167_v2 = vpop.f32.mrb[38].mxu1 }
0x25c0   : > { %v4171_v50 = vadd.f32 %v4167_v2, %v3930_v44  ;;  %v6048_v19 = vpop.f32.mrb[39].mxu1 }
0x25c2   : > { %v4172_v16 = vadd.f32 %v6824_v53, %v4171_v50 }
0x25c4   : > { %v4173_v10 = vadd.f32 %v4172_v16, %v7131_v7 }
0x25c6   : > { %v4174_v54 = vsel %vm737_vm1, %v4173_v10, 0.0 }
0x25c7   : > { %4175 = vadd.xlane.f32.xlu1 %v4174_v54 }
0x2654   : > { %v4176_v56 = vpop.xlane.xlu1 %4175 }
0x2655   : > { %v4177_v29 = vmul.f32 0.03125, %v4176_v56 }
0x2657   : > { %v4178_v60 = vsub.f32 %v4173_v10, %v4177_v29 }
0x2659   : > { %v4179_v62 = vmul.f32 %v4178_v60, %v4178_v60 }
0x265b   : > { %v4180_v49 = vsel %vm737_vm1, %v4179_v62, 0.0 }
0x265c   : > { %4181 = vadd.xlane.f32.xlu1 %v4180_v49 }
0x26e9   : > { %v4182_v63 = vpop.xlane.xlu1 %4181 }
0x26ea   : > { %v4183_v1 = vmul.f32 0.03125, %v4182_v63 }
0x26ec   : > { %v4184_v9 = vadd.f32 1e-05, %v4183_v1 }
0x26ee   : > { %6330 = vrsqrt.f32 %v4184_v9 }
0x26f8   : > { %v6331_v14 = vpop.eup %6330 }
0x26f9   : > { %v4186_v57 = vmul.f32 %v6331_v14, %v4178_v60 }
0x26fb   : > { %v4187_v53 = vmul.f32 %v4186_v57, %v6862_v21 }
0x26fd   : > { %v7243_v7 = vadd.f32 %v4187_v53, %v6865_v26  ;;  %v6353_v53 = vld [vmem:[%s6901_s25] sm:$0xff] }
0x26ff   : > { %6058 = vmatmul.mubr.msk.f32.vlgmr.msra.gmra.mrb[44].mxu0 %vm737_vm1, %v7243_v7 }
0x2700   : > { %6071 = vmatpush3.xpose.msk.msra.mxu0 %vm893_vm2, %v6871_v30  ;;  %6072 = vmatprep.mubr.msk.f32.mxu0 %vm6451_vm0, %v6452_v6 }
0x2701   : > { %6080 = vmatprep.subr.mxu0 %v6452_v6 }
0x27d2   : > { %v4258_v23 = vpop.f32.mrb[44].mxu0 }
0x27d3   : > { %v7253_v52 = vadd.f32 %v6883_v31, %v4258_v23  ;;  %v6059_v41 = vpop.f32.mrb[45].mxu0 }
0x27d5   : > { %4422 = vrot.lane.b32.xlu1 %v7253_v52, %s7524_s27  ;;  %6063 = vmatmul.mubr.msk.f32.vlgmr.msra.gmra.mrb[40].mxu1 %vm893_vm2, %v7253_v52  ;;  %s7277_s27 = sand.u32 1, %s6440_s22  }
0x27d6   : > { %6066 = vmatpush3.msra.mxu1 %v6915_v58  ;;  %6067 = vmatprep.mubr.msk.f32.mxu1 %vm6451_vm0, %v6452_v6  ;;  %s5550_s26 = sshll.u32 %s7277_s27, 5  ;;  %s5389_s12 = scalar_lea.sflag [#allocation5], %s7277_s27 }
0x27d7   : > { %6075 = vmatprep.subr.mxu1 %v6452_v6  ;;  %s7281_s9 = scalar_lea.vmem [#allocation4], %s5550_s26 }
0x27d8   : > { %s5415_s25 = sshll.u32 %s7281_s9, 4  ;;  %s7369_s25 = int_to_ptr.vmem [resolvable:$true] %s5415_s25 }
0x27d9   : > { %s6354_s7 = scalar_lea.vmem %s7369_s25, 512  ;;  %p6361_p0 = scmp.lt.s32.totalorder %s7369_s25, %s6359_s6 }
0x27da   : > { %p6355_p11 = scmp.ne.s32.totalorder %s7369_s25, %s6354_s7  ;;  %p6362_p1 = scmp.lt.s32.totalorder %s6360_s28, %s6354_s7 }
0x27dc   : > { %p6356_p12 = pnand %p6355_p11, %p6611_p5  ;;  %p6363_p2 = por %p6362_p1, %p6361_p0 }
0x27de   : > { %p6357_p13 = pneg %p6356_p12 }
0x27e0   : > { %p6364_p3 = pnand %p6363_p2, %p6357_p13 }
0x2847   : > { %v4423_v21 = vpop.permute.xlu1 %4422 }
0x2848   : > { %6073 = vmatmul.mubr.msk.f32.vlgmr.msra.gmra.mrb[46].mxu0 %vm893_vm2, %v4423_v21 }
0x2849   : > { %6081 = vmatpush3.msra.mxu0 %v6930_v0  ;;  %6082 = vmatprep.mubr.msk.f32.mxu0 %vm6451_vm0, %v6452_v6 }
0x284a   : > { %6090 = vmatprep.subr.mxu0 %v6452_v6 }
0x28a8   : > { %v4331_v26 = vpop.f32.mrb[40].mxu1 }
0x28a9   : > { %v4335_v30 = vmul.f32 0.35355338, %v4331_v26  ;;  %v6064_v31 = vpop.f32.mrb[41].mxu1 }
0x28ab   : > { %v4336_v58 = vadd.f32 %v4335_v30, %v6904_v36 }
0x28ad   : > { %v4337_v27 = vsel %vm893_vm2, %v4336_v58, -inf }
0x28ae   : > { %4338 = vmax.xlane.f32.xlu0 %v4337_v27 }
0x291b   : > { %v4492_v35 = vpop.f32.mrb[46].mxu0 }
0x291c   : > { %v4496_v37 = vmul.f32 0.35355338, %v4492_v35  ;;  %v6074_v38 = vpop.f32.mrb[47].mxu0 }
0x291e   : > { %v4497_v40 = vadd.f32 %v4496_v37, %v6904_v36 }
0x2920   : > { %v4498_v0 = vsel %vm893_vm2, %v4497_v40, -inf }
0x2921   : > { %4499 = vmax.xlane.f32.xlu1 %v4498_v0 }
0x293b   : > { %v4339_v45 = vpop.xlane.xlu0 %4338 }
0x293c   : > { %v4340_v44 = vsub.f32 %v4336_v58, %v4339_v45 }
0x293e   : > { %v4341_v18 = vmul.f32 1.442695, %v4340_v44 }
0x2940   : > { %6332 = vpow2.f32 %v4341_v18 }
0x294a   : > { %v6333_v28 = vpop.eup %6332 }
0x294b   : > { %v4343_v24 = vsel %vm893_vm2, %v6333_v28, 0.0 }
0x294c   : > { %4344 = vadd.xlane.f32.xlu0 %v4343_v24 }
0x29ae   : > { %v4500_v15 = vpop.xlane.xlu1 %4499 }
0x29af   : > { %v4501_v33 = vsub.f32 %v4497_v40, %v4500_v15 }
0x29b1   : > { %v4502_v32 = vmul.f32 1.442695, %v4501_v33 }
0x29b3   : > { %6334 = vpow2.f32 %v4502_v32 }
0x29bd   : > { %v6335_v2 = vpop.eup %6334 }
0x29be   : > { %v4504_v50 = vsel %vm893_vm2, %v6335_v2, 0.0 }
0x29bf   : > { %4505 = vadd.xlane.f32.xlu0 %v4504_v50 }
0x29d5   : > { %4730 = vrot.lane.b32.xlu0 %v7253_v52, %s7526_s3  ;;  %s5645_s3 = sshll.u32 %s6594_s2, 9 }
0x29d6   : > { %s7374_s11 = scalar_lea.hbm %s7471_s20, %s5645_s3 }
0x29d9   : > { %v4345_v36 = vpop.xlane.xlu0 %4344 }
0x29da   : > { %6336 = vrcp.f32 %v4345_v36 }
0x29e4   : > { %v6337_v19 = vpop.eup %6336 }
0x29e5   : > { %v4347_v16 = vmul.f32 %v6337_v19, %v6333_v28 }
0x29e7   : > { %6068 = vmatmul.mubr.msk.f32.vlgmr.msra.gmra.mrb[42].mxu1 %vm893_vm2, %v4347_v16  ;;  %4348 = vst.msk [vmem:[%s7281_s9] sm:$0xff] %vm893_vm2, %v4347_v16 }
0x29e8   : > { %6076 = vmatpush3.msra.mxu1 %v6934_v8  ;;  %6077 = vmatprep.mubr.msk.f32.mxu1 %vm6451_vm0, %v6452_v6 }
0x29e9   : > { %6085 = vmatprep.subr.mxu1 %v6452_v6 }
0x2a4c   : > { %v4506_v10 = vpop.xlane.xlu0 %4505 }
0x2a4d   : > { %6338 = vrcp.f32 %v4506_v10 }
0x2a57   : > { %v6339_v54 = vpop.eup %6338 }
0x2a58   : > { %v4508_v56 = vmul.f32 %v6339_v54, %v6335_v2 }
0x2a5a   : > { %6078 = vmatmul.mubr.msk.f32.vlgmr.msra.gmra.mrb[44].mxu1 %vm893_vm2, %v4508_v56  ;;  %5622 = vst.msk [vmem:[%s7281_s9 + $0x8] sm:$0xff] %vm893_vm2, %v4508_v56 }
0x2a5b   : > { %6086 = vmatpush3.msra.mxu1 %v6941_v11  ;;  %6087 = vmatprep.mubr.msk.f32.mxu1 %vm6451_vm0, %v6452_v6  ;;  %v4731_v11 = vpop.permute.xlu0 %4730 }
0x2a5c   : > { %6095 = vmatprep.subr.mxu1 %v6452_v6 }
0x2aba   : > { %v4418_v8 = vpop.f32.mrb[42].mxu1 }
0x2abb   : > { %v6069_v29 = vpop.f32.mrb[43].mxu1  ;;  %6088 = vmatmul.mubr.msk.f32.vlgmr.msra.gmra.mrb[46].mxu1 %vm893_vm2, %v4418_v8 }
0x2abc   : > { %6096 = vmatpush3.msra.mxu1 %v6968_v46  ;;  %6097 = vmatprep.mubr.msk.f32.mxu1 %vm6451_vm0, %v6452_v6 }
0x2abd   : > { %6105 = vmatprep.subr.mxu1 %v6452_v6 }
0x2b2d   : > { %v4580_v60 = vpop.f32.mrb[44].mxu1 }
0x2b2e   : > { %v6079_v62 = vpop.f32.mrb[45].mxu1  ;;  %6083 = vmatmul.mubr.msk.f32.vlgmr.msra.gmra.mrb[48].mxu0 %vm893_vm2, %v4580_v60 }
0x2b2f   : > { %6091 = vmatpush3.xpose.msk.msra.mxu0 %vm893_vm2, %v6951_v17  ;;  %6092 = vmatprep.mubr.msk.f32.mxu0 %vm6451_vm0, %v6452_v6 }
0x2b30   : > { %6100 = vmatprep.subr.mxu0 %v6452_v6 }
0x2b32   : > { %6093 = vmatmul.mubr.msk.f32.vlgmr.msra.gmra.mrb[50].mxu0 %vm893_vm2, %v4731_v11 }
0x2b33   : > { %6101 = vmatpush3.msra.mxu0 %v6989_v22  ;;  %6102 = vmatprep.mubr.msk.f32.mxu0 %vm6451_vm0, %v6452_v6 }
0x2b34   : > { %6110 = vmatprep.subr.mxu0 %v6452_v6 }
0x2b8e   : > { %v4726_v46 = vpop.f32.mrb[46].mxu1 }
0x2b8f   : > { %v6089_v49 = vpop.f32.mrb[47].mxu1 }
0x2c01   : > { %v4653_v63 = vpop.f32.mrb[48].mxu0 }
0x2c02   : > { %v4727_v17 = vadd.f32 %v4726_v46, %v4653_v63  ;;  %v6084_v1 = vpop.f32.mrb[49].mxu0 }
0x2c05   : > { %v4800_v9 = vpop.f32.mrb[50].mxu0 }
0x2c06   : > { %v4804_v14 = vmul.f32 0.35355338, %v4800_v9  ;;  %v6094_v57 = vpop.f32.mrb[51].mxu0 }
0x2c08   : > { %v4805_v23 = vadd.f32 %v6353_v53, %v4804_v14 }
0x2c0a   : > { %v4806_v41 = vsel %vm893_vm2, %v4805_v23, -inf }
0x2c0b   : > { %4807 = vmax.xlane.f32.xlu1 %v4806_v41 }
0x2c98   : > { %v4808_v22 = vpop.xlane.xlu1 %4807 }
0x2c99   : > { %v4809_v21 = vsub.f32 %v4805_v23, %v4808_v22 }
0x2c9b   : > { %v4810_v26 = vmul.f32 1.442695, %v4809_v21 }
0x2c9d   : > { %6340 = vpow2.f32 %v4810_v26 }
0x2ca7   : > { %v6341_v30 = vpop.eup %6340 }
0x2ca8   : > { %v4812_v31 = vsel %vm893_vm2, %v6341_v30, 0.0 }
0x2ca9   : > { %4813 = vadd.xlane.f32.xlu1 %v4812_v31 }
0x2cba   : > { %4966 = vrot.lane.b32.xlu1 %v7253_v52, %s7531_s0 }
0x2d36   : > { %v4814_v58 = vpop.xlane.xlu1 %4813 }
0x2d37   : > { %6342 = vrcp.f32 %v4814_v58 }
0x2d3a   : > { %v4967_v37 = vpop.permute.xlu1 %4966 }
0x2d41   : > { %v6343_v27 = vpop.eup %6342 }
0x2d42   : > { %v4816_v35 = vmul.f32 %v6343_v27, %v6341_v30 }
0x2d44   : > { %6098 = vmatmul.mubr.msk.f32.vlgmr.msra.gmra.mrb[48].mxu1 %vm893_vm2, %v4816_v35  ;;  %5628 = vst.msk [vmem:[%s7281_s9 + $0x10] sm:$0xff] %vm893_vm2, %v4816_v35 }
0x2d45   : > { %6106 = vmatpush3.xpose.msk.msra.mxu1 %vm893_vm2, %v6975_v51  ;;  %6107 = vmatprep.mubr.msk.f32.mxu1 %vm6451_vm0, %v6452_v6 }
0x2d46   : > { %6115 = vmatprep.subr.mxu1 %v6452_v6 }
0x2d48   : > { %6108 = vmatmul.mubr.msk.f32.vlgmr.msra.gmra.mrb[50].mxu1 %vm893_vm2, %v4967_v37 }
0x2d49   : > { %6116 = vmatpush3.msra.mxu1 %v7008_v20  ;;  %6117 = vmatprep.mubr.msk.f32.mxu1 %vm6451_vm0, %v6452_v6 }
0x2d4a   : > { %6204 = vmatprep.subr.bf16.mxu1 %v6450_v3 }
0x2e17   : > { %v4888_v52 = vpop.f32.mrb[48].mxu1 }
0x2e18   : > { %v6099_v38 = vpop.f32.mrb[49].mxu1  ;;  %6103 = vmatmul.mubr.msk.f32.vlgmr.msra.gmra.mrb[52].mxu0 %vm893_vm2, %v4888_v52 }
0x2e19   : > { %6111 = vmatpush3.msra.mxu0 %v7000_v12  ;;  %6112 = vmatprep.mubr.msk.f32.mxu0 %vm6451_vm0, %v6452_v6 }
0x2e1a   : > { %6198 = vmatprep.subr.bf16.mxu0 %v6450_v3 }
0x2e1b   : > { %v5036_v51 = vpop.f32.mrb[50].mxu1 }
0x2e1c   : > { %v5040_v40 = vmul.f32 0.35355338, %v5036_v51  ;;  %v6109_v0 = vpop.f32.mrb[51].mxu1 }
0x2e1e   : > { %v5041_v20 = vadd.f32 %v6353_v53, %v5040_v40 }
0x2e20   : > { %v5042_v45 = vsel %vm893_vm2, %v5041_v20, -inf }
0x2e21   : > { %5043 = vmax.xlane.f32.xlu0 %v5042_v45 }
0x2eae   : > { %v5044_v44 = vpop.xlane.xlu0 %5043 }
0x2eaf   : > { %v5045_v18 = vsub.f32 %v5041_v20, %v5044_v44 }
0x2eb1   : > { %v5046_v28 = vmul.f32 1.442695, %v5045_v18 }
0x2eb3   : > { %6344 = vpow2.f32 %v5046_v28 }
0x2ebd   : > { %v6345_v24 = vpop.eup %6344 }
0x2ebe   : > { %v5048_v12 = vsel %vm893_vm2, %v6345_v24, 0.0 }
0x2ebf   : > { %5049 = vadd.xlane.f32.xlu1 %v5048_v12 }
0x2eeb   : > { %v4961_v15 = vpop.f32.mrb[52].mxu0 }
0x2eec   : > { %v4965_v33 = vadd.f32 %v4961_v15, %v4727_v17  ;;  %v6104_v32 = vpop.f32.mrb[53].mxu0 }
0x2f4c   : > { %v5050_v2 = vpop.xlane.xlu1 %5049 }
0x2f4d   : > { %6346 = vrcp.f32 %v5050_v2 }
0x2f57   : > { %v6347_v50 = vpop.eup %6346 }
0x2f58   : > { %v5052_v36 = vmul.f32 %v6347_v50, %v6345_v24 }
0x2f5a   : > { %6113 = vmatmul.mubr.msk.f32.vlgmr.msra.gmra.mrb[54].mxu0 %vm893_vm2, %v5052_v36  ;;  %5633 = vst.msk [vmem:[%s7281_s9 + $0x18] sm:$0xff] %vm893_vm2, %v5052_v36 }
0x2f5b   : > { %6200 = vmatpush3.bf16.msra.mxu0 %v7033_v59  ;;  %6128 = vmatprep.mubr.msk.f32.mxu0 %vm6451_vm0, %v6452_v6 }
0x2f5c   : > { %6201 = vmatprep.subr.bf16.mxu0 %v6450_v3 }
0x2f5f   : > { %6203 = vmatpush3.bf16.msra.mxu0 %v7043_v61 }
0x302d   : > { %v5124_v19 = vpop.f32.mrb[54].mxu0 }
0x302e   : > { %v6114_v16 = vpop.f32.mrb[55].mxu0  ;;  %6118 = vmatmul.mubr.msk.f32.vlgmr.msra.gmra.mrb[52].mxu1 %vm893_vm2, %v5124_v19 }
0x302f   : > { %6206 = vmatpush3.bf16.msra.mxu1 %v7056_v5  ;;  %6147 = vmatprep.mubr.msk.f32.mxu1 %vm6451_vm0, %v6452_v6 }
0x3030   : > { %6207 = vmatprep.subr.bf16.mxu1 %v6450_v3 }
0x3033   : > { %6209 = vmatpush3.bf16.msra.mxu1 %v7062_v13 }
0x3034   : > { %6210 = vmatprep.subr.bf16.mxu1 %v6450_v3 }
0x3037   : > { %6212 = vmatpush3.bf16.msra.mxu1 %v7072_v25 }
0x3038   : > { %6213 = vmatprep.subr.bf16.mxu1 %v6450_v3 }
0x303b   : > { %6215 = vmatpush3.bf16.msra.mxu1 %v7100_v48 }
0x3101   : > { %v5197_v59 = vpop.f32.mrb[52].mxu1 }
0x3102   : > { %v5201_v61 = vadd.f32 %v5197_v59, %v4965_v33  ;;  %v6119_v10 = vpop.f32.mrb[53].mxu1 }
0x3104   : > { %v5202_v5 = vadd.f32 %v7021_v34, %v5201_v61 }
0x3106   : > { %v5203_v54 = vadd.f32 %v5202_v5, %v7243_v7 }
0x3108   : > { %v5204_v6 = vsel %vm737_vm1, %v5203_v54, 0.0 }
0x3109   : > { %5205 = vadd.xlane.f32.xlu0 %v5204_v6 }
0x3196   : > { %v5206_v56 = vpop.xlane.xlu0 %5205 }
0x3197   : > { %v5207_v13 = vmul.f32 0.03125, %v5206_v56 }
0x3199   : > { %v5208_v8 = vsub.f32 %v5203_v54, %v5207_v13 }
0x319b   : > { %v5209_v29 = vmul.f32 %v5208_v8, %v5208_v8 }
0x319d   : > { %v5210_v25 = vsel %vm737_vm1, %v5209_v29, 0.0 }
0x319e   : > { %5211 = vadd.xlane.f32.xlu0 %v5210_v25 }
0x322b   : > { %v5212_v3 = vpop.xlane.xlu0 %5211 }
0x322c   : > { %v5213_v60 = vmul.f32 0.03125, %v5212_v3 }
0x322e   : > { %v5214_v48 = vadd.f32 1e-05, %v5213_v60 }
0x3230   : > { %6348 = vrsqrt.f32 %v5214_v48 }
0x323a   : > { %v6349_v62 = vpop.eup %6348 }
0x323b   : > { %v5216_v11 = vmul.f32 %v6349_v62, %v5208_v8 }
0x323d   : > { %v5217_v34 = vmul.f32 %v5216_v11, %v7080_v39 }
0x323f   : > { %v5218_v7 = vadd.f32 %v5217_v34, %v7083_v43 }
0x3241   : > { %6129 = vmatmul.mubr.msk.f32.vlgmr.msra.gmra.mrb[56].mxu0 %vm737_vm1, %v5218_v7 }
0x3314   : > { %v5288_v46 = vpop.f32.mrb[56].mxu0 }
0x3315   : > { %v5289_v49 = vadd.f32 %v7107_v4, %v5288_v46  ;;  %v6130_v63 = vpop.f32.mrb[57].mxu0 }
0x3317   : > { %v5292_v17 = vmax.f32 %v5289_v49, 0.0 }
0x3319   : > { %6148 = vmatmul.mubr.msk.f32.vlgmr.msra.gmra.mrb[54].mxu1 %vm3040_vm3, %v5292_v17 }
0x33ec   : > { %v5362_v1 = vpop.f32.mrb[54].mxu1 }
0x33ed   : > { %v5363_v9 = vadd.f32 %v7116_v55, %v5362_v1  ;;  %v6149_v14 = vpop.f32.mrb[55].mxu1 }
0x33ef   : > { %v5366_v57 = vadd.f32 %v5363_v9, %v5218_v7 }
0x33f1   : > { %v5367_v39 = vsel %vm737_vm1, %v5366_v57, 0.0 }
0x33f2   : > { %5368 = vadd.xlane.f32.xlu0 %v5367_v39 }
0x347f   : > { %v5369_v43 = vpop.xlane.xlu0 %5368 }
0x3480   : > { %v5370_v53 = vmul.f32 0.03125, %v5369_v43 }
0x3482   : > { %v5371_v23 = vsub.f32 %v5366_v57, %v5370_v53 }
0x3484   : > { %v5372_v4 = vmul.f32 %v5371_v23, %v5371_v23 }
0x3486   : > { %v5373_v41 = vsel %vm737_vm1, %v5372_v4, 0.0 }
0x3487   : > { %5374 = vadd.xlane.f32.xlu0 %v5373_v41 }
0x3488   : > { %6367 = shalt.err (!%p6364_p3)
}
0x3489   : > { %s6368_s23 = scalar_lea.hbm %s7374_s11, 512  ;;  %s6372_s30 = scalar_lea.hbm %s7471_s20, 1024 }
0x348a   : > { %p6369_p4 = scmp.ne.s32.totalorder %s7374_s11, %s6368_s23  ;;  %p6373_p9 = scmp.lt.u32.totalorder %s7374_s11, %s7471_s20 }
0x348b   : > { %p6374_p10 = scmp.lt.u32.totalorder %s6372_s30, %s6368_s23  ;;  %p6376_p12 = scmp.lt.u32.totalorder %s6368_s23, %s7374_s11 }
0x348c   : > { %p6370_p7 = pnand %p6369_p4, %p6611_p5 }
0x348d   : > { %p6375_p11 = por %p6374_p10, %p6373_p9 }
0x348e   : > { %p6371_p8 = pneg %p6370_p7 }
0x348f   : > { %p6377_p13 = por %p6376_p12, %p6375_p11 }
0x3491   : > { %p6378_p0 = pnand %p6377_p13, %p6371_p8 }
0x3493   : > { %6381 = shalt.err (!%p6378_p0)
}
0x3494   : > { %s6465_s3 = smov 128   ;;  %s6466_s0 = smov 8  }
0x3495   : > { %6217 = dma.vmem_to_hbm [thread:$0]  (%p6611_p5), %s7369_s25, 512, %s7374_s11, %s5389_s12, %s6465_s3, %s6465_s3, %s6466_s0  }
0x3496   : > { %s5549_s10 = sshll.u32 %s7277_s27, 3  ;;  %s5640_s7 = sshll.u32 %s6594_s2, 7 }
0x3497   : > { %s663_s8 = scalar_lea.vmem [#allocation2], %s5549_s10  ;;  %s7407_s25 = scalar_lea.hbm %s7470_s19, %s5640_s7 }
0x3498   : > { %s5402_s6 = sshll.u32 %s663_s8, 4  ;;  %s5384_s11 = scalar_lea.sflag [#allocation3], %s7277_s27  ;;  %s7409_s6 = int_to_ptr.vmem [resolvable:$true] %s5402_s6 }
0x3499   : > { %s6382_s2 = scalar_lea.vmem %s7409_s6, 128  ;;  %s6467_s12 = smov [#allocation2]  }
0x349a   : > { %p6383_p1 = scmp.ne.s32.totalorder %s7409_s6, %s6382_s2  ;;  %s6386_s5 = sshll.u32 %s6467_s12, 4  ;;  %s6387_s5 = int_to_ptr.vmem [resolvable:$false] %s6386_s5 }
0x349b   : > { %s6388_s21 = scalar_lea.vmem %s6387_s5, 256  ;;  %p6389_p4 = scmp.lt.s32.totalorder %s7409_s6, %s6387_s5 }
0x349c   : > { %p6384_p2 = pnand %p6383_p1, %p6611_p5  ;;  %p6390_p7 = scmp.lt.s32.totalorder %s6388_s21, %s6382_s2 }
0x349e   : > { %p6385_p3 = pneg %p6384_p2  ;;  %p6391_p8 = por %p6390_p7, %p6389_p4 }
0x34a0   : > { %p6392_p9 = pnand %p6391_p8, %p6385_p3 }
0x3514   : > { %v5375_v55 = vpop.xlane.xlu0 %5374 }
0x3515   : > { %v5376_v22 = vmul.f32 0.03125, %v5375_v55 }
0x3517   : > { %v5377_v21 = vadd.f32 1e-05, %v5376_v22 }
0x3519   : > { %6350 = vrsqrt.f32 %v5377_v21 }
0x3523   : > { %v6351_v26 = vpop.eup %6350 }
0x3524   : > { %v5379_v30 = vmul.f32 %v6351_v26, %v5371_v23 }
0x3526   : > { %v5380_v31 = vmul.f32 %v5379_v30, %v7124_v42 }
0x3528   : > { %v5381_v58 = vadd.f32 %v5380_v31, %v7127_v47 }
0x352a   : > { %5382 = vst.msk [vmem:[%s663_s8] sm:$0xff] %vm737_vm1, %v5381_v58 }
0x352b   : > { %6395 = shalt.err (!%p6392_p9)
}
0x352c   : > { %s6396_s27 = scalar_lea.hbm %s7407_s25, 128  ;;  %s6400_s9 = scalar_lea.hbm %s7470_s19, 256 }
0x352d   : > { %p6397_p10 = scmp.ne.s32.totalorder %s7407_s25, %s6396_s27  ;;  %p6401_p13 = scmp.lt.u32.totalorder %s7407_s25, %s7470_s19 }
0x352e   : > { %p6402_p0 = scmp.lt.u32.totalorder %s6400_s9, %s6396_s27  ;;  %p6404_p2 = scmp.lt.u32.totalorder %s6396_s27, %s7407_s25 }
0x352f   : > { %p6398_p11 = pnand %p6397_p10, %p6611_p5 }
0x3530   : > { %p6403_p1 = por %p6402_p0, %p6401_p13 }
0x3531   : > { %p6399_p12 = pneg %p6398_p11 }
0x3532   : > { %p6405_p3 = por %p6404_p2, %p6403_p1 }
0x3534   : > { %p6406_p4 = pnand %p6405_p3, %p6399_p12 }
0x3536   : > { %6409 = shalt.err (!%p6406_p4)
}
0x3537   : > { %6216 = dma.vmem_to_hbm [thread:$0]  (%p6611_p5), %s7409_s6, 128, %s7407_s25, %s5384_s11  }
0x3538 PF: > { %p6227_p7 = scmp.ge.s32.totalorder %s6448_s24, 2  ;;  %s5430_s10 = sand.u32 1, %s6436_s1  }
0x3539   : > { %s5431_s7 = scalar_lea.sflag [#allocation3], %s5430_s10 }
0x353a   : > { %p6221_p8 = pnand %p6227_p7, %p6615_p6 }
0x353c   : > { %6427 = dma.done.wait (!%p6221_p8), %s5431_s7, 128  }
0x353d   : > { %6429 = vsyncadd (!%p6221_p8), %s5431_s7, 4294967168  ;;  %s5440_s8 = scalar_lea.sflag [#allocation5], %s5430_s10 }
0x353e   : > { %6431 = dma.done.wait (!%p6221_p8), %s5440_s8, 512  }
0x353f   : > { %6433 = vsyncadd (!%p6221_p8), %s5440_s8, 4294966784  ;;  %s7537_s24 = sld [smem:[#allocation9_spill]]  ;;  %s7538_s4 = sld [smem:[#allocation8_spill]] }
0x3540   : > { %s7539_s23 = sld [smem:[#allocation10_spill]]  ;;  %s7540_s1 = smov %s6440_s22 }
0x3545   : > { %p34_p5 = scmp.ge.s32.totalorder %s7537_s24, 4   ;;  %s7541_s22 = smov %s7538_s4 }
0x3547   :  { %36 = sbr.rel (!%p34_p5) target bundleno = 19 (0x13), region = 160 }
0x354e   :  { %5445 = vsyncpa [#allocation3], 1 }
0x354f   :  { %5447 = vsyncpa [#allocation3 + $0x1], 1 }
0x3550   :  { %5448 = vsyncpa [#allocation5], 1 }
0x3551   :  { %5450 = vsyncpa [#allocation5 + $0x1], 1 }

</bundles_post_ra>
